<compile_context>
chip_gen: v5e
topology: v5e:2x2
jax: 0.10.0
libtpu: 0.0.40
codegen_flags: <defaults>
</compile_context>

<pallas_src>
import functools
import math

import jax
import jax.numpy as jnp
from jax.experimental import pallas as pl
from jax.experimental.pallas import tpu as pltpu  # noqa: F401  (single fused VMEM-resident call needs no TPU-specific params)

# ----------------------- config (small demo sizes) ------------------------
STATE_DIM = 4
ACT_DIM = 3
HIDDEN = 32
N_LAYER = 2
N_HEAD = 2
MAX_EP_LEN = 64
LN_EPS = 1e-5
FEAT = 1 + STATE_DIM + ACT_DIM        # fused (return | state | action) input width
HEAD_OUT = 1 + STATE_DIM + ACT_DIM    # fused (return | state | action) prediction width
NEG_INF = -1e9


def _layernorm(x, g, b):
    mu = jnp.mean(x, axis=-1, keepdims=True)
    var = jnp.mean((x - mu) ** 2, axis=-1, keepdims=True)
    return (x - mu) * jax.lax.rsqrt(var + LN_EPS) * g + b


# --------------------------- fused Pallas kernel ---------------------------
def _fused_dt_kernel(
        inp_ref, add_ref, lnmask_ref, bias_ref,
        w_emb_ref, eln_g_ref, eln_b_ref,
        ln1_g_ref, ln1_b_ref,
        w_q_ref, b_q_ref, w_k_ref, b_k_ref, w_v_ref, b_v_ref,
        w_ao_ref, b_ao_ref,
        ln2_g_ref, ln2_b_ref,
        w_fc_ref, b_fc_ref, w_po_ref, b_po_ref,
        lnf_g_ref, lnf_b_ref,
        w_head_ref, b_head_ref,
        o_ref, *, n_head, n_layer):
    """Whole PromptDecisionTransformer forward in one kernel invocation.

    Token rows are batch-folded: [b0: R0 S0 A0 R1 ... | b1: ...]; cross-batch
    attention is blocked by the additive bias passed in bias_ref.
    """
    H = w_emb_ref.shape[1]
    hd = H // n_head
    inv_scale = 1.0 / math.sqrt(hd)
    bf16 = jnp.bfloat16

    # ---- fused modality embeddings (+ time emb & per-modality bias in add_ref) ----
    x = jnp.dot(inp_ref[...].astype(bf16), w_emb_ref[...],
                preferred_element_type=jnp.float32) + add_ref[...]
    x_ln = _layernorm(x, eln_g_ref[...], eln_b_ref[...])
    # description tokens (lnmask == 0) bypass embed_ln, matching the reference.
    x = jnp.where(lnmask_ref[...] > 0.5, x_ln, x)

    bias = bias_ref[...]                # (T, T) causal + padding + block-diag batch

    for l in range(n_layer):
        # -------------- causal multi-head self-attention --------------
        h1 = _layernorm(x, ln1_g_ref[l], ln1_b_ref[l]).astype(bf16)
        attn_acc = None
        for hh in range(n_head):
            q = jnp.dot(h1, w_q_ref[l, hh],
                        preferred_element_type=jnp.float32) + b_q_ref[l, hh]
            k = jnp.dot(h1, w_k_ref[l, hh],
                        preferred_element_type=jnp.float32) + b_k_ref[l, hh]
            v = jnp.dot(h1, w_v_ref[l, hh],
                        preferred_element_type=jnp.float32) + b_v_ref[l, hh]
            # q @ k.T without an explicit transpose
            s = jax.lax.dot_general(
                q.astype(bf16), k.astype(bf16), (((1,), (1,)), ((), ())),
                preferred_element_type=jnp.float32) * inv_scale
            s = s + bias
            s = s - jnp.max(s, axis=-1, keepdims=True)
            p = jnp.exp(s)
            p = p * pl.reciprocal(jnp.sum(p, axis=-1, keepdims=True), approx=True)
            o_h = jnp.dot(p.astype(bf16), v.astype(bf16),
                          preferred_element_type=jnp.float32)
            # per-head row-slice of the output projection:
            #   sum_h o_h @ W_o[h] == concat(heads) @ W_o   (no in-kernel concat)
            contrib = jnp.dot(o_h.astype(bf16), w_ao_ref[l, hh],
                              preferred_element_type=jnp.float32)
            attn_acc = contrib if attn_acc is None else attn_acc + contrib
        x = x + attn_acc + b_ao_ref[l]

        # -------------------------- MLP (gelu_new) --------------------------
        h2 = _layernorm(x, ln2_g_ref[l], ln2_b_ref[l]).astype(bf16)
        ff = jnp.dot(h2, w_fc_ref[l],
                     preferred_element_type=jnp.float32) + b_fc_ref[l]
        ff = 0.5 * ff * (1.0 + jnp.tanh(
            0.7978845608028654 * (ff + 0.044715 * ff * ff * ff)))
        ff = jnp.dot(ff.astype(bf16), w_po_ref[l],
                     preferred_element_type=jnp.float32) + b_po_ref[l]
        x = x + ff

    # ----------------- final LN + fused prediction heads -----------------
    x = _layernorm(x, lnf_g_ref[...], lnf_b_ref[...])
    y = jnp.dot(x.astype(bf16), w_head_ref[...],
                preferred_element_type=jnp.float32) + b_head_ref[...]
    # tanh only on the action columns (predict_action ends with nn.Tanh()).
    col = jax.lax.broadcasted_iota(jnp.int32, y.shape, 1)
    y = jnp.where(col >= 1 + STATE_DIM, jnp.tanh(y), y)
    o_ref[...] = y


# ----------------------- weight repacking (JAX glue) ------------------------
def _prep_fused_params(params):
    """Repack module-style params into the fused-kernel layout."""
    H = HIDDEN
    nh = N_HEAD
    hd = H // nh
    bf16 = jnp.bfloat16
    layers = params['layers']
    nl = len(layers)

    def stack(key):
        return jnp.stack([lp[key] for lp in layers], axis=0)

    w_qkv = stack('w_qkv')                              # (NL, H, 3H)
    b_qkv = stack('b_qkv')                              # (NL, 1, 3H)

    def split_w(w):                                     # (NL, H, H) -> (NL, NH, H, hd)
        return w.reshape(nl, H, nh, hd).transpose(0, 2, 1, 3)

    def split_b(b):                                     # (NL, 1, H) -> (NL, NH, 1, hd)
        return b.reshape(nl, 1, nh, hd).transpose(0, 2, 1, 3)

    w_q = split_w(w_qkv[:, :, 0 * H:1 * H]).astype(bf16)
    w_k = split_w(w_qkv[:, :, 1 * H:2 * H]).astype(bf16)
    w_v = split_w(w_qkv[:, :, 2 * H:3 * H]).astype(bf16)
    b_q = split_b(b_qkv[:, :, 0 * H:1 * H])
    b_k = split_b(b_qkv[:, :, 1 * H:2 * H])
    b_v = split_b(b_qkv[:, :, 2 * H:3 * H])

    w_ao = stack('w_ao').reshape(nl, nh, hd, H).astype(bf16)   # row-split per head
    b_ao = stack('b_ao')

    w_emb = jnp.concatenate([params['embed_return']['w'],
                             params['embed_state']['w'],
                             params['embed_action']['w']], axis=0).astype(bf16)
    emb_bias_rows = jnp.concatenate([params['embed_return']['b'],
                                     params['embed_state']['b'],
                                     params['embed_action']['b']], axis=0)   # (3, H)

    w_head = jnp.concatenate([params['predict_return']['w'],
                              params['predict_state']['w'],
                              params['predict_action']['w']], axis=1).astype(bf16)
    b_head = jnp.concatenate([params['predict_return']['b'],
                              params['predict_state']['b'],
                              params['predict_action']['b']], axis=1)

    return dict(
        w_emb=w_emb, emb_bias_rows=emb_bias_rows,
        eln_g=params['embed_ln']['g'], eln_b=params['embed_ln']['b'],
        ln1_g=stack('ln1_g'), ln1_b=stack('ln1_b'),
        w_q=w_q, b_q=b_q, w_k=w_k, b_k=b_k, w_v=w_v, b_v=b_v,
        w_ao=w_ao, b_ao=b_ao,
        ln2_g=stack('ln2_g'), ln2_b=stack('ln2_b'),
        w_fc=stack('w_fc').astype(bf16), b_fc=stack('b_fc'),
        w_po=stack('w_po').astype(bf16), b_po=stack('b_po'),
        lnf_g=params['ln_f']['g'], lnf_b=params['ln_f']['b'],
        w_head=w_head, b_head=b_head)


# ------------------------------- forward -----------------------------------
def forward(params, states, actions, rewards, returns_to_go, timesteps,
            attention_mask=None, descriptions=None):
    del rewards  # unused, same as the PyTorch module
    B, L = states.shape[0], states.shape[1]
    H = HIDDEN
    if attention_mask is None:
        attention_mask = jnp.ones((B, L), dtype=jnp.int32)
    BL = B * L

    fp = _prep_fused_params(params)

    # per-token feature rows, interleaved (R, S, A) per timestep, batch-major
    r = returns_to_go.reshape(BL, 1).astype(jnp.float32)
    s = states.reshape(BL, STATE_DIM).astype(jnp.float32)
    a = actions.reshape(BL, ACT_DIM).astype(jnp.float32)
    zeros = lambda n: jnp.zeros((BL, n), jnp.float32)
    rows = jnp.stack([
        jnp.concatenate([r, zeros(STATE_DIM + ACT_DIM)], axis=-1),
        jnp.concatenate([zeros(1), s, zeros(ACT_DIM)], axis=-1),
        jnp.concatenate([zeros(1 + STATE_DIM), a], axis=-1)], axis=1)
    inp_traj = rows.reshape(3 * BL, FEAT)                       # (3BL, FEAT)

    time_emb = params['embed_timestep'][timesteps].reshape(BL, H)   # gather in glue
    add_traj = (jnp.repeat(time_emb, 3, axis=0)
                + jnp.tile(fp['emb_bias_rows'], (BL, 1)))           # (3BL, H)

    key_mask = jnp.repeat(attention_mask.astype(jnp.float32), 3, axis=1)  # (B, 3L)

    if descriptions is not None:
        # TODO(synk): output un-stacking keeps the reference's single
        # prepended-description-token assumption (x[:, 1:, :]).
        D = descriptions.shape[1]
        per_batch = D + 3 * L
        inp_full = jnp.concatenate(
            [jnp.zeros((B, D, FEAT), jnp.float32),
             inp_traj.reshape(B, 3 * L, FEAT)], axis=1).reshape(B * per_batch, FEAT)
        add_full = jnp.concatenate(
            [descriptions.astype(jnp.float32),
             add_traj.reshape(B, 3 * L, H)], axis=1).reshape(B * per_batch, H)
        ln_mask = jnp.concatenate(
            [jnp.zeros((B, D, 1), jnp.float32),
             jnp.ones((B, 3 * L, 1), jnp.float32)], axis=1).reshape(B * per_batch, 1)
        key_mask = jnp.concatenate([jnp.ones((B, D), jnp.float32), key_mask], axis=1)
    else:
        per_batch = 3 * L
        inp_full, add_full = inp_traj, add_traj
        ln_mask = jnp.ones((B * per_batch, 1), jnp.float32)

    T = B * per_batch

    # additive attention bias: causal + key-padding + block-diagonal batch mask
    tok_batch = jnp.repeat(jnp.arange(B, dtype=jnp.int32), per_batch)
    tok_pos = jnp.tile(jnp.arange(per_batch, dtype=jnp.int32), B)
    allowed = ((tok_batch[:, None] == tok_batch[None, :])
               & (tok_pos[:, None] >= tok_pos[None, :])
               & (key_mask.reshape(T)[None, :] > 0.5))
    attn_bias = jnp.where(allowed, 0.0, NEG_INF).astype(jnp.float32)

    out = pl.pallas_call(
        functools.partial(_fused_dt_kernel, n_head=N_HEAD, n_layer=N_LAYER),
        out_shape=jax.ShapeDtypeStruct((T, HEAD_OUT), jnp.float32),
    )(inp_full, add_full, ln_mask, attn_bias,
      fp['w_emb'], fp['eln_g'], fp['eln_b'],
      fp['ln1_g'], fp['ln1_b'],
      fp['w_q'], fp['b_q'], fp['w_k'], fp['b_k'], fp['w_v'], fp['b_v'],
      fp['w_ao'], fp['b_ao'],
      fp['ln2_g'], fp['ln2_b'],
      fp['w_fc'], fp['b_fc'], fp['w_po'], fp['b_po'],
      fp['lnf_g'], fp['lnf_b'],
      fp['w_head'], fp['b_head'])

    out = out.reshape(B, per_batch, HEAD_OUT)
    if descriptions is None:
        xh = out.reshape(B, L, 3, HEAD_OUT)
    else:
        xh = out[:, 1:, :].reshape(B, -1, 3, HEAD_OUT)
    act_tok = xh[:, :, 2, :]      # head outputs at action tokens
    state_tok = xh[:, :, 1, :]    # head outputs at state tokens
    return_preds = act_tok[:, -L:, 0:1]
    state_preds = act_tok[:, -L:, 1:1 + STATE_DIM]
    action_preds = state_tok[:, -L:, 1 + STATE_DIM:]
    return state_preds, action_preds, return_preds


# ------------------------- deterministic params ----------------------------
def init_params(key):
    keys = jax.random.split(key, 64)
    it = iter(keys)

    def lin(in_dim, out_dim, scale=0.02):
        kw, kb = jax.random.split(next(it))
        return {'w': scale * jax.random.normal(kw, (in_dim, out_dim), jnp.float32),
                'b': 0.01 * jax.random.normal(kb, (1, out_dim), jnp.float32)}

    def ln_p():
        return {'g': jnp.ones((1, HIDDEN), jnp.float32),
                'b': jnp.zeros((1, HIDDEN), jnp.float32)}

    def layer():
        a = lin(HIDDEN, 3 * HIDDEN)
        ao = lin(HIDDEN, HIDDEN)
        fc = lin(HIDDEN, 4 * HIDDEN)
        po = lin(4 * HIDDEN, HIDDEN)
        return {'ln1_g': jnp.ones((1, HIDDEN), jnp.float32),
                'ln1_b': jnp.zeros((1, HIDDEN), jnp.float32),
                'w_qkv': a['w'], 'b_qkv': a['b'],
                'w_ao': ao['w'], 'b_ao': ao['b'],
                'ln2_g': jnp.ones((1, HIDDEN), jnp.float32),
                'ln2_b': jnp.zeros((1, HIDDEN), jnp.float32),
                'w_fc': fc['w'], 'b_fc': fc['b'],
                'w_po': po['w'], 'b_po': po['b']}

    return {
        'embed_timestep': 0.02 * jax.random.normal(
            next(it), (MAX_EP_LEN, HIDDEN), jnp.float32),
        'embed_return': lin(1, HIDDEN),
        'embed_state': lin(STATE_DIM, HIDDEN),
        'embed_action': lin(ACT_DIM, HIDDEN),
        'embed_ln': ln_p(),
        'layers': [layer() for _ in range(N_LAYER)],
        'ln_f': ln_p(),
        'predict_return': lin(HIDDEN, 1),
        'predict_state': lin(HIDDEN, STATE_DIM),
        'predict_action': lin(HIDDEN, ACT_DIM),
        # descriptions_embed / prompt_embed_* exist in __init__ but are never
        # used in forward(); omitted here.
    }


if __name__ == "__main__":
    key = jax.random.PRNGKey(0)
    kp, ks, ka, kr = jax.random.split(key, 4)
    params = init_params(kp)

    B, L = 2, 8
    states = jax.random.normal(ks, (B, L, STATE_DIM), jnp.float32)
    actions = jax.random.normal(ka, (B, L, ACT_DIM), jnp.float32)
    returns_to_go = jax.random.normal(kr, (B, L, 1), jnp.float32)
    rewards = None
    timesteps = jnp.tile(jnp.arange(L, dtype=jnp.int32)[None, :], (B, 1))

    fwd = jax.jit(forward)
    state_preds, action_preds, return_preds = fwd(
        params, states, actions, rewards, returns_to_go, timesteps)
    jax.block_until_ready((state_preds, action_preds, return_preds))

    assert state_preds.shape == (B, L, STATE_DIM)
    assert action_preds.shape == (B, L, ACT_DIM)
    assert return_preds.shape == (B, L, 1)
    print("KERNEL_OK")
</pallas_src>

<mosaic_0001>
module attributes {stable_mosaic.version = 11 : i64} {
  func.func @_fused_dt_kernel(%arg0: memref<48x8xf32, #tpu.memory_space<vmem>>, %arg1: memref<48x32xf32, #tpu.memory_space<vmem>>, %arg2: memref<48x1xf32, #tpu.memory_space<vmem>>, %arg3: memref<48x48xf32, #tpu.memory_space<vmem>>, %arg4: memref<8x32xbf16, #tpu.memory_space<vmem>>, %arg5: memref<1x32xf32, #tpu.memory_space<vmem>>, %arg6: memref<1x32xf32, #tpu.memory_space<vmem>>, %arg7: memref<2x1x32xf32, #tpu.memory_space<vmem>>, %arg8: memref<2x1x32xf32, #tpu.memory_space<vmem>>, %arg9: memref<2x2x32x16xbf16, #tpu.memory_space<vmem>>, %arg10: memref<2x2x1x16xf32, #tpu.memory_space<vmem>>, %arg11: memref<2x2x32x16xbf16, #tpu.memory_space<vmem>>, %arg12: memref<2x2x1x16xf32, #tpu.memory_space<vmem>>, %arg13: memref<2x2x32x16xbf16, #tpu.memory_space<vmem>>, %arg14: memref<2x2x1x16xf32, #tpu.memory_space<vmem>>, %arg15: memref<2x2x16x32xbf16, #tpu.memory_space<vmem>>, %arg16: memref<2x1x32xf32, #tpu.memory_space<vmem>>, %arg17: memref<2x1x32xf32, #tpu.memory_space<vmem>>, %arg18: memref<2x1x32xf32, #tpu.memory_space<vmem>>, %arg19: memref<2x32x128xbf16, #tpu.memory_space<vmem>>, %arg20: memref<2x1x128xf32, #tpu.memory_space<vmem>>, %arg21: memref<2x128x32xbf16, #tpu.memory_space<vmem>>, %arg22: memref<2x1x32xf32, #tpu.memory_space<vmem>>, %arg23: memref<1x32xf32, #tpu.memory_space<vmem>>, %arg24: memref<1x32xf32, #tpu.memory_space<vmem>>, %arg25: memref<32x8xbf16, #tpu.memory_space<vmem>>, %arg26: memref<1x8xf32, #tpu.memory_space<vmem>>, %arg27: memref<48x8xf32, #tpu.memory_space<vmem>>) attributes {dimension_semantics = [], scalar_prefetch = 0 : i64, scratch_operands = 0 : i64, tpu.core_type = #tpu.core_type<tc>} {
    %c0 = arith.constant 0 : index
    %c0_0 = arith.constant 0 : index
    %0 = vector.load %arg0[%c0, %c0_0] : memref<48x8xf32, #tpu.memory_space<vmem>>, vector<48x8xf32>
    %1 = arith.truncf %0 : vector<48x8xf32> to vector<48x8xbf16>
    %c0_1 = arith.constant 0 : index
    %c0_2 = arith.constant 0 : index
    %2 = vector.load %arg4[%c0_1, %c0_2] : memref<8x32xbf16, #tpu.memory_space<vmem>>, vector<8x32xbf16>
    %cst = arith.constant dense<0.000000e+00> : vector<48x32xf32>
    %3 = tpu.matmul %1, %2, %cst {dimension_numbers = #tpu.dot_dimension_numbers<[1], [0], [0], [1], [0, 0, 1, 1], [], []>} : vector<48x8xbf16>, vector<8x32xbf16>, vector<48x32xf32> -> vector<48x32xf32>
    %c0_3 = arith.constant 0 : index
    %c0_4 = arith.constant 0 : index
    %4 = vector.load %arg1[%c0_3, %c0_4] : memref<48x32xf32, #tpu.memory_space<vmem>>, vector<48x32xf32>
    %5 = arith.addf %3, %4 : vector<48x32xf32>
    %c0_5 = arith.constant 0 : index
    %c0_6 = arith.constant 0 : index
    %6 = vector.load %arg5[%c0_5, %c0_6] : memref<1x32xf32, #tpu.memory_space<vmem>>, vector<1x32xf32>
    %c0_7 = arith.constant 0 : index
    %c0_8 = arith.constant 0 : index
    %7 = vector.load %arg6[%c0_7, %c0_8] : memref<1x32xf32, #tpu.memory_space<vmem>>, vector<1x32xf32>
    %cst_9 = arith.constant dense<0.000000e+00> : vector<48xf32>
    %8 = vector.multi_reduction <add>, %5, %cst_9 [1] : vector<48x32xf32> to vector<48xf32>
    %9 = vector.shape_cast %8 : vector<48xf32> to vector<48x1xf32>
    %cst_10 = arith.constant 3.200000e+01 : f32
    %10 = vector.broadcast %cst_10 : f32 to vector<48x1xf32>
    %11 = arith.divf %9, %10 : vector<48x1xf32>
    %12 = vector.broadcast %11 : vector<48x1xf32> to vector<48x32xf32>
    %13 = arith.subf %5, %12 : vector<48x32xf32>
    %14 = arith.mulf %13, %13 : vector<48x32xf32>
    %cst_11 = arith.constant dense<0.000000e+00> : vector<48xf32>
    %15 = vector.multi_reduction <add>, %14, %cst_11 [1] : vector<48x32xf32> to vector<48xf32>
    %16 = vector.shape_cast %15 : vector<48xf32> to vector<48x1xf32>
    %cst_12 = arith.constant 3.200000e+01 : f32
    %17 = vector.broadcast %cst_12 : f32 to vector<48x1xf32>
    %18 = arith.divf %16, %17 : vector<48x1xf32>
    %19 = vector.broadcast %11 : vector<48x1xf32> to vector<48x32xf32>
    %20 = arith.subf %5, %19 : vector<48x32xf32>
    %cst_13 = arith.constant 9.99999974E-6 : f32
    %21 = vector.broadcast %cst_13 : f32 to vector<48x1xf32>
    %22 = arith.addf %18, %21 : vector<48x1xf32>
    %23 = math.rsqrt %22 : vector<48x1xf32>
    %24 = vector.broadcast %23 : vector<48x1xf32> to vector<48x32xf32>
    %25 = arith.mulf %20, %24 : vector<48x32xf32>
    %26 = vector.broadcast %6 : vector<1x32xf32> to vector<48x32xf32>
    %27 = arith.mulf %25, %26 : vector<48x32xf32>
    %28 = vector.broadcast %7 : vector<1x32xf32> to vector<48x32xf32>
    %29 = arith.addf %27, %28 : vector<48x32xf32>
    %c0_14 = arith.constant 0 : index
    %c0_15 = arith.constant 0 : index
    %30 = vector.load %arg2[%c0_14, %c0_15] : memref<48x1xf32, #tpu.memory_space<vmem>>, vector<48x1xf32>
    %cst_16 = arith.constant 5.000000e-01 : f32
    %31 = vector.broadcast %cst_16 : f32 to vector<48x1xf32>
    %32 = arith.cmpf ogt, %30, %31 : vector<48x1xf32>
    %33 = vector.shape_cast %32 : vector<48x1xi1> to vector<48x1xi1>
    %34 = vector.broadcast %33 : vector<48x1xi1> to vector<48x32xi1>
    %35 = arith.select %34, %29, %5 : vector<48x32xi1>, vector<48x32xf32>
    %c0_17 = arith.constant 0 : index
    %c0_18 = arith.constant 0 : index
    %36 = vector.load %arg3[%c0_17, %c0_18] : memref<48x48xf32, #tpu.memory_space<vmem>>, vector<48x48xf32>
    %c0_19 = arith.constant 0 : index
    %c0_20 = arith.constant 0 : index
    %c0_21 = arith.constant 0 : index
    %37 = vector.load %arg7[%c0_19, %c0_20, %c0_21] : memref<2x1x32xf32, #tpu.memory_space<vmem>>, vector<1x1x32xf32>
    %38 = vector.shape_cast %37 : vector<1x1x32xf32> to vector<1x32xf32>
    %c0_22 = arith.constant 0 : index
    %c0_23 = arith.constant 0 : index
    %c0_24 = arith.constant 0 : index
    %39 = vector.load %arg8[%c0_22, %c0_23, %c0_24] : memref<2x1x32xf32, #tpu.memory_space<vmem>>, vector<1x1x32xf32>
    %40 = vector.shape_cast %39 : vector<1x1x32xf32> to vector<1x32xf32>
    %cst_25 = arith.constant dense<0.000000e+00> : vector<48xf32>
    %41 = vector.multi_reduction <add>, %35, %cst_25 [1] : vector<48x32xf32> to vector<48xf32>
    %42 = vector.shape_cast %41 : vector<48xf32> to vector<48x1xf32>
    %cst_26 = arith.constant 3.200000e+01 : f32
    %43 = vector.broadcast %cst_26 : f32 to vector<48x1xf32>
    %44 = arith.divf %42, %43 : vector<48x1xf32>
    %45 = vector.broadcast %44 : vector<48x1xf32> to vector<48x32xf32>
    %46 = arith.subf %35, %45 : vector<48x32xf32>
    %47 = arith.mulf %46, %46 : vector<48x32xf32>
    %cst_27 = arith.constant dense<0.000000e+00> : vector<48xf32>
    %48 = vector.multi_reduction <add>, %47, %cst_27 [1] : vector<48x32xf32> to vector<48xf32>
    %49 = vector.shape_cast %48 : vector<48xf32> to vector<48x1xf32>
    %cst_28 = arith.constant 3.200000e+01 : f32
    %50 = vector.broadcast %cst_28 : f32 to vector<48x1xf32>
    %51 = arith.divf %49, %50 : vector<48x1xf32>
    %52 = vector.broadcast %44 : vector<48x1xf32> to vector<48x32xf32>
    %53 = arith.subf %35, %52 : vector<48x32xf32>
    %cst_29 = arith.constant 9.99999974E-6 : f32
    %54 = vector.broadcast %cst_29 : f32 to vector<48x1xf32>
    %55 = arith.addf %51, %54 : vector<48x1xf32>
    %56 = math.rsqrt %55 : vector<48x1xf32>
    %57 = vector.broadcast %56 : vector<48x1xf32> to vector<48x32xf32>
    %58 = arith.mulf %53, %57 : vector<48x32xf32>
    %59 = vector.broadcast %38 : vector<1x32xf32> to vector<48x32xf32>
    %60 = arith.mulf %58, %59 : vector<48x32xf32>
    %61 = vector.broadcast %40 : vector<1x32xf32> to vector<48x32xf32>
    %62 = arith.addf %60, %61 : vector<48x32xf32>
    %63 = arith.truncf %62 : vector<48x32xf32> to vector<48x32xbf16>
    %c0_30 = arith.constant 0 : index
    %c0_31 = arith.constant 0 : index
    %c0_32 = arith.constant 0 : index
    %c0_33 = arith.constant 0 : index
    %64 = vector.load %arg9[%c0_30, %c0_31, %c0_32, %c0_33] : memref<2x2x32x16xbf16, #tpu.memory_space<vmem>>, vector<1x1x32x16xbf16>
    %65 = vector.shape_cast %64 : vector<1x1x32x16xbf16> to vector<32x16xbf16>
    %cst_34 = arith.constant dense<0.000000e+00> : vector<48x16xf32>
    %66 = tpu.matmul %63, %65, %cst_34 {dimension_numbers = #tpu.dot_dimension_numbers<[1], [0], [0], [1], [0, 0, 1, 1], [], []>} : vector<48x32xbf16>, vector<32x16xbf16>, vector<48x16xf32> -> vector<48x16xf32>
    %c0_35 = arith.constant 0 : index
    %c0_36 = arith.constant 0 : index
    %c0_37 = arith.constant 0 : index
    %c0_38 = arith.constant 0 : index
    %67 = vector.load %arg10[%c0_35, %c0_36, %c0_37, %c0_38] : memref<2x2x1x16xf32, #tpu.memory_space<vmem>>, vector<1x1x1x16xf32>
    %68 = vector.shape_cast %67 : vector<1x1x1x16xf32> to vector<1x16xf32>
    %69 = vector.broadcast %68 : vector<1x16xf32> to vector<48x16xf32>
    %70 = arith.addf %66, %69 : vector<48x16xf32>
    %c0_39 = arith.constant 0 : index
    %c0_40 = arith.constant 0 : index
    %c0_41 = arith.constant 0 : index
    %c0_42 = arith.constant 0 : index
    %71 = vector.load %arg11[%c0_39, %c0_40, %c0_41, %c0_42] : memref<2x2x32x16xbf16, #tpu.memory_space<vmem>>, vector<1x1x32x16xbf16>
    %72 = vector.shape_cast %71 : vector<1x1x32x16xbf16> to vector<32x16xbf16>
    %cst_43 = arith.constant dense<0.000000e+00> : vector<48x16xf32>
    %73 = tpu.matmul %63, %72, %cst_43 {dimension_numbers = #tpu.dot_dimension_numbers<[1], [0], [0], [1], [0, 0, 1, 1], [], []>} : vector<48x32xbf16>, vector<32x16xbf16>, vector<48x16xf32> -> vector<48x16xf32>
    %c0_44 = arith.constant 0 : index
    %c0_45 = arith.constant 0 : index
    %c0_46 = arith.constant 0 : index
    %c0_47 = arith.constant 0 : index
    %74 = vector.load %arg12[%c0_44, %c0_45, %c0_46, %c0_47] : memref<2x2x1x16xf32, #tpu.memory_space<vmem>>, vector<1x1x1x16xf32>
    %75 = vector.shape_cast %74 : vector<1x1x1x16xf32> to vector<1x16xf32>
    %76 = vector.broadcast %75 : vector<1x16xf32> to vector<48x16xf32>
    %77 = arith.addf %73, %76 : vector<48x16xf32>
    %c0_48 = arith.constant 0 : index
    %c0_49 = arith.constant 0 : index
    %c0_50 = arith.constant 0 : index
    %c0_51 = arith.constant 0 : index
    %78 = vector.load %arg13[%c0_48, %c0_49, %c0_50, %c0_51] : memref<2x2x32x16xbf16, #tpu.memory_space<vmem>>, vector<1x1x32x16xbf16>
    %79 = vector.shape_cast %78 : vector<1x1x32x16xbf16> to vector<32x16xbf16>
    %cst_52 = arith.constant dense<0.000000e+00> : vector<48x16xf32>
    %80 = tpu.matmul %63, %79, %cst_52 {dimension_numbers = #tpu.dot_dimension_numbers<[1], [0], [0], [1], [0, 0, 1, 1], [], []>} : vector<48x32xbf16>, vector<32x16xbf16>, vector<48x16xf32> -> vector<48x16xf32>
    %c0_53 = arith.constant 0 : index
    %c0_54 = arith.constant 0 : index
    %c0_55 = arith.constant 0 : index
    %c0_56 = arith.constant 0 : index
    %81 = vector.load %arg14[%c0_53, %c0_54, %c0_55, %c0_56] : memref<2x2x1x16xf32, #tpu.memory_space<vmem>>, vector<1x1x1x16xf32>
    %82 = vector.shape_cast %81 : vector<1x1x1x16xf32> to vector<1x16xf32>
    %83 = vector.broadcast %82 : vector<1x16xf32> to vector<48x16xf32>
    %84 = arith.addf %80, %83 : vector<48x16xf32>
    %85 = arith.truncf %70 : vector<48x16xf32> to vector<48x16xbf16>
    %86 = arith.truncf %77 : vector<48x16xf32> to vector<48x16xbf16>
    %cst_57 = arith.constant dense<0.000000e+00> : vector<48x48xf32>
    %87 = tpu.matmul %85, %86, %cst_57 {dimension_numbers = #tpu.dot_dimension_numbers<[1], [1], [0], [0], [0, 0, 1, 0], [], []>} : vector<48x16xbf16>, vector<48x16xbf16>, vector<48x48xf32> -> vector<48x48xf32>
    %cst_58 = arith.constant 2.500000e-01 : f32
    %88 = vector.broadcast %cst_58 : f32 to vector<48x48xf32>
    %89 = arith.mulf %87, %88 : vector<48x48xf32>
    %90 = arith.addf %89, %36 : vector<48x48xf32>
    %cst_59 = arith.constant dense<0xFF800000> : vector<48xf32>
    %91 = vector.multi_reduction <maximumf>, %90, %cst_59 [1] : vector<48x48xf32> to vector<48xf32>
    %92 = vector.shape_cast %91 : vector<48xf32> to vector<48x1xf32>
    %93 = vector.broadcast %92 : vector<48x1xf32> to vector<48x48xf32>
    %94 = arith.subf %90, %93 : vector<48x48xf32>
    %95 = math.exp %94 : vector<48x48xf32>
    %cst_60 = arith.constant dense<0.000000e+00> : vector<48xf32>
    %96 = vector.multi_reduction <add>, %95, %cst_60 [1] : vector<48x48xf32> to vector<48xf32>
    %97 = vector.shape_cast %96 : vector<48xf32> to vector<48x1xf32>
    %98 = tpu.reciprocal %97 {approx = true} : vector<48x1xf32> -> vector<48x1xf32>
    %99 = vector.broadcast %98 : vector<48x1xf32> to vector<48x48xf32>
    %100 = arith.mulf %95, %99 : vector<48x48xf32>
    %101 = arith.truncf %100 : vector<48x48xf32> to vector<48x48xbf16>
    %102 = arith.truncf %84 : vector<48x16xf32> to vector<48x16xbf16>
    %cst_61 = arith.constant dense<0.000000e+00> : vector<48x16xf32>
    %103 = tpu.matmul %101, %102, %cst_61 {dimension_numbers = #tpu.dot_dimension_numbers<[1], [0], [0], [1], [0, 0, 1, 1], [], []>} : vector<48x48xbf16>, vector<48x16xbf16>, vector<48x16xf32> -> vector<48x16xf32>
    %104 = arith.truncf %103 : vector<48x16xf32> to vector<48x16xbf16>
    %c0_62 = arith.constant 0 : index
    %c0_63 = arith.constant 0 : index
    %c0_64 = arith.constant 0 : index
    %c0_65 = arith.constant 0 : index
    %105 = vector.load %arg15[%c0_62, %c0_63, %c0_64, %c0_65] : memref<2x2x16x32xbf16, #tpu.memory_space<vmem>>, vector<1x1x16x32xbf16>
    %106 = vector.shape_cast %105 : vector<1x1x16x32xbf16> to vector<16x32xbf16>
    %cst_66 = arith.constant dense<0.000000e+00> : vector<48x32xf32>
    %107 = tpu.matmul %104, %106, %cst_66 {dimension_numbers = #tpu.dot_dimension_numbers<[1], [0], [0], [1], [0, 0, 1, 1], [], []>} : vector<48x16xbf16>, vector<16x32xbf16>, vector<48x32xf32> -> vector<48x32xf32>
    %c0_67 = arith.constant 0 : index
    %c1 = arith.constant 1 : index
    %c0_68 = arith.constant 0 : index
    %c0_69 = arith.constant 0 : index
    %108 = vector.load %arg9[%c0_67, %c1, %c0_68, %c0_69] : memref<2x2x32x16xbf16, #tpu.memory_space<vmem>>, vector<1x1x32x16xbf16>
    %109 = vector.shape_cast %108 : vector<1x1x32x16xbf16> to vector<32x16xbf16>
    %cst_70 = arith.constant dense<0.000000e+00> : vector<48x16xf32>
    %110 = tpu.matmul %63, %109, %cst_70 {dimension_numbers = #tpu.dot_dimension_numbers<[1], [0], [0], [1], [0, 0, 1, 1], [], []>} : vector<48x32xbf16>, vector<32x16xbf16>, vector<48x16xf32> -> vector<48x16xf32>
    %c0_71 = arith.constant 0 : index
    %c1_72 = arith.constant 1 : index
    %c0_73 = arith.constant 0 : index
    %c0_74 = arith.constant 0 : index
    %111 = vector.load %arg10[%c0_71, %c1_72, %c0_73, %c0_74] : memref<2x2x1x16xf32, #tpu.memory_space<vmem>>, vector<1x1x1x16xf32>
    %112 = vector.shape_cast %111 : vector<1x1x1x16xf32> to vector<1x16xf32>
    %113 = vector.broadcast %112 : vector<1x16xf32> to vector<48x16xf32>
    %114 = arith.addf %110, %113 : vector<48x16xf32>
    %c0_75 = arith.constant 0 : index
    %c1_76 = arith.constant 1 : index
    %c0_77 = arith.constant 0 : index
    %c0_78 = arith.constant 0 : index
    %115 = vector.load %arg11[%c0_75, %c1_76, %c0_77, %c0_78] : memref<2x2x32x16xbf16, #tpu.memory_space<vmem>>, vector<1x1x32x16xbf16>
    %116 = vector.shape_cast %115 : vector<1x1x32x16xbf16> to vector<32x16xbf16>
    %cst_79 = arith.constant dense<0.000000e+00> : vector<48x16xf32>
    %117 = tpu.matmul %63, %116, %cst_79 {dimension_numbers = #tpu.dot_dimension_numbers<[1], [0], [0], [1], [0, 0, 1, 1], [], []>} : vector<48x32xbf16>, vector<32x16xbf16>, vector<48x16xf32> -> vector<48x16xf32>
    %c0_80 = arith.constant 0 : index
    %c1_81 = arith.constant 1 : index
    %c0_82 = arith.constant 0 : index
    %c0_83 = arith.constant 0 : index
    %118 = vector.load %arg12[%c0_80, %c1_81, %c0_82, %c0_83] : memref<2x2x1x16xf32, #tpu.memory_space<vmem>>, vector<1x1x1x16xf32>
    %119 = vector.shape_cast %118 : vector<1x1x1x16xf32> to vector<1x16xf32>
    %120 = vector.broadcast %119 : vector<1x16xf32> to vector<48x16xf32>
    %121 = arith.addf %117, %120 : vector<48x16xf32>
    %c0_84 = arith.constant 0 : index
    %c1_85 = arith.constant 1 : index
    %c0_86 = arith.constant 0 : index
    %c0_87 = arith.constant 0 : index
    %122 = vector.load %arg13[%c0_84, %c1_85, %c0_86, %c0_87] : memref<2x2x32x16xbf16, #tpu.memory_space<vmem>>, vector<1x1x32x16xbf16>
    %123 = vector.shape_cast %122 : vector<1x1x32x16xbf16> to vector<32x16xbf16>
    %cst_88 = arith.constant dense<0.000000e+00> : vector<48x16xf32>
    %124 = tpu.matmul %63, %123, %cst_88 {dimension_numbers = #tpu.dot_dimension_numbers<[1], [0], [0], [1], [0, 0, 1, 1], [], []>} : vector<48x32xbf16>, vector<32x16xbf16>, vector<48x16xf32> -> vector<48x16xf32>
    %c0_89 = arith.constant 0 : index
    %c1_90 = arith.constant 1 : index
    %c0_91 = arith.constant 0 : index
    %c0_92 = arith.constant 0 : index
    %125 = vector.load %arg14[%c0_89, %c1_90, %c0_91, %c0_92] : memref<2x2x1x16xf32, #tpu.memory_space<vmem>>, vector<1x1x1x16xf32>
    %126 = vector.shape_cast %125 : vector<1x1x1x16xf32> to vector<1x16xf32>
    %127 = vector.broadcast %126 : vector<1x16xf32> to vector<48x16xf32>
    %128 = arith.addf %124, %127 : vector<48x16xf32>
    %129 = arith.truncf %114 : vector<48x16xf32> to vector<48x16xbf16>
    %130 = arith.truncf %121 : vector<48x16xf32> to vector<48x16xbf16>
    %cst_93 = arith.constant dense<0.000000e+00> : vector<48x48xf32>
    %131 = tpu.matmul %129, %130, %cst_93 {dimension_numbers = #tpu.dot_dimension_numbers<[1], [1], [0], [0], [0, 0, 1, 0], [], []>} : vector<48x16xbf16>, vector<48x16xbf16>, vector<48x48xf32> -> vector<48x48xf32>
    %cst_94 = arith.constant 2.500000e-01 : f32
    %132 = vector.broadcast %cst_94 : f32 to vector<48x48xf32>
    %133 = arith.mulf %131, %132 : vector<48x48xf32>
    %134 = arith.addf %133, %36 : vector<48x48xf32>
    %cst_95 = arith.constant dense<0xFF800000> : vector<48xf32>
    %135 = vector.multi_reduction <maximumf>, %134, %cst_95 [1] : vector<48x48xf32> to vector<48xf32>
    %136 = vector.shape_cast %135 : vector<48xf32> to vector<48x1xf32>
    %137 = vector.broadcast %136 : vector<48x1xf32> to vector<48x48xf32>
    %138 = arith.subf %134, %137 : vector<48x48xf32>
    %139 = math.exp %138 : vector<48x48xf32>
    %cst_96 = arith.constant dense<0.000000e+00> : vector<48xf32>
    %140 = vector.multi_reduction <add>, %139, %cst_96 [1] : vector<48x48xf32> to vector<48xf32>
    %141 = vector.shape_cast %140 : vector<48xf32> to vector<48x1xf32>
    %142 = tpu.reciprocal %141 {approx = true} : vector<48x1xf32> -> vector<48x1xf32>
    %143 = vector.broadcast %142 : vector<48x1xf32> to vector<48x48xf32>
    %144 = arith.mulf %139, %143 : vector<48x48xf32>
    %145 = arith.truncf %144 : vector<48x48xf32> to vector<48x48xbf16>
    %146 = arith.truncf %128 : vector<48x16xf32> to vector<48x16xbf16>
    %cst_97 = arith.constant dense<0.000000e+00> : vector<48x16xf32>
    %147 = tpu.matmul %145, %146, %cst_97 {dimension_numbers = #tpu.dot_dimension_numbers<[1], [0], [0], [1], [0, 0, 1, 1], [], []>} : vector<48x48xbf16>, vector<48x16xbf16>, vector<48x16xf32> -> vector<48x16xf32>
    %148 = arith.truncf %147 : vector<48x16xf32> to vector<48x16xbf16>
    %c0_98 = arith.constant 0 : index
    %c1_99 = arith.constant 1 : index
    %c0_100 = arith.constant 0 : index
    %c0_101 = arith.constant 0 : index
    %149 = vector.load %arg15[%c0_98, %c1_99, %c0_100, %c0_101] : memref<2x2x16x32xbf16, #tpu.memory_space<vmem>>, vector<1x1x16x32xbf16>
    %150 = vector.shape_cast %149 : vector<1x1x16x32xbf16> to vector<16x32xbf16>
    %cst_102 = arith.constant dense<0.000000e+00> : vector<48x32xf32>
    %151 = tpu.matmul %148, %150, %cst_102 {dimension_numbers = #tpu.dot_dimension_numbers<[1], [0], [0], [1], [0, 0, 1, 1], [], []>} : vector<48x16xbf16>, vector<16x32xbf16>, vector<48x32xf32> -> vector<48x32xf32>
    %152 = arith.addf %107, %151 : vector<48x32xf32>
    %153 = arith.addf %35, %152 : vector<48x32xf32>
    %c0_103 = arith.constant 0 : index
    %c0_104 = arith.constant 0 : index
    %c0_105 = arith.constant 0 : index
    %154 = vector.load %arg16[%c0_103, %c0_104, %c0_105] : memref<2x1x32xf32, #tpu.memory_space<vmem>>, vector<1x1x32xf32>
    %155 = vector.shape_cast %154 : vector<1x1x32xf32> to vector<1x32xf32>
    %156 = vector.broadcast %155 : vector<1x32xf32> to vector<48x32xf32>
    %157 = arith.addf %153, %156 : vector<48x32xf32>
    %c0_106 = arith.constant 0 : index
    %c0_107 = arith.constant 0 : index
    %c0_108 = arith.constant 0 : index
    %158 = vector.load %arg17[%c0_106, %c0_107, %c0_108] : memref<2x1x32xf32, #tpu.memory_space<vmem>>, vector<1x1x32xf32>
    %159 = vector.shape_cast %158 : vector<1x1x32xf32> to vector<1x32xf32>
    %c0_109 = arith.constant 0 : index
    %c0_110 = arith.constant 0 : index
    %c0_111 = arith.constant 0 : index
    %160 = vector.load %arg18[%c0_109, %c0_110, %c0_111] : memref<2x1x32xf32, #tpu.memory_space<vmem>>, vector<1x1x32xf32>
    %161 = vector.shape_cast %160 : vector<1x1x32xf32> to vector<1x32xf32>
    %cst_112 = arith.constant dense<0.000000e+00> : vector<48xf32>
    %162 = vector.multi_reduction <add>, %157, %cst_112 [1] : vector<48x32xf32> to vector<48xf32>
    %163 = vector.shape_cast %162 : vector<48xf32> to vector<48x1xf32>
    %cst_113 = arith.constant 3.200000e+01 : f32
    %164 = vector.broadcast %cst_113 : f32 to vector<48x1xf32>
    %165 = arith.divf %163, %164 : vector<48x1xf32>
    %166 = vector.broadcast %165 : vector<48x1xf32> to vector<48x32xf32>
    %167 = arith.subf %157, %166 : vector<48x32xf32>
    %168 = arith.mulf %167, %167 : vector<48x32xf32>
    %cst_114 = arith.constant dense<0.000000e+00> : vector<48xf32>
    %169 = vector.multi_reduction <add>, %168, %cst_114 [1] : vector<48x32xf32> to vector<48xf32>
    %170 = vector.shape_cast %169 : vector<48xf32> to vector<48x1xf32>
    %cst_115 = arith.constant 3.200000e+01 : f32
    %171 = vector.broadcast %cst_115 : f32 to vector<48x1xf32>
    %172 = arith.divf %170, %171 : vector<48x1xf32>
    %173 = vector.broadcast %165 : vector<48x1xf32> to vector<48x32xf32>
    %174 = arith.subf %157, %173 : vector<48x32xf32>
    %cst_116 = arith.constant 9.99999974E-6 : f32
    %175 = vector.broadcast %cst_116 : f32 to vector<48x1xf32>
    %176 = arith.addf %172, %175 : vector<48x1xf32>
    %177 = math.rsqrt %176 : vector<48x1xf32>
    %178 = vector.broadcast %177 : vector<48x1xf32> to vector<48x32xf32>
    %179 = arith.mulf %174, %178 : vector<48x32xf32>
    %180 = vector.broadcast %159 : vector<1x32xf32> to vector<48x32xf32>
    %181 = arith.mulf %179, %180 : vector<48x32xf32>
    %182 = vector.broadcast %161 : vector<1x32xf32> to vector<48x32xf32>
    %183 = arith.addf %181, %182 : vector<48x32xf32>
    %184 = arith.truncf %183 : vector<48x32xf32> to vector<48x32xbf16>
    %c0_117 = arith.constant 0 : index
    %c0_118 = arith.constant 0 : index
    %c0_119 = arith.constant 0 : index
    %185 = vector.load %arg19[%c0_117, %c0_118, %c0_119] : memref<2x32x128xbf16, #tpu.memory_space<vmem>>, vector<1x32x128xbf16>
    %186 = vector.shape_cast %185 : vector<1x32x128xbf16> to vector<32x128xbf16>
    %cst_120 = arith.constant dense<0.000000e+00> : vector<48x128xf32>
    %187 = tpu.matmul %184, %186, %cst_120 {dimension_numbers = #tpu.dot_dimension_numbers<[1], [0], [0], [1], [0, 0, 1, 1], [], []>} : vector<48x32xbf16>, vector<32x128xbf16>, vector<48x128xf32> -> vector<48x128xf32>
    %c0_121 = arith.constant 0 : index
    %c0_122 = arith.constant 0 : index
    %c0_123 = arith.constant 0 : index
    %188 = vector.load %arg20[%c0_121, %c0_122, %c0_123] : memref<2x1x128xf32, #tpu.memory_space<vmem>>, vector<1x1x128xf32>
    %189 = vector.shape_cast %188 : vector<1x1x128xf32> to vector<1x128xf32>
    %190 = vector.broadcast %189 : vector<1x128xf32> to vector<48x128xf32>
    %191 = arith.addf %187, %190 : vector<48x128xf32>
    %cst_124 = arith.constant 5.000000e-01 : f32
    %192 = vector.broadcast %cst_124 : f32 to vector<48x128xf32>
    %193 = arith.mulf %192, %191 : vector<48x128xf32>
    %cst_125 = arith.constant 4.471500e-02 : f32
    %194 = vector.broadcast %cst_125 : f32 to vector<48x128xf32>
    %195 = arith.mulf %194, %191 : vector<48x128xf32>
    %196 = arith.mulf %195, %191 : vector<48x128xf32>
    %197 = arith.mulf %196, %191 : vector<48x128xf32>
    %198 = arith.addf %191, %197 : vector<48x128xf32>
    %cst_126 = arith.constant 0.797884583 : f32
    %199 = vector.broadcast %cst_126 : f32 to vector<48x128xf32>
    %200 = arith.mulf %199, %198 : vector<48x128xf32>
    %201 = math.tanh %200 : vector<48x128xf32>
    %cst_127 = arith.constant 1.000000e+00 : f32
    %202 = vector.broadcast %cst_127 : f32 to vector<48x128xf32>
    %203 = arith.addf %202, %201 : vector<48x128xf32>
    %204 = arith.mulf %193, %203 : vector<48x128xf32>
    %205 = arith.truncf %204 : vector<48x128xf32> to vector<48x128xbf16>
    %c0_128 = arith.constant 0 : index
    %c0_129 = arith.constant 0 : index
    %c0_130 = arith.constant 0 : index
    %206 = vector.load %arg21[%c0_128, %c0_129, %c0_130] : memref<2x128x32xbf16, #tpu.memory_space<vmem>>, vector<1x128x32xbf16>
    %207 = vector.shape_cast %206 : vector<1x128x32xbf16> to vector<128x32xbf16>
    %cst_131 = arith.constant dense<0.000000e+00> : vector<48x32xf32>
    %208 = tpu.matmul %205, %207, %cst_131 {dimension_numbers = #tpu.dot_dimension_numbers<[1], [0], [0], [1], [0, 0, 1, 1], [], []>} : vector<48x128xbf16>, vector<128x32xbf16>, vector<48x32xf32> -> vector<48x32xf32>
    %c0_132 = arith.constant 0 : index
    %c0_133 = arith.constant 0 : index
    %c0_134 = arith.constant 0 : index
    %209 = vector.load %arg22[%c0_132, %c0_133, %c0_134] : memref<2x1x32xf32, #tpu.memory_space<vmem>>, vector<1x1x32xf32>
    %210 = vector.shape_cast %209 : vector<1x1x32xf32> to vector<1x32xf32>
    %211 = vector.broadcast %210 : vector<1x32xf32> to vector<48x32xf32>
    %212 = arith.addf %208, %211 : vector<48x32xf32>
    %213 = arith.addf %157, %212 : vector<48x32xf32>
    %c1_135 = arith.constant 1 : index
    %c0_136 = arith.constant 0 : index
    %c0_137 = arith.constant 0 : index
    %214 = vector.load %arg7[%c1_135, %c0_136, %c0_137] : memref<2x1x32xf32, #tpu.memory_space<vmem>>, vector<1x1x32xf32>
    %215 = vector.shape_cast %214 : vector<1x1x32xf32> to vector<1x32xf32>
    %c1_138 = arith.constant 1 : index
    %c0_139 = arith.constant 0 : index
    %c0_140 = arith.constant 0 : index
    %216 = vector.load %arg8[%c1_138, %c0_139, %c0_140] : memref<2x1x32xf32, #tpu.memory_space<vmem>>, vector<1x1x32xf32>
    %217 = vector.shape_cast %216 : vector<1x1x32xf32> to vector<1x32xf32>
    %cst_141 = arith.constant dense<0.000000e+00> : vector<48xf32>
    %218 = vector.multi_reduction <add>, %213, %cst_141 [1] : vector<48x32xf32> to vector<48xf32>
    %219 = vector.shape_cast %218 : vector<48xf32> to vector<48x1xf32>
    %cst_142 = arith.constant 3.200000e+01 : f32
    %220 = vector.broadcast %cst_142 : f32 to vector<48x1xf32>
    %221 = arith.divf %219, %220 : vector<48x1xf32>
    %222 = vector.broadcast %221 : vector<48x1xf32> to vector<48x32xf32>
    %223 = arith.subf %213, %222 : vector<48x32xf32>
    %224 = arith.mulf %223, %223 : vector<48x32xf32>
    %cst_143 = arith.constant dense<0.000000e+00> : vector<48xf32>
    %225 = vector.multi_reduction <add>, %224, %cst_143 [1] : vector<48x32xf32> to vector<48xf32>
    %226 = vector.shape_cast %225 : vector<48xf32> to vector<48x1xf32>
    %cst_144 = arith.constant 3.200000e+01 : f32
    %227 = vector.broadcast %cst_144 : f32 to vector<48x1xf32>
    %228 = arith.divf %226, %227 : vector<48x1xf32>
    %229 = vector.broadcast %221 : vector<48x1xf32> to vector<48x32xf32>
    %230 = arith.subf %213, %229 : vector<48x32xf32>
    %cst_145 = arith.constant 9.99999974E-6 : f32
    %231 = vector.broadcast %cst_145 : f32 to vector<48x1xf32>
    %232 = arith.addf %228, %231 : vector<48x1xf32>
    %233 = math.rsqrt %232 : vector<48x1xf32>
    %234 = vector.broadcast %233 : vector<48x1xf32> to vector<48x32xf32>
    %235 = arith.mulf %230, %234 : vector<48x32xf32>
    %236 = vector.broadcast %215 : vector<1x32xf32> to vector<48x32xf32>
    %237 = arith.mulf %235, %236 : vector<48x32xf32>
    %238 = vector.broadcast %217 : vector<1x32xf32> to vector<48x32xf32>
    %239 = arith.addf %237, %238 : vector<48x32xf32>
    %240 = arith.truncf %239 : vector<48x32xf32> to vector<48x32xbf16>
    %c1_146 = arith.constant 1 : index
    %c0_147 = arith.constant 0 : index
    %c0_148 = arith.constant 0 : index
    %c0_149 = arith.constant 0 : index
    %241 = vector.load %arg9[%c1_146, %c0_147, %c0_148, %c0_149] : memref<2x2x32x16xbf16, #tpu.memory_space<vmem>>, vector<1x1x32x16xbf16>
    %242 = vector.shape_cast %241 : vector<1x1x32x16xbf16> to vector<32x16xbf16>
    %cst_150 = arith.constant dense<0.000000e+00> : vector<48x16xf32>
    %243 = tpu.matmul %240, %242, %cst_150 {dimension_numbers = #tpu.dot_dimension_numbers<[1], [0], [0], [1], [0, 0, 1, 1], [], []>} : vector<48x32xbf16>, vector<32x16xbf16>, vector<48x16xf32> -> vector<48x16xf32>
    %c1_151 = arith.constant 1 : index
    %c0_152 = arith.constant 0 : index
    %c0_153 = arith.constant 0 : index
    %c0_154 = arith.constant 0 : index
    %244 = vector.load %arg10[%c1_151, %c0_152, %c0_153, %c0_154] : memref<2x2x1x16xf32, #tpu.memory_space<vmem>>, vector<1x1x1x16xf32>
    %245 = vector.shape_cast %244 : vector<1x1x1x16xf32> to vector<1x16xf32>
    %246 = vector.broadcast %245 : vector<1x16xf32> to vector<48x16xf32>
    %247 = arith.addf %243, %246 : vector<48x16xf32>
    %c1_155 = arith.constant 1 : index
    %c0_156 = arith.constant 0 : index
    %c0_157 = arith.constant 0 : index
    %c0_158 = arith.constant 0 : index
    %248 = vector.load %arg11[%c1_155, %c0_156, %c0_157, %c0_158] : memref<2x2x32x16xbf16, #tpu.memory_space<vmem>>, vector<1x1x32x16xbf16>
    %249 = vector.shape_cast %248 : vector<1x1x32x16xbf16> to vector<32x16xbf16>
    %cst_159 = arith.constant dense<0.000000e+00> : vector<48x16xf32>
    %250 = tpu.matmul %240, %249, %cst_159 {dimension_numbers = #tpu.dot_dimension_numbers<[1], [0], [0], [1], [0, 0, 1, 1], [], []>} : vector<48x32xbf16>, vector<32x16xbf16>, vector<48x16xf32> -> vector<48x16xf32>
    %c1_160 = arith.constant 1 : index
    %c0_161 = arith.constant 0 : index
    %c0_162 = arith.constant 0 : index
    %c0_163 = arith.constant 0 : index
    %251 = vector.load %arg12[%c1_160, %c0_161, %c0_162, %c0_163] : memref<2x2x1x16xf32, #tpu.memory_space<vmem>>, vector<1x1x1x16xf32>
    %252 = vector.shape_cast %251 : vector<1x1x1x16xf32> to vector<1x16xf32>
    %253 = vector.broadcast %252 : vector<1x16xf32> to vector<48x16xf32>
    %254 = arith.addf %250, %253 : vector<48x16xf32>
    %c1_164 = arith.constant 1 : index
    %c0_165 = arith.constant 0 : index
    %c0_166 = arith.constant 0 : index
    %c0_167 = arith.constant 0 : index
    %255 = vector.load %arg13[%c1_164, %c0_165, %c0_166, %c0_167] : memref<2x2x32x16xbf16, #tpu.memory_space<vmem>>, vector<1x1x32x16xbf16>
    %256 = vector.shape_cast %255 : vector<1x1x32x16xbf16> to vector<32x16xbf16>
    %cst_168 = arith.constant dense<0.000000e+00> : vector<48x16xf32>
    %257 = tpu.matmul %240, %256, %cst_168 {dimension_numbers = #tpu.dot_dimension_numbers<[1], [0], [0], [1], [0, 0, 1, 1], [], []>} : vector<48x32xbf16>, vector<32x16xbf16>, vector<48x16xf32> -> vector<48x16xf32>
    %c1_169 = arith.constant 1 : index
    %c0_170 = arith.constant 0 : index
    %c0_171 = arith.constant 0 : index
    %c0_172 = arith.constant 0 : index
    %258 = vector.load %arg14[%c1_169, %c0_170, %c0_171, %c0_172] : memref<2x2x1x16xf32, #tpu.memory_space<vmem>>, vector<1x1x1x16xf32>
    %259 = vector.shape_cast %258 : vector<1x1x1x16xf32> to vector<1x16xf32>
    %260 = vector.broadcast %259 : vector<1x16xf32> to vector<48x16xf32>
    %261 = arith.addf %257, %260 : vector<48x16xf32>
    %262 = arith.truncf %247 : vector<48x16xf32> to vector<48x16xbf16>
    %263 = arith.truncf %254 : vector<48x16xf32> to vector<48x16xbf16>
    %cst_173 = arith.constant dense<0.000000e+00> : vector<48x48xf32>
    %264 = tpu.matmul %262, %263, %cst_173 {dimension_numbers = #tpu.dot_dimension_numbers<[1], [1], [0], [0], [0, 0, 1, 0], [], []>} : vector<48x16xbf16>, vector<48x16xbf16>, vector<48x48xf32> -> vector<48x48xf32>
    %cst_174 = arith.constant 2.500000e-01 : f32
    %265 = vector.broadcast %cst_174 : f32 to vector<48x48xf32>
    %266 = arith.mulf %264, %265 : vector<48x48xf32>
    %267 = arith.addf %266, %36 : vector<48x48xf32>
    %cst_175 = arith.constant dense<0xFF800000> : vector<48xf32>
    %268 = vector.multi_reduction <maximumf>, %267, %cst_175 [1] : vector<48x48xf32> to vector<48xf32>
    %269 = vector.shape_cast %268 : vector<48xf32> to vector<48x1xf32>
    %270 = vector.broadcast %269 : vector<48x1xf32> to vector<48x48xf32>
    %271 = arith.subf %267, %270 : vector<48x48xf32>
    %272 = math.exp %271 : vector<48x48xf32>
    %cst_176 = arith.constant dense<0.000000e+00> : vector<48xf32>
    %273 = vector.multi_reduction <add>, %272, %cst_176 [1] : vector<48x48xf32> to vector<48xf32>
    %274 = vector.shape_cast %273 : vector<48xf32> to vector<48x1xf32>
    %275 = tpu.reciprocal %274 {approx = true} : vector<48x1xf32> -> vector<48x1xf32>
    %276 = vector.broadcast %275 : vector<48x1xf32> to vector<48x48xf32>
    %277 = arith.mulf %272, %276 : vector<48x48xf32>
    %278 = arith.truncf %277 : vector<48x48xf32> to vector<48x48xbf16>
    %279 = arith.truncf %261 : vector<48x16xf32> to vector<48x16xbf16>
    %cst_177 = arith.constant dense<0.000000e+00> : vector<48x16xf32>
    %280 = tpu.matmul %278, %279, %cst_177 {dimension_numbers = #tpu.dot_dimension_numbers<[1], [0], [0], [1], [0, 0, 1, 1], [], []>} : vector<48x48xbf16>, vector<48x16xbf16>, vector<48x16xf32> -> vector<48x16xf32>
    %281 = arith.truncf %280 : vector<48x16xf32> to vector<48x16xbf16>
    %c1_178 = arith.constant 1 : index
    %c0_179 = arith.constant 0 : index
    %c0_180 = arith.constant 0 : index
    %c0_181 = arith.constant 0 : index
    %282 = vector.load %arg15[%c1_178, %c0_179, %c0_180, %c0_181] : memref<2x2x16x32xbf16, #tpu.memory_space<vmem>>, vector<1x1x16x32xbf16>
    %283 = vector.shape_cast %282 : vector<1x1x16x32xbf16> to vector<16x32xbf16>
    %cst_182 = arith.constant dense<0.000000e+00> : vector<48x32xf32>
    %284 = tpu.matmul %281, %283, %cst_182 {dimension_numbers = #tpu.dot_dimension_numbers<[1], [0], [0], [1], [0, 0, 1, 1], [], []>} : vector<48x16xbf16>, vector<16x32xbf16>, vector<48x32xf32> -> vector<48x32xf32>
    %c1_183 = arith.constant 1 : index
    %c1_184 = arith.constant 1 : index
    %c0_185 = arith.constant 0 : index
    %c0_186 = arith.constant 0 : index
    %285 = vector.load %arg9[%c1_183, %c1_184, %c0_185, %c0_186] : memref<2x2x32x16xbf16, #tpu.memory_space<vmem>>, vector<1x1x32x16xbf16>
    %286 = vector.shape_cast %285 : vector<1x1x32x16xbf16> to vector<32x16xbf16>
    %cst_187 = arith.constant dense<0.000000e+00> : vector<48x16xf32>
    %287 = tpu.matmul %240, %286, %cst_187 {dimension_numbers = #tpu.dot_dimension_numbers<[1], [0], [0], [1], [0, 0, 1, 1], [], []>} : vector<48x32xbf16>, vector<32x16xbf16>, vector<48x16xf32> -> vector<48x16xf32>
    %c1_188 = arith.constant 1 : index
    %c1_189 = arith.constant 1 : index
    %c0_190 = arith.constant 0 : index
    %c0_191 = arith.constant 0 : index
    %288 = vector.load %arg10[%c1_188, %c1_189, %c0_190, %c0_191] : memref<2x2x1x16xf32, #tpu.memory_space<vmem>>, vector<1x1x1x16xf32>
    %289 = vector.shape_cast %288 : vector<1x1x1x16xf32> to vector<1x16xf32>
    %290 = vector.broadcast %289 : vector<1x16xf32> to vector<48x16xf32>
    %291 = arith.addf %287, %290 : vector<48x16xf32>
    %c1_192 = arith.constant 1 : index
    %c1_193 = arith.constant 1 : index
    %c0_194 = arith.constant 0 : index
    %c0_195 = arith.constant 0 : index
    %292 = vector.load %arg11[%c1_192, %c1_193, %c0_194, %c0_195] : memref<2x2x32x16xbf16, #tpu.memory_space<vmem>>, vector<1x1x32x16xbf16>
    %293 = vector.shape_cast %292 : vector<1x1x32x16xbf16> to vector<32x16xbf16>
    %cst_196 = arith.constant dense<0.000000e+00> : vector<48x16xf32>
    %294 = tpu.matmul %240, %293, %cst_196 {dimension_numbers = #tpu.dot_dimension_numbers<[1], [0], [0], [1], [0, 0, 1, 1], [], []>} : vector<48x32xbf16>, vector<32x16xbf16>, vector<48x16xf32> -> vector<48x16xf32>
    %c1_197 = arith.constant 1 : index
    %c1_198 = arith.constant 1 : index
    %c0_199 = arith.constant 0 : index
    %c0_200 = arith.constant 0 : index
    %295 = vector.load %arg12[%c1_197, %c1_198, %c0_199, %c0_200] : memref<2x2x1x16xf32, #tpu.memory_space<vmem>>, vector<1x1x1x16xf32>
    %296 = vector.shape_cast %295 : vector<1x1x1x16xf32> to vector<1x16xf32>
    %297 = vector.broadcast %296 : vector<1x16xf32> to vector<48x16xf32>
    %298 = arith.addf %294, %297 : vector<48x16xf32>
    %c1_201 = arith.constant 1 : index
    %c1_202 = arith.constant 1 : index
    %c0_203 = arith.constant 0 : index
    %c0_204 = arith.constant 0 : index
    %299 = vector.load %arg13[%c1_201, %c1_202, %c0_203, %c0_204] : memref<2x2x32x16xbf16, #tpu.memory_space<vmem>>, vector<1x1x32x16xbf16>
    %300 = vector.shape_cast %299 : vector<1x1x32x16xbf16> to vector<32x16xbf16>
    %cst_205 = arith.constant dense<0.000000e+00> : vector<48x16xf32>
    %301 = tpu.matmul %240, %300, %cst_205 {dimension_numbers = #tpu.dot_dimension_numbers<[1], [0], [0], [1], [0, 0, 1, 1], [], []>} : vector<48x32xbf16>, vector<32x16xbf16>, vector<48x16xf32> -> vector<48x16xf32>
    %c1_206 = arith.constant 1 : index
    %c1_207 = arith.constant 1 : index
    %c0_208 = arith.constant 0 : index
    %c0_209 = arith.constant 0 : index
    %302 = vector.load %arg14[%c1_206, %c1_207, %c0_208, %c0_209] : memref<2x2x1x16xf32, #tpu.memory_space<vmem>>, vector<1x1x1x16xf32>
    %303 = vector.shape_cast %302 : vector<1x1x1x16xf32> to vector<1x16xf32>
    %304 = vector.broadcast %303 : vector<1x16xf32> to vector<48x16xf32>
    %305 = arith.addf %301, %304 : vector<48x16xf32>
    %306 = arith.truncf %291 : vector<48x16xf32> to vector<48x16xbf16>
    %307 = arith.truncf %298 : vector<48x16xf32> to vector<48x16xbf16>
    %cst_210 = arith.constant dense<0.000000e+00> : vector<48x48xf32>
    %308 = tpu.matmul %306, %307, %cst_210 {dimension_numbers = #tpu.dot_dimension_numbers<[1], [1], [0], [0], [0, 0, 1, 0], [], []>} : vector<48x16xbf16>, vector<48x16xbf16>, vector<48x48xf32> -> vector<48x48xf32>
    %cst_211 = arith.constant 2.500000e-01 : f32
    %309 = vector.broadcast %cst_211 : f32 to vector<48x48xf32>
    %310 = arith.mulf %308, %309 : vector<48x48xf32>
    %311 = arith.addf %310, %36 : vector<48x48xf32>
    %cst_212 = arith.constant dense<0xFF800000> : vector<48xf32>
    %312 = vector.multi_reduction <maximumf>, %311, %cst_212 [1] : vector<48x48xf32> to vector<48xf32>
    %313 = vector.shape_cast %312 : vector<48xf32> to vector<48x1xf32>
    %314 = vector.broadcast %313 : vector<48x1xf32> to vector<48x48xf32>
    %315 = arith.subf %311, %314 : vector<48x48xf32>
    %316 = math.exp %315 : vector<48x48xf32>
    %cst_213 = arith.constant dense<0.000000e+00> : vector<48xf32>
    %317 = vector.multi_reduction <add>, %316, %cst_213 [1] : vector<48x48xf32> to vector<48xf32>
    %318 = vector.shape_cast %317 : vector<48xf32> to vector<48x1xf32>
    %319 = tpu.reciprocal %318 {approx = true} : vector<48x1xf32> -> vector<48x1xf32>
    %320 = vector.broadcast %319 : vector<48x1xf32> to vector<48x48xf32>
    %321 = arith.mulf %316, %320 : vector<48x48xf32>
    %322 = arith.truncf %321 : vector<48x48xf32> to vector<48x48xbf16>
    %323 = arith.truncf %305 : vector<48x16xf32> to vector<48x16xbf16>
    %cst_214 = arith.constant dense<0.000000e+00> : vector<48x16xf32>
    %324 = tpu.matmul %322, %323, %cst_214 {dimension_numbers = #tpu.dot_dimension_numbers<[1], [0], [0], [1], [0, 0, 1, 1], [], []>} : vector<48x48xbf16>, vector<48x16xbf16>, vector<48x16xf32> -> vector<48x16xf32>
    %325 = arith.truncf %324 : vector<48x16xf32> to vector<48x16xbf16>
    %c1_215 = arith.constant 1 : index
    %c1_216 = arith.constant 1 : index
    %c0_217 = arith.constant 0 : index
    %c0_218 = arith.constant 0 : index
    %326 = vector.load %arg15[%c1_215, %c1_216, %c0_217, %c0_218] : memref<2x2x16x32xbf16, #tpu.memory_space<vmem>>, vector<1x1x16x32xbf16>
    %327 = vector.shape_cast %326 : vector<1x1x16x32xbf16> to vector<16x32xbf16>
    %cst_219 = arith.constant dense<0.000000e+00> : vector<48x32xf32>
    %328 = tpu.matmul %325, %327, %cst_219 {dimension_numbers = #tpu.dot_dimension_numbers<[1], [0], [0], [1], [0, 0, 1, 1], [], []>} : vector<48x16xbf16>, vector<16x32xbf16>, vector<48x32xf32> -> vector<48x32xf32>
    %329 = arith.addf %284, %328 : vector<48x32xf32>
    %330 = arith.addf %213, %329 : vector<48x32xf32>
    %c1_220 = arith.constant 1 : index
    %c0_221 = arith.constant 0 : index
    %c0_222 = arith.constant 0 : index
    %331 = vector.load %arg16[%c1_220, %c0_221, %c0_222] : memref<2x1x32xf32, #tpu.memory_space<vmem>>, vector<1x1x32xf32>
    %332 = vector.shape_cast %331 : vector<1x1x32xf32> to vector<1x32xf32>
    %333 = vector.broadcast %332 : vector<1x32xf32> to vector<48x32xf32>
    %334 = arith.addf %330, %333 : vector<48x32xf32>
    %c1_223 = arith.constant 1 : index
    %c0_224 = arith.constant 0 : index
    %c0_225 = arith.constant 0 : index
    %335 = vector.load %arg17[%c1_223, %c0_224, %c0_225] : memref<2x1x32xf32, #tpu.memory_space<vmem>>, vector<1x1x32xf32>
    %336 = vector.shape_cast %335 : vector<1x1x32xf32> to vector<1x32xf32>
    %c1_226 = arith.constant 1 : index
    %c0_227 = arith.constant 0 : index
    %c0_228 = arith.constant 0 : index
    %337 = vector.load %arg18[%c1_226, %c0_227, %c0_228] : memref<2x1x32xf32, #tpu.memory_space<vmem>>, vector<1x1x32xf32>
    %338 = vector.shape_cast %337 : vector<1x1x32xf32> to vector<1x32xf32>
    %cst_229 = arith.constant dense<0.000000e+00> : vector<48xf32>
    %339 = vector.multi_reduction <add>, %334, %cst_229 [1] : vector<48x32xf32> to vector<48xf32>
    %340 = vector.shape_cast %339 : vector<48xf32> to vector<48x1xf32>
    %cst_230 = arith.constant 3.200000e+01 : f32
    %341 = vector.broadcast %cst_230 : f32 to vector<48x1xf32>
    %342 = arith.divf %340, %341 : vector<48x1xf32>
    %343 = vector.broadcast %342 : vector<48x1xf32> to vector<48x32xf32>
    %344 = arith.subf %334, %343 : vector<48x32xf32>
    %345 = arith.mulf %344, %344 : vector<48x32xf32>
    %cst_231 = arith.constant dense<0.000000e+00> : vector<48xf32>
    %346 = vector.multi_reduction <add>, %345, %cst_231 [1] : vector<48x32xf32> to vector<48xf32>
    %347 = vector.shape_cast %346 : vector<48xf32> to vector<48x1xf32>
    %cst_232 = arith.constant 3.200000e+01 : f32
    %348 = vector.broadcast %cst_232 : f32 to vector<48x1xf32>
    %349 = arith.divf %347, %348 : vector<48x1xf32>
    %350 = vector.broadcast %342 : vector<48x1xf32> to vector<48x32xf32>
    %351 = arith.subf %334, %350 : vector<48x32xf32>
    %cst_233 = arith.constant 9.99999974E-6 : f32
    %352 = vector.broadcast %cst_233 : f32 to vector<48x1xf32>
    %353 = arith.addf %349, %352 : vector<48x1xf32>
    %354 = math.rsqrt %353 : vector<48x1xf32>
    %355 = vector.broadcast %354 : vector<48x1xf32> to vector<48x32xf32>
    %356 = arith.mulf %351, %355 : vector<48x32xf32>
    %357 = vector.broadcast %336 : vector<1x32xf32> to vector<48x32xf32>
    %358 = arith.mulf %356, %357 : vector<48x32xf32>
    %359 = vector.broadcast %338 : vector<1x32xf32> to vector<48x32xf32>
    %360 = arith.addf %358, %359 : vector<48x32xf32>
    %361 = arith.truncf %360 : vector<48x32xf32> to vector<48x32xbf16>
    %c1_234 = arith.constant 1 : index
    %c0_235 = arith.constant 0 : index
    %c0_236 = arith.constant 0 : index
    %362 = vector.load %arg19[%c1_234, %c0_235, %c0_236] : memref<2x32x128xbf16, #tpu.memory_space<vmem>>, vector<1x32x128xbf16>
    %363 = vector.shape_cast %362 : vector<1x32x128xbf16> to vector<32x128xbf16>
    %cst_237 = arith.constant dense<0.000000e+00> : vector<48x128xf32>
    %364 = tpu.matmul %361, %363, %cst_237 {dimension_numbers = #tpu.dot_dimension_numbers<[1], [0], [0], [1], [0, 0, 1, 1], [], []>} : vector<48x32xbf16>, vector<32x128xbf16>, vector<48x128xf32> -> vector<48x128xf32>
    %c1_238 = arith.constant 1 : index
    %c0_239 = arith.constant 0 : index
    %c0_240 = arith.constant 0 : index
    %365 = vector.load %arg20[%c1_238, %c0_239, %c0_240] : memref<2x1x128xf32, #tpu.memory_space<vmem>>, vector<1x1x128xf32>
    %366 = vector.shape_cast %365 : vector<1x1x128xf32> to vector<1x128xf32>
    %367 = vector.broadcast %366 : vector<1x128xf32> to vector<48x128xf32>
    %368 = arith.addf %364, %367 : vector<48x128xf32>
    %cst_241 = arith.constant 5.000000e-01 : f32
    %369 = vector.broadcast %cst_241 : f32 to vector<48x128xf32>
    %370 = arith.mulf %369, %368 : vector<48x128xf32>
    %cst_242 = arith.constant 4.471500e-02 : f32
    %371 = vector.broadcast %cst_242 : f32 to vector<48x128xf32>
    %372 = arith.mulf %371, %368 : vector<48x128xf32>
    %373 = arith.mulf %372, %368 : vector<48x128xf32>
    %374 = arith.mulf %373, %368 : vector<48x128xf32>
    %375 = arith.addf %368, %374 : vector<48x128xf32>
    %cst_243 = arith.constant 0.797884583 : f32
    %376 = vector.broadcast %cst_243 : f32 to vector<48x128xf32>
    %377 = arith.mulf %376, %375 : vector<48x128xf32>
    %378 = math.tanh %377 : vector<48x128xf32>
    %cst_244 = arith.constant 1.000000e+00 : f32
    %379 = vector.broadcast %cst_244 : f32 to vector<48x128xf32>
    %380 = arith.addf %379, %378 : vector<48x128xf32>
    %381 = arith.mulf %370, %380 : vector<48x128xf32>
    %382 = arith.truncf %381 : vector<48x128xf32> to vector<48x128xbf16>
    %c1_245 = arith.constant 1 : index
    %c0_246 = arith.constant 0 : index
    %c0_247 = arith.constant 0 : index
    %383 = vector.load %arg21[%c1_245, %c0_246, %c0_247] : memref<2x128x32xbf16, #tpu.memory_space<vmem>>, vector<1x128x32xbf16>
    %384 = vector.shape_cast %383 : vector<1x128x32xbf16> to vector<128x32xbf16>
    %cst_248 = arith.constant dense<0.000000e+00> : vector<48x32xf32>
    %385 = tpu.matmul %382, %384, %cst_248 {dimension_numbers = #tpu.dot_dimension_numbers<[1], [0], [0], [1], [0, 0, 1, 1], [], []>} : vector<48x128xbf16>, vector<128x32xbf16>, vector<48x32xf32> -> vector<48x32xf32>
    %c1_249 = arith.constant 1 : index
    %c0_250 = arith.constant 0 : index
    %c0_251 = arith.constant 0 : index
    %386 = vector.load %arg22[%c1_249, %c0_250, %c0_251] : memref<2x1x32xf32, #tpu.memory_space<vmem>>, vector<1x1x32xf32>
    %387 = vector.shape_cast %386 : vector<1x1x32xf32> to vector<1x32xf32>
    %388 = vector.broadcast %387 : vector<1x32xf32> to vector<48x32xf32>
    %389 = arith.addf %385, %388 : vector<48x32xf32>
    %390 = arith.addf %334, %389 : vector<48x32xf32>
    %c0_252 = arith.constant 0 : index
    %c0_253 = arith.constant 0 : index
    %391 = vector.load %arg23[%c0_252, %c0_253] : memref<1x32xf32, #tpu.memory_space<vmem>>, vector<1x32xf32>
    %c0_254 = arith.constant 0 : index
    %c0_255 = arith.constant 0 : index
    %392 = vector.load %arg24[%c0_254, %c0_255] : memref<1x32xf32, #tpu.memory_space<vmem>>, vector<1x32xf32>
    %cst_256 = arith.constant dense<0.000000e+00> : vector<48xf32>
    %393 = vector.multi_reduction <add>, %390, %cst_256 [1] : vector<48x32xf32> to vector<48xf32>
    %394 = vector.shape_cast %393 : vector<48xf32> to vector<48x1xf32>
    %cst_257 = arith.constant 3.200000e+01 : f32
    %395 = vector.broadcast %cst_257 : f32 to vector<48x1xf32>
    %396 = arith.divf %394, %395 : vector<48x1xf32>
    %397 = vector.broadcast %396 : vector<48x1xf32> to vector<48x32xf32>
    %398 = arith.subf %390, %397 : vector<48x32xf32>
    %399 = arith.mulf %398, %398 : vector<48x32xf32>
    %cst_258 = arith.constant dense<0.000000e+00> : vector<48xf32>
    %400 = vector.multi_reduction <add>, %399, %cst_258 [1] : vector<48x32xf32> to vector<48xf32>
    %401 = vector.shape_cast %400 : vector<48xf32> to vector<48x1xf32>
    %cst_259 = arith.constant 3.200000e+01 : f32
    %402 = vector.broadcast %cst_259 : f32 to vector<48x1xf32>
    %403 = arith.divf %401, %402 : vector<48x1xf32>
    %404 = vector.broadcast %396 : vector<48x1xf32> to vector<48x32xf32>
    %405 = arith.subf %390, %404 : vector<48x32xf32>
    %cst_260 = arith.constant 9.99999974E-6 : f32
    %406 = vector.broadcast %cst_260 : f32 to vector<48x1xf32>
    %407 = arith.addf %403, %406 : vector<48x1xf32>
    %408 = math.rsqrt %407 : vector<48x1xf32>
    %409 = vector.broadcast %408 : vector<48x1xf32> to vector<48x32xf32>
    %410 = arith.mulf %405, %409 : vector<48x32xf32>
    %411 = vector.broadcast %391 : vector<1x32xf32> to vector<48x32xf32>
    %412 = arith.mulf %410, %411 : vector<48x32xf32>
    %413 = vector.broadcast %392 : vector<1x32xf32> to vector<48x32xf32>
    %414 = arith.addf %412, %413 : vector<48x32xf32>
    %415 = arith.truncf %414 : vector<48x32xf32> to vector<48x32xbf16>
    %c0_261 = arith.constant 0 : index
    %c0_262 = arith.constant 0 : index
    %416 = vector.load %arg25[%c0_261, %c0_262] : memref<32x8xbf16, #tpu.memory_space<vmem>>, vector<32x8xbf16>
    %cst_263 = arith.constant dense<0.000000e+00> : vector<48x8xf32>
    %417 = tpu.matmul %415, %416, %cst_263 {dimension_numbers = #tpu.dot_dimension_numbers<[1], [0], [0], [1], [0, 0, 1, 1], [], []>} : vector<48x32xbf16>, vector<32x8xbf16>, vector<48x8xf32> -> vector<48x8xf32>
    %c0_264 = arith.constant 0 : index
    %c0_265 = arith.constant 0 : index
    %418 = vector.load %arg26[%c0_264, %c0_265] : memref<1x8xf32, #tpu.memory_space<vmem>>, vector<1x8xf32>
    %419 = vector.broadcast %418 : vector<1x8xf32> to vector<48x8xf32>
    %420 = arith.addf %417, %419 : vector<48x8xf32>
    %421 = tpu.iota {dimensions = array<i32: 1>} : vector<48x8xi32>
    %c5_i32 = arith.constant 5 : i32
    %422 = vector.broadcast %c5_i32 : i32 to vector<48x8xi32>
    %423 = arith.cmpi sge, %421, %422 : vector<48x8xi32>
    %424 = math.tanh %420 : vector<48x8xf32>
    %425 = arith.select %423, %424, %420 : vector<48x8xi1>, vector<48x8xf32>
    %c0_266 = arith.constant 0 : index
    %c0_267 = arith.constant 0 : index
    %426 = vector.load %arg27[%c0_266, %c0_267] : memref<48x8xf32, #tpu.memory_space<vmem>>, vector<48x8xf32>
    tpu.vector_store %arg27[%c0_266, %c0_267], %425 {strides = array<i32>} : memref<48x8xf32, #tpu.memory_space<vmem>>, vector<48x8xf32>,
    return
  }
}

</mosaic_0001>

<bundles_post_ra>
// kernel: ge.8
= control target key start
LH: loop header
LB: loop body
LE: loop exit
PB: predicated region body
PF: predicated region fallthrough
CT: control target
= control target key end

     0   :  { %vm7_vm0 = vcmask 195584   ;;  %vm13_vm1 = vcmask 392384   ;;  %s39_s0 = inlined_call_operand.vmem [shape: s32[2,24], index: 0, kind: input, shape index: {}]   ;;  %s40_s1 = inlined_call_operand.vmem [shape: s32[48], index: 1, kind: output, shape index: {}]  }
   0x1   :  { %v4_v0 = vld [vmem:[%s39_s0] sm:$0x3]  ;;  %s22_s0 = smov 24  }
   0x2   :  { %5 = vst [vmem:[#allocation1] sm:$0x3] %v4_v0 }
   0x9   :  { %v10_v1 = vld [vmem:[#allocation1 + $0x1] sm:$0x1]   ;;  %v6_v2 = vld [vmem:[#allocation1] sm:$0x1]  }
   0xa   :  { %11 = vrot.lane.b32.xlu0 %v10_v1, %s22_s0  ;;  %8 = vst.msk [vmem:[#allocation0] sm:$0x1] %vm7_vm0, %v6_v2  }
  0x7c   :  { %v12_v3 = vpop.permute.xlu0 %11  }
  0x7d   :  { %14 = vst.msk [vmem:[#allocation0] sm:$0x1] %vm13_vm1, %v12_v3  }
  0x84   :  { %v17_v4 = vld [vmem:[#allocation0] sm:$0x1] }
  0x85   :  { %20 = vst [vmem:[%s40_s1] sm:$0x1] %v17_v4 }

// kernel: forward.1
= control target key start
LH: loop header
LB: loop body
LE: loop exit
PB: predicated region body
PF: predicated region fallthrough
CT: control target
= control target key end

     0   :  { %vm113_vm0 = vcmask 1043456   ;;  %vm103_vm1 = vcmask 64512   ;;  %vm143_vm2 = vcmask 261120   ;;  %v3735_v16 = vmov 0   ;;  %s5073_s4 = inlined_call_operand.vmem [shape: bf16[8,32], index: 4, kind: input, shape index: {}]   ;;  %s5074_s0 = inlined_call_operand.vmem [shape: f32[48,8], index: 0, kind: input, shape index: {}]   ;;  %s5075_s1 = inlined_call_operand.vmem [shape: f32[48,32], index: 1, kind: input, shape index: {}]   ;;  %s5076_s2 = inlined_call_operand.vmem [shape: f32[48,1], index: 2, kind: input, shape index: {}]   ;;  %s5077_s5 = inlined_call_operand.vmem [shape: f32[1,32], index: 5, kind: input, shape index: {}]   ;;  %s5078_s6 = inlined_call_operand.vmem [shape: f32[1,32], index: 6, kind: input, shape index: {}]   ;;  %s5079_s7 = inlined_call_operand.vmem [shape: f32[2,1,32], index: 7, kind: input, shape index: {}]   ;;  %s5080_s8 = inlined_call_operand.vmem [shape: f32[2,1,32], index: 8, kind: input, shape index: {}]   ;;  %s5081_s9 = inlined_call_operand.vmem [shape: bf16[2,2,32,16], index: 9, kind: input, shape index: {}]   ;;  %s5082_s11 = inlined_call_operand.vmem [shape: bf16[2,2,32,16], index: 11, kind: input, shape index: {}]   ;;  %s5083_s10 = inlined_call_operand.vmem [shape: f32[2,2,1,16], index: 10, kind: input, shape index: {}]   ;;  %s5084_s12 = inlined_call_operand.vmem [shape: f32[2,2,1,16], index: 12, kind: input, shape index: {}]   ;;  %s5085_s13 = inlined_call_operand.vmem [shape: bf16[2,2,32,16], index: 13, kind: input, shape index: {}]   ;;  %s5086_s14 = inlined_call_operand.vmem [shape: f32[2,2,1,16], index: 14, kind: input, shape index: {}]   ;;  %s5087_s3 = inlined_call_operand.vmem [shape: f32[48,48], index: 3, kind: input, shape index: {}]   ;;  %s5088_s15 = inlined_call_operand.vmem [shape: bf16[2,2,16,32], index: 15, kind: input, shape index: {}]   ;;  %s5089_s16 = inlined_call_operand.vmem [shape: f32[2,1,32], index: 16, kind: input, shape index: {}]   ;;  %s5090_s17 = inlined_call_operand.vmem [shape: f32[2,1,32], index: 17, kind: input, shape index: {}]   ;;  %s5091_s18 = inlined_call_operand.vmem [shape: f32[2,1,32], index: 18, kind: input, shape index: {}]   ;;  %s5092_s20 = inlined_call_operand.vmem [shape: f32[2,1,128], index: 20, kind: input, shape index: {}]   ;;  %s5093_s19 = inlined_call_operand.vmem [shape: bf16[2,32,128], index: 19, kind: input, shape index: {}]   ;;  %s5094_s22 = inlined_call_operand.vmem [shape: f32[2,1,32], index: 22, kind: input, shape index: {}]   ;;  %s5095_s21 = inlined_call_operand.vmem [shape: bf16[2,128,32], index: 21, kind: input, shape index: {}]   ;;  %s5096_s23 = inlined_call_operand.vmem [shape: f32[1,32], index: 23, kind: input, shape index: {}]   ;;  %s5097_s24 = inlined_call_operand.vmem [shape: f32[1,32], index: 24, kind: input, shape index: {}]   ;;  %s5098_s26 = inlined_call_operand.vmem [shape: f32[1,8], index: 26, kind: input, shape index: {}]   ;;  %s5099_s25 = inlined_call_operand.vmem [shape: bf16[32,8], index: 25, kind: input, shape index: {}]   ;;  %s5100_s27 = inlined_call_operand.vmem [shape: f32[48,8], index: 27, kind: output, shape index: {}]  }
   0x1   :  { %5111 = sst [smem:[#allocation2_spill]] %s5073_s4  ;;  %3490 = vset.pattern.permute.xlu2 %v3735_v16  ;;  %3489 = vset.pattern.permute.xlu1 %v3735_v16  ;;  %v3736_v40 = vmov 32.0  }
   0x2   :  { %5112 = sst [smem:[#allocation3_spill]] %s5074_s0  ;;  %3491 = vset.pattern.permute.xlu0 %v3735_v16  ;;  %3523 = vrcp.f32 %v3736_v40 }
   0x3   :  { %5113 = sst [smem:[#allocation4_spill]] %s5075_s1 }
   0x4   :  { %5114 = sst [smem:[#allocation5_spill]] %s5076_s2 }
   0x5   :  { %5115 = sst [smem:[#allocation6_spill]] %s5077_s5 }
   0x6   :  { %5116 = sst [smem:[#allocation7_spill]] %s5078_s6 }
   0x7   :  { %5117 = sst [smem:[#allocation8_spill]] %s5079_s7 }
   0x8   :  { %5118 = sst [smem:[#allocation9_spill]] %s5080_s8  ;;  %v3524_v41 = vpop.eup %3523 }
   0x9   :  { %5119 = sst [smem:[#allocation10_spill]] %s5081_s9  ;;  %v163_v42 = vmul.f32 32.0, %v3524_v41  ;;  %vm167_vm5 = vweird.f32 %v3524_v41 }
   0xa   :  { %5120 = sst [smem:[#allocation11_spill]] %s5082_s11 }
   0xb   :  { %5121 = sst [smem:[#allocation12_spill]] %s5083_s10  ;;  %v164_v43 = vsub.f32 1.0, %v163_v42 }
   0xc   :  { %5122 = sst [smem:[#allocation13_spill]] %s5084_s12 }
   0xd   :  { %5123 = sst [smem:[#allocation14_spill]] %s5100_s27  ;;  %v165_v44 = vmul.f32 %v3524_v41, %v164_v43 }
   0xe   :  { %s5124_s9 = sld [smem:[#allocation2_spill]] }
   0xf   :  { %s5125_s6 = sld [smem:[#allocation3_spill]]  ;;  %v166_v45 = vadd.f32 %v3524_v41, %v165_v44 }
  0x10   :  { %s5126_s30 = sld [smem:[#allocation4_spill]] }
  0x11   :  { %s5127_s0 = sld [smem:[#allocation5_spill]]  ;;  %v3954_v46 = vsel %vm167_vm5, %v3524_v41, %v166_v45 }
  0x12   :  { %s5128_s1 = sld [smem:[#allocation6_spill]] }
  0x13   :  { %s5129_s5 = sld [smem:[#allocation7_spill]] }
  0x14   :  { %v96_v0 = vld [vmem:[%s5124_s9] sm:$0xf]  ;;  %s5130_s28 = sld [smem:[#allocation10_spill]] }
  0x15   :  { %v87_v1 = vld [vmem:[%s5125_s6] sm:$0xff]  ;;  %v88_v2 = vld [vmem:[%s5125_s6 + $0x8] sm:$0xff]  ;;  %v115_v3 = vsel %vm113_vm0, %v96_v0, 0  ;;  %v89_v8 = vld [vmem:[%s5125_s6 + $0x10] sm:$0xff]  ;;  %s5131_s7 = sld [smem:[#allocation8_spill]] }
  0x16   :  { %v93_v4 = vpack.c.bf16 %v88_v2, %v87_v1  ;;  %v91_v5 = vld [vmem:[%s5125_s6 + $0x20] sm:$0xff]  ;;  %v92_v6 = vld [vmem:[%s5125_s6 + $0x28] sm:$0xff]  ;;  %124 = vmatpush.bf16.msra.mxu0 %v115_v3  ;;  %3482 = vmatpush.bf16.msra.mxu3 %v115_v3  ;;  %v90_v9 = vld [vmem:[%s5125_s6 + $0x18] sm:$0xff]  ;;  %s5132_s4 = sld [smem:[#allocation9_spill]] }
  0x17   :  { %v95_v7 = vpack.c.bf16 %v92_v6, %v91_v5  ;;  %v94_v10 = vpack.c.bf16 %v90_v9, %v89_v8  ;;  %v97_v11 = vld [vmem:[%s5126_s30] sm:$0xff]  ;;  %v304_v15 = vld [vmem:[%s5127_s0 + $0x18] sm:$0xff]  ;;  %v98_v17 = vld [vmem:[%s5126_s30 + $0x8] sm:$0xff]  ;;  %s5133_s9 = sld [smem:[#allocation11_spill]] }
  0x18   :  { %vm310_vm3 = vcmp.gt.f32.partialorder %v304_v15, 0.5  ;;  %v102_v23 = vld [vmem:[%s5126_s30 + $0x28] sm:$0xff]  ;;  %v99_v24 = vld [vmem:[%s5126_s30 + $0x10] sm:$0xff]  ;;  %v100_v31 = vld [vmem:[%s5126_s30 + $0x18] sm:$0xff]  ;;  %s5134_s29 = sld [smem:[#allocation13_spill]] }
  0x19   :  { %3070 = vmatmul.msk.bf16.vlgmr.msra.gmra.mxu0 %vm103_vm1, %v93_v4  ;;  %3072 = vmatmul.msk.bf16.vlgmr.msra.gmra.mxu3 %vm103_vm1, %v95_v7  ;;  %v316_v19 = vsel %vm310_vm3, 1, %v3735_v16  ;;  %v101_v34 = vld [vmem:[%s5126_s30 + $0x20] sm:$0xff]  ;;  %v303_v38 = vld [vmem:[%s5127_s0 + $0x10] sm:$0xff]  ;;  %s5138_s10 = sld [smem:[#allocation14_spill]] }
  0x1a   :  { %329 = vperm.xlu2 %3490, %v316_v19   ;;  %vm309_vm4 = vcmp.gt.f32.partialorder %v303_v38, 0.5  ;;  %v301_v1 = vld [vmem:[%s5127_s0] sm:$0xff] }
  0x1b   :  { %v315_v39 = vsel %vm309_vm4, 1, %v3735_v16  ;;  %vm307_vm6 = vcmp.gt.f32.partialorder %v301_v1, 0.5  ;;  %v305_v19 = vld [vmem:[%s5127_s0 + $0x20] sm:$0xff] }
  0x1c   :  { %v313_v6 = vsel %vm307_vm6, 1, %v3735_v16  ;;  %vm311_vm8 = vcmp.gt.f32.partialorder %v305_v19, 0.5  ;;  %v4026_v1 = vld [vmem:[%s5129_s5] ss:$0 sm:$0xff] }
  0x29   :  { %3071 = vmatmul.msk.bf16.gmra.mxu0 %vm103_vm1, %v94_v10  ;;  %v302_v10 = vld [vmem:[%s5127_s0 + $0x8] sm:$0xff] }
  0x2a   :  { %vm308_vm7 = vcmp.gt.f32.partialorder %v302_v10, 0.5 }
  0x96   :  { %v126_v12 = vpop.f32.mrf.mxu0 }
  0x97   :  { %v3904_v13 = vadd.f32 %v126_v12, %v97_v11  ;;  %v314_v11 = vsel %vm308_vm7, 1, %v3735_v16 }
  0x99   :  { %v144_v14 = vsel %vm143_vm2, %v3904_v13, 0.0 }
  0x9a   :  { %145 = vadd.xlane.f32.xlu1 %v144_v14 }
  0x9c   :  { %v136_v18 = vpop.f32.mrf.mxu3 }
  0x9d   :  { %v3946_v36 = vadd.f32 %v136_v18, %v101_v34 }
  0x9e   :  { %v128_v20 = vpop.f32.mrf.mxu0 }
  0x9f   :  { %v3918_v21 = vadd.f32 %v128_v20, %v98_v17  ;;  %v156_v37 = vsel %vm143_vm2, %v3946_v36, 0.0  ;;  %v4009_v20 = vpop.permute.xlu2 %329 }
  0xa1   :  { %v147_v22 = vsel %vm143_vm2, %v3918_v21, 0.0 }
  0xa2   :  { %148 = vadd.xlane.f32.xlu1 %v147_v22  ;;  %v317_v22 = vsel %vm311_vm8, 1, %v3735_v16 }
  0xa4   :  { %v138_v25 = vpop.f32.mrf.mxu3 }
  0xa5   :  { %v3928_v26 = vadd.f32 %v138_v25, %v102_v23 }
  0xa6   :  { %v131_v27 = vpop.f32.mrf.mxu0 }
  0xa7   :  { %v3930_v28 = vadd.f32 %v131_v27, %v99_v24  ;;  %v159_v29 = vsel %vm143_vm2, %v3928_v26, 0.0 }
  0xa9   :  { %v150_v30 = vsel %vm143_vm2, %v3930_v28, 0.0 }
  0xaa   :  { %151 = vadd.xlane.f32.xlu0 %v150_v30  ;;  %160 = vadd.xlane.f32.xlu1 %v159_v29 }
  0xae   :  { %v133_v32 = vpop.f32.mrf.mxu0 }
  0xaf   :  { %v3939_v33 = vadd.f32 %v133_v32, %v100_v31 }
  0xb1   :  { %v153_v35 = vsel %vm143_vm2, %v3939_v33, 0.0 }
  0xb2   :  { %154 = vadd.xlane.f32.xlu0 %v153_v35 }
  0xba   :  { %157 = vadd.xlane.f32.xlu0 %v156_v37 }
  0xc3   :  { %326 = vperm.xlu1 %3489, %v315_v39  }
 0x10d   :  { %v146_v47 = vpop.xlane.xlu1 %145 }
 0x10e   :  { %v169_v48 = vmul.f32 %v3954_v46, %v146_v47 }
 0x110   :  { %v3958_v49 = vsub.f32 %v3904_v13, %v169_v48 }
 0x112   :  { %v181_v50 = vmul.f32 %v3958_v49, %v3958_v49 }
 0x114   :  { %v187_v51 = vsel %vm143_vm2, %v181_v50, 0.0 }
 0x115   :  { %188 = vadd.xlane.f32.xlu2 %v187_v51  ;;  %v149_v52 = vpop.xlane.xlu1 %148 }
 0x116   :  { %v170_v53 = vmul.f32 %v3954_v46, %v149_v52 }
 0x118   :  { %v3965_v54 = vsub.f32 %v3918_v21, %v170_v53 }
 0x11a   :  { %v182_v55 = vmul.f32 %v3965_v54, %v3965_v54 }
 0x11c   :  { %v190_v56 = vsel %vm143_vm2, %v182_v55, 0.0 }
 0x11d   :  { %v152_v57 = vpop.xlane.xlu0 %151  ;;  %191 = vadd.xlane.f32.xlu0 %v190_v56  ;;  %v161_v12 = vpop.xlane.xlu1 %160 }
 0x11e   :  { %v171_v58 = vmul.f32 %v3954_v46, %v152_v57  ;;  %v174_v14 = vmul.f32 %v3954_v46, %v161_v12 }
 0x120   :  { %v3972_v59 = vsub.f32 %v3930_v28, %v171_v58  ;;  %v4001_v15 = vsub.f32 %v3928_v26, %v174_v14  ;;  %v4020_v58 = vld [vmem:[%s5128_s1] ss:$0 sm:$0xff]  ;;  %s5135_s1 = sld [smem:[#allocation12_spill]] }
 0x122   :  { %v183_v60 = vmul.f32 %v3972_v59, %v3972_v59  ;;  %v186_v17 = vmul.f32 %v4001_v15, %v4001_v15 }
 0x124   :  { %v193_v61 = vsel %vm143_vm2, %v183_v60, 0.0  ;;  %v202_v18 = vsel %vm143_vm2, %v186_v17, 0.0 }
 0x125   :  { %v155_v62 = vpop.xlane.xlu0 %154  ;;  %194 = vadd.xlane.f32.xlu2 %v193_v61 }
 0x126   :  { %v172_v63 = vmul.f32 %v3954_v46, %v155_v62 }
 0x128   :  { %v3979_v0 = vsub.f32 %v3939_v33, %v172_v63 }
 0x12a   :  { %v184_v2 = vmul.f32 %v3979_v0, %v3979_v0 }
 0x12c   :  { %v196_v3 = vsel %vm143_vm2, %v184_v2, 0.0 }
 0x12d   :  { %v158_v4 = vpop.xlane.xlu0 %157  ;;  %197 = vadd.xlane.f32.xlu2 %v196_v3 }
 0x12e   :  { %v173_v5 = vmul.f32 %v3954_v46, %v158_v4 }
 0x130   :  { %v3990_v7 = vsub.f32 %v3946_v36, %v173_v5 }
 0x131   :  { %320 = vperm.xlu0 %3491, %v313_v6  }
 0x132   :  { %v185_v8 = vmul.f32 %v3990_v7, %v3990_v7 }
 0x134   :  { %v199_v9 = vsel %vm143_vm2, %v185_v8, 0.0 }
 0x135   :  { %200 = vadd.xlane.f32.xlu1 %v199_v9 }
 0x145   :  { %323 = vperm.xlu2 %3490, %v314_v11  }
 0x16e   :  { %203 = vadd.xlane.f32.xlu2 %v202_v18  ;;  %v327_v18 = vpop.permute.xlu1 %326 }
 0x16f   :  { %vm339_vm6 = vcmp.eq.s32.totalorder %v327_v18, 1 }
 0x186   :  { %332 = vperm.xlu2 %3490, %v317_v22  }
 0x188   :  { %v189_v23 = vpop.xlane.xlu2 %188 }
 0x189   :  { %v205_v24 = vmul.f32 %v189_v23, %v3954_v46 }
 0x18b   :  { %v211_v25 = vadd.f32 1e-05, %v205_v24 }
 0x18d   :  { %3525 = vrsqrt.f32 %v211_v25  ;;  %vm223_vm13 = vweird.f32 %v211_v25 }
 0x190   :  { %v192_v27 = vpop.xlane.xlu0 %191 }
 0x191   :  { %v206_v29 = vmul.f32 %v192_v27, %v3954_v46 }
 0x193   :  { %v212_v30 = vadd.f32 1e-05, %v206_v29  ;;  %v3526_v31 = vpop.eup %3525 }
 0x194   :  { %v218_v32 = vmul.f32 %v3526_v31, %v211_v25  ;;  %vm224_vm12 = vweird.f32 %v3526_v31 }
 0x195   :  { %3527 = vrsqrt.f32 %v212_v30  ;;  %vm233_vm10 = vweird.f32 %v212_v30  ;;  %vm225_vm15 = vmor %vm223_vm13, %vm224_vm12 }
 0x196   :  { %v219_v39 = vmul.f32 %v3526_v31, %v218_v32 }
 0x198   :  { %v195_v34 = vpop.xlane.xlu2 %194  ;;  %v220_v42 = vmul.f32 0.5, %v219_v39 }
 0x199   :  { %v207_v35 = vmul.f32 %v195_v34, %v3954_v46 }
 0x19a   :  { %v221_v51 = vsub.f32 1.5, %v220_v42 }
 0x19b   :  { %v3528_v37 = vpop.eup %3527  ;;  %v213_v38 = vadd.f32 1e-05, %v207_v35 }
 0x19c   :  { %v228_v40 = vmul.f32 %v3528_v37, %v212_v30  ;;  %vm234_vm9 = vweird.f32 %v3528_v37  ;;  %v222_v60 = vmul.f32 %v3526_v31, %v221_v51 }
 0x19d   :  { %3529 = vrsqrt.f32 %v213_v38  ;;  %vm235_vm11 = vmor %vm233_vm10, %vm234_vm9  ;;  %vm243_vm0 = vweird.f32 %v213_v38  ;;  %vm340_vm10 = vcmp.eq.s32.totalorder %v4009_v20, 1 }
 0x19e   :  { %v229_v41 = vmul.f32 %v3528_v37, %v228_v40  ;;  %v226_v4 = vsel %vm225_vm15, %v3526_v31, %v222_v60 }
 0x19f   :  { %v277_v12 = vmul.f32 %v226_v4, %v3958_v49 }
 0x1a0   :  { %v230_v43 = vmul.f32 0.5, %v229_v41  ;;  %v198_v44 = vpop.xlane.xlu2 %197 }
 0x1a1   :  { %v208_v45 = vmul.f32 %v198_v44, %v3954_v46  ;;  %v286_v23 = vmul.f32 %v4020_v58, %v277_v12 }
 0x1a2   :  { %v231_v47 = vsub.f32 1.5, %v230_v43 }
 0x1a3   :  { %v3530_v48 = vpop.eup %3529  ;;  %v214_v50 = vadd.f32 1e-05, %v208_v45  ;;  %v321_v25 = vpop.permute.xlu0 %320  ;;  %v295_v30 = vadd.f32 %v4026_v1, %v286_v23 }
 0x1a4   :  { %v232_v52 = vmul.f32 %v3528_v37, %v231_v47  ;;  %v238_v53 = vmul.f32 %v3530_v48, %v213_v38  ;;  %vm244_vm14 = vweird.f32 %v3530_v48  ;;  %vm337_vm9 = vcmp.eq.s32.totalorder %v321_v25, 1 }
 0x1a5   :  { %3531 = vrsqrt.f32 %v214_v50  ;;  %vm245_vm4 = vmor %vm243_vm0, %vm244_vm14  ;;  %vm253_vm7 = vweird.f32 %v214_v50  ;;  %v4049_v34 = vsel %vm337_vm9, %v295_v30, %v3904_v13  ;;  %v3433_v30 = vld [vmem:[%s5130_s28 + $0x8] sm:$0xff] }
 0x1a6   :  { %v236_v55 = vsel %vm235_vm11, %v3528_v37, %v232_v52  ;;  %v239_v56 = vmul.f32 %v3530_v48, %v238_v53  ;;  %v306_v37 = vld [vmem:[%s5127_s0 + $0x28] sm:$0xff]  ;;  %3483 = vmatpush.bf16.msra.mxu2 %v3433_v30  ;;  %545 = vmatpush.bf16.msra.mxu1 %v3433_v30 }
 0x1a7   :  { %v278_v57 = vmul.f32 %v236_v55, %v3965_v54  ;;  %vm312_vm11 = vcmp.gt.f32.partialorder %v306_v37, 0.5  ;;  %3484 = vmatpush.bf16.msrb.mxu3 %v3433_v30 }
 0x1a8   :  { %v240_v61 = vmul.f32 0.5, %v239_v56  ;;  %v324_v62 = vpop.permute.xlu2 %323  ;;  %v318_v13 = vsel %vm312_vm11, 1, %v3735_v16  ;;  %v201_v20 = vpop.xlane.xlu1 %200 }
 0x1a9   :  { %v287_v63 = vmul.f32 %v4020_v58, %v278_v57  ;;  %vm338_vm3 = vcmp.eq.s32.totalorder %v324_v62, 1 }
 0x1aa   :  { %v241_v2 = vsub.f32 1.5, %v240_v61 }
 0x1ab   :  { %v3532_v54 = vpop.eup %3531  ;;  %v296_v3 = vadd.f32 %v4026_v1, %v287_v63 }
 0x1ac   :  { %v242_v5 = vmul.f32 %v3530_v48, %v241_v2  ;;  %v248_v6 = vmul.f32 %v3532_v54, %v214_v50  ;;  %vm254_vm5 = vweird.f32 %v3532_v54 }
 0x1ad   :  { %v4030_v8 = vsel %vm338_vm3, %v296_v3, %v3918_v21  ;;  %vm255_vm8 = vmor %vm253_vm7, %vm254_vm5 }
 0x1ae   :  { %v246_v9 = vsel %vm245_vm4, %v3530_v48, %v242_v5  ;;  %v249_v10 = vmul.f32 %v3532_v54, %v248_v6  ;;  %v360_v11 = vsel %vm143_vm2, %v4030_v8, 0.0 }
 0x1af   :  { %v279_v14 = vmul.f32 %v246_v9, %v3972_v59  ;;  %361 = vadd.xlane.f32.xlu2 %v360_v11 }
 0x1b0   :  { %v250_v17 = vmul.f32 0.5, %v249_v10 }
 0x1b1   :  { %v288_v19 = vmul.f32 %v4020_v58, %v279_v14 }
 0x1b2   :  { %v251_v22 = vsub.f32 1.5, %v250_v17 }
 0x1b3   :  { %v297_v21 = vadd.f32 %v4026_v1, %v288_v19 }
 0x1b4   :  { %v252_v24 = vmul.f32 %v3532_v54, %v251_v22 }
 0x1b5   :  { %v4040_v49 = vsel %vm339_vm6, %v297_v21, %v3930_v28 }
 0x1b6   :  { %v256_v59 = vsel %vm255_vm8, %v3532_v54, %v252_v24  ;;  %v363_v27 = vsel %vm143_vm2, %v4040_v49, 0.0 }
 0x1b7   :  { %v280_v29 = vmul.f32 %v256_v59, %v3979_v0  ;;  %364 = vadd.xlane.f32.xlu0 %v363_v27  ;;  %v357_v0 = vsel %vm143_vm2, %v4049_v34, 0.0 }
 0x1b9   :  { %v289_v31 = vmul.f32 %v4020_v58, %v280_v29 }
 0x1bb   :  { %v298_v32 = vadd.f32 %v4026_v1, %v289_v31 }
 0x1bd   :  { %v4053_v28 = vsel %vm340_vm10, %v298_v32, %v3939_v33  ;;  %v209_v33 = vmul.f32 %v201_v20, %v3954_v46 }
 0x1be   :  { %v366_v35 = vsel %vm143_vm2, %v4053_v28, 0.0 }
 0x1bf   :  { %367 = vadd.xlane.f32.xlu1 %v366_v35  ;;  %358 = vadd.xlane.f32.xlu0 %v357_v0  ;;  %v215_v38 = vadd.f32 1e-05, %v209_v33  ;;  %v3432_v35 = vld [vmem:[%s5130_s28] sm:$0xff] }
 0x1c0   :  { %3485 = vmatpush.bf16.msra.mxu2 %v3432_v35  ;;  %546 = vmatpush.bf16.msra.mxu1 %v3432_v35 }
 0x1c1   :  { %3533 = vrsqrt.f32 %v215_v38  ;;  %vm263_vm13 = vweird.f32 %v215_v38  ;;  %3486 = vmatpush.bf16.msrb.mxu3 %v3432_v35 }
 0x1c7   :  { %v3534_v39 = vpop.eup %3533 }
 0x1c8   :  { %v258_v40 = vmul.f32 %v3534_v39, %v215_v38  ;;  %vm264_vm12 = vweird.f32 %v3534_v39 }
 0x1c9   :  { %vm265_vm14 = vmor %vm263_vm13, %vm264_vm12 }
 0x1ca   :  { %v259_v42 = vmul.f32 %v3534_v39, %v258_v40 }
 0x1cc   :  { %v260_v44 = vmul.f32 0.5, %v259_v42 }
 0x1ce   :  { %v261_v47 = vsub.f32 1.5, %v260_v44 }
 0x1d0   :  { %v262_v48 = vmul.f32 %v3534_v39, %v261_v47 }
 0x1d2   :  { %v266_v50 = vsel %vm265_vm14, %v3534_v39, %v262_v48 }
 0x1d3   :  { %v281_v55 = vmul.f32 %v266_v50, %v3990_v7 }
 0x1d5   :  { %v290_v62 = vmul.f32 %v4020_v58, %v281_v55 }
 0x1d7   :  { %v299_v7 = vadd.f32 %v4026_v1, %v290_v62 }
 0x1d8   :  { %335 = vperm.xlu1 %3489, %v318_v13  }
 0x1e1   :  { %v204_v41 = vpop.xlane.xlu2 %203 }
 0x1e2   :  { %v210_v43 = vmul.f32 %v204_v41, %v3954_v46 }
 0x1e4   :  { %v216_v45 = vadd.f32 1e-05, %v210_v43 }
 0x1e6   :  { %3535 = vrsqrt.f32 %v216_v45  ;;  %vm273_vm3 = vweird.f32 %v216_v45 }
 0x1e9   :  { %v333_v61 = vpop.permute.xlu2 %332 }
 0x1ea   :  { %vm341_vm15 = vcmp.eq.s32.totalorder %v333_v61, 1 }
 0x1eb   :  { %v4080_v5 = vsel %vm341_vm15, %v299_v7, %v3946_v36 }
 0x1ec   :  { %v3536_v16 = vpop.eup %3535  ;;  %v369_v10 = vsel %vm143_vm2, %v4080_v5, 0.0 }
 0x1ed   :  { %v268_v52 = vmul.f32 %v3536_v16, %v216_v45  ;;  %vm274_vm0 = vweird.f32 %v3536_v16 }
 0x1ee   :  { %vm275_vm4 = vmor %vm273_vm3, %vm274_vm0 }
 0x1ef   :  { %v269_v57 = vmul.f32 %v3536_v16, %v268_v52 }
 0x1f1   :  { %v270_v54 = vmul.f32 0.5, %v269_v57  ;;  %v4127_v57 = vld [vmem:[%s5131_s7] ss:$0 sm:$0xff] }
 0x1f3   :  { %v271_v6 = vsub.f32 1.5, %v270_v54  ;;  %v4134_v54 = vld [vmem:[%s5132_s4] ss:$0 sm:$0xff] }
 0x1f5   :  { %v272_v12 = vmul.f32 %v3536_v16, %v271_v6 }
 0x1f7   :  { %v276_v14 = vsel %vm275_vm4, %v3536_v16, %v272_v12 }
 0x1f8   :  { %v282_v17 = vmul.f32 %v276_v14, %v4001_v15 }
 0x1fa   :  { %v291_v18 = vmul.f32 %v4020_v58, %v282_v17 }
 0x1fc   :  { %v300_v21 = vadd.f32 %v4026_v1, %v291_v18  ;;  %v3434_v18 = vld [vmem:[%s5133_s9] sm:$0xff] }
 0x222   :  { %v362_v59 = vpop.xlane.xlu2 %361 }
 0x223   :  { %v376_v15 = vmul.f32 %v362_v59, %v3954_v46 }
 0x225   :  { %v4103_v27 = vsub.f32 %v4030_v8, %v376_v15 }
 0x22a   :  { %v365_v51 = vpop.xlane.xlu0 %364 }
 0x22b   :  { %v377_v53 = vmul.f32 %v365_v51, %v3954_v46 }
 0x22d   :  { %v4068_v56 = vsub.f32 %v4040_v49, %v377_v53 }
 0x22f   :  { %v389_v60 = vmul.f32 %v4068_v56, %v4068_v56 }
 0x231   :  { %v399_v63 = vsel %vm143_vm2, %v389_v60, 0.0 }
 0x232   :  { %400 = vadd.xlane.f32.xlu0 %v399_v63  ;;  %v368_v2 = vpop.xlane.xlu1 %367  ;;  %v359_v36 = vpop.xlane.xlu0 %358 }
 0x233   :  { %v378_v3 = vmul.f32 %v368_v2, %v3954_v46  ;;  %v375_v19 = vmul.f32 %v359_v36, %v3954_v46 }
 0x235   :  { %v4077_v4 = vsub.f32 %v4053_v28, %v378_v3  ;;  %v4095_v24 = vsub.f32 %v4049_v34, %v375_v19 }
 0x237   :  { %v390_v9 = vmul.f32 %v4077_v4, %v4077_v4  ;;  %v387_v58 = vmul.f32 %v4095_v24, %v4095_v24 }
 0x239   :  { %v402_v11 = vsel %vm143_vm2, %v390_v9, 0.0  ;;  %v393_v1 = vsel %vm143_vm2, %v387_v58, 0.0 }
 0x23a   :  { %370 = vadd.xlane.f32.xlu0 %v369_v10  ;;  %403 = vadd.xlane.f32.xlu1 %v402_v11  ;;  %v3435_v10 = vld [vmem:[%s5133_s9 + $0x8] sm:$0xff] }
 0x23b   :  { %589 = vmatpush.bf16.msrb.mxu2 %v3435_v10 }
 0x23f   :  { %590 = vmatpush.bf16.msrb.mxu2 %v3434_v18 }
 0x24a   :  { %v336_v22 = vpop.permute.xlu1 %335 }
 0x24b   :  { %vm342_vm5 = vcmp.eq.s32.totalorder %v336_v22, 1 }
 0x24c   :  { %v4092_v23 = vsel %vm342_vm5, %v300_v21, %v3928_v26  ;;  %v388_v26 = vmul.f32 %v4103_v27, %v4103_v27 }
 0x24d   :  { %v372_v25 = vsel %vm143_vm2, %v4092_v23, 0.0 }
 0x24e   :  { %373 = vadd.xlane.f32.xlu0 %v372_v25  ;;  %v396_v29 = vsel %vm143_vm2, %v388_v26, 0.0 }
 0x256   :  { %394 = vadd.xlane.f32.xlu0 %v393_v1 }
 0x25e   :  { %397 = vadd.xlane.f32.xlu0 %v396_v29 }
 0x2a5   :  { %v401_v31 = vpop.xlane.xlu0 %400 }
 0x2a6   :  { %v413_v32 = vmul.f32 %v401_v31, %v3954_v46 }
 0x2a8   :  { %v419_v0 = vadd.f32 1e-05, %v413_v32 }
 0x2aa   :  { %3537 = vrsqrt.f32 %v419_v0  ;;  %vm449_vm7 = vweird.f32 %v419_v0 }
 0x2ad   :  { %v371_v37 = vpop.xlane.xlu0 %370  ;;  %v404_v13 = vpop.xlane.xlu1 %403 }
 0x2ae   :  { %v379_v20 = vmul.f32 %v371_v37, %v3954_v46  ;;  %v414_v33 = vmul.f32 %v404_v13, %v3954_v46 }
 0x2b0   :  { %v3538_v38 = vpop.eup %3537  ;;  %v4119_v39 = vsub.f32 %v4080_v5, %v379_v20  ;;  %v420_v40 = vadd.f32 1e-05, %v414_v33 }
 0x2b1   :  { %v444_v41 = vmul.f32 %v3538_v38, %v419_v0  ;;  %vm450_vm6 = vweird.f32 %v3538_v38 }
 0x2b2   :  { %3539 = vrsqrt.f32 %v420_v40  ;;  %v391_v42 = vmul.f32 %v4119_v39, %v4119_v39  ;;  %vm451_vm8 = vmor %vm449_vm7, %vm450_vm6  ;;  %vm459_vm10 = vweird.f32 %v420_v40 }
 0x2b3   :  { %v445_v43 = vmul.f32 %v3538_v38, %v444_v41 }
 0x2b4   :  { %v405_v44 = vsel %vm143_vm2, %v391_v42, 0.0 }
 0x2b5   :  { %v446_v45 = vmul.f32 0.5, %v445_v43  ;;  %406 = vadd.xlane.f32.xlu0 %v405_v44 }
 0x2b7   :  { %v447_v47 = vsub.f32 1.5, %v446_v45 }
 0x2b8   :  { %v3540_v48 = vpop.eup %3539 }
 0x2b9   :  { %v448_v16 = vmul.f32 %v3538_v38, %v447_v47  ;;  %v454_v50 = vmul.f32 %v3540_v48, %v420_v40  ;;  %vm460_vm9 = vweird.f32 %v3540_v48 }
 0x2ba   :  { %vm461_vm11 = vmor %vm459_vm10, %vm460_vm9  ;;  %vm657_vm10 = vcmask 130048  }
 0x2bb   :  { %v455_v51 = vmul.f32 %v3540_v48, %v454_v50  ;;  %v452_v52 = vsel %vm451_vm8, %v3538_v38, %v448_v16  ;;  %v3437_v16 = vld [vmem:[%s5085_s13 + $0x8] sm:$0xff]  ;;  %v3440_v50 = vld [vmem:[%s5130_s28 + $0x18] sm:$0xff] }
 0x2bc   :  { %v485_v60 = vmul.f32 %v452_v52, %v4068_v56  ;;  %633 = vmatpush.bf16.msra.mxu3 %v3437_v16 }
 0x2bd   :  { %v456_v53 = vmul.f32 0.5, %v455_v51 }
 0x2be   :  { %v494_v3 = vmul.f32 %v4127_v57, %v485_v60  ;;  %v3439_v60 = vld [vmem:[%s5130_s28 + $0x10] sm:$0xff] }
 0x2bf   :  { %v457_v55 = vsub.f32 1.5, %v456_v53 }
 0x2c0   :  { %v503_v11 = vadd.f32 %v4134_v54, %v494_v3 }
 0x2c1   :  { %v458_v61 = vmul.f32 %v3540_v48, %v457_v55  ;;  %v374_v62 = vpop.xlane.xlu0 %373  ;;  %v3436_v55 = vld [vmem:[%s5085_s13] sm:$0xff] }
 0x2c2   :  { %v380_v63 = vmul.f32 %v374_v62, %v3954_v46  ;;  %634 = vmatpush.bf16.msra.mxu3 %v3436_v55 }
 0x2c3   :  { %v462_v2 = vsel %vm461_vm11, %v3540_v48, %v458_v61  ;;  %vm712_vm11 = vcmask 392192  }
 0x2c4   :  { %v486_v7 = vmul.f32 %v462_v2, %v4077_v4  ;;  %v4139_v6 = vsub.f32 %v4092_v23, %v380_v63 }
 0x2c6   :  { %v495_v56 = vmul.f32 %v4127_v57, %v486_v7  ;;  %v392_v9 = vmul.f32 %v4139_v6, %v4139_v6 }
 0x2c8   :  { %v504_v12 = vadd.f32 %v4134_v54, %v495_v56  ;;  %v408_v14 = vsel %vm143_vm2, %v392_v9, 0.0 }
 0x2c9   :  { %409 = vadd.xlane.f32.xlu2 %v408_v14  ;;  %v395_v4 = vpop.xlane.xlu0 %394 }
 0x2ca   :  { %v4150_v17 = vpack.c.bf16 %v504_v12, %v503_v11  ;;  %v411_v36 = vmul.f32 %v395_v4, %v3954_v46 }
 0x2cc   :  { %v417_v19 = vadd.f32 1e-05, %v411_v36  ;;  %3082 = vmatmul.msk.bf16.vlgmr.msra.gmra.mxu2 %vm143_vm2, %v4150_v17 }
 0x2cd   :  { %851 = vmatpush.bf16.msra.mxu2 %v3440_v50 }
 0x2ce   :  { %3541 = vrsqrt.f32 %v417_v19  ;;  %vm429_vm13 = vweird.f32 %v417_v19 }
 0x2d1   :  { %v398_v22 = vpop.xlane.xlu0 %397  ;;  %852 = vmatpush.bf16.msra.mxu2 %v3439_v60  ;;  %v3444_v60 = vld [vmem:[%s5085_s13 + $0x18] sm:$0xff] }
 0x2d2   :  { %v412_v21 = vmul.f32 %v398_v22, %v3954_v46 }
 0x2d4   :  { %v3542_v25 = vpop.eup %3541  ;;  %v418_v59 = vadd.f32 1e-05, %v412_v21 }
 0x2d5   :  { %v424_v15 = vmul.f32 %v3542_v25, %v417_v19  ;;  %vm430_vm12 = vweird.f32 %v3542_v25 }
 0x2d6   :  { %3543 = vrsqrt.f32 %v418_v59  ;;  %vm431_vm14 = vmor %vm429_vm13, %vm430_vm12  ;;  %vm439_vm0 = vweird.f32 %v418_v59 }
 0x2d7   :  { %v425_v58 = vmul.f32 %v3542_v25, %v424_v15 }
 0x2d9   :  { %v426_v1 = vmul.f32 0.5, %v425_v58 }
 0x2db   :  { %v427_v26 = vsub.f32 1.5, %v426_v1 }
 0x2dc   :  { %v3544_v29 = vpop.eup %3543 }
 0x2dd   :  { %v428_v30 = vmul.f32 %v3542_v25, %v427_v26  ;;  %v434_v31 = vmul.f32 %v3544_v29, %v418_v59  ;;  %vm440_vm15 = vweird.f32 %v3544_v29 }
 0x2de   :  { %vm441_vm3 = vmor %vm439_vm0, %vm440_vm15 }
 0x2df   :  { %v435_v32 = vmul.f32 %v3544_v29, %v434_v31  ;;  %v432_v35 = vsel %vm431_vm14, %v3542_v25, %v428_v30  ;;  %v3497_v30 = vld [vmem:[%s5134_s29] ss:$0 sm:$0xff] }
 0x2e0   :  { %v483_v13 = vmul.f32 %v432_v35, %v4095_v24 }
 0x2e1   :  { %v436_v0 = vmul.f32 0.5, %v435_v32 }
 0x2e2   :  { %v492_v38 = vmul.f32 %v4127_v57, %v483_v13 }
 0x2e3   :  { %v437_v37 = vsub.f32 1.5, %v436_v0 }
 0x2e4   :  { %v501_v42 = vadd.f32 %v4134_v54, %v492_v38 }
 0x2e5   :  { %v438_v20 = vmul.f32 %v3544_v29, %v437_v37 }
 0x2e7   :  { %v442_v33 = vsel %vm441_vm3, %v3544_v29, %v438_v20 }
 0x2e8   :  { %v484_v40 = vmul.f32 %v442_v33, %v4103_v27 }
 0x2ea   :  { %v493_v41 = vmul.f32 %v4127_v57, %v484_v40 }
 0x2ec   :  { %v502_v43 = vadd.f32 %v4134_v54, %v493_v41 }
 0x2ee   :  { %v4165_v44 = vpack.c.bf16 %v502_v43, %v501_v42 }
 0x2f0   :  { %3081 = vmatmul.msk.bf16.vlgmr.msra.gmra.mxu1 %vm143_vm2, %v4165_v44  ;;  %3092 = vmatmul.msk.bf16.vlgmr.msrb.gmra.mxu2 %vm143_vm2, %v4165_v44 }
 0x300   :  { %3093 = vmatmul.msk.bf16.gmra.mxu2 %vm143_vm2, %v4150_v17 }
 0x328   :  { %v407_v24 = vpop.xlane.xlu0 %406 }
 0x329   :  { %v415_v27 = vmul.f32 %v407_v24, %v3954_v46 }
 0x32b   :  { %v421_v45 = vadd.f32 1e-05, %v415_v27 }
 0x32d   :  { %3545 = vrsqrt.f32 %v421_v45  ;;  %vm469_vm5 = vweird.f32 %v421_v45 }
 0x333   :  { %v3546_v47 = vpop.eup %3545 }
 0x334   :  { %v464_v48 = vmul.f32 %v3546_v47, %v421_v45  ;;  %vm470_vm4 = vweird.f32 %v3546_v47 }
 0x335   :  { %vm471_vm6 = vmor %vm469_vm5, %vm470_vm4 }
 0x336   :  { %v465_v51 = vmul.f32 %v3546_v47, %v464_v48  ;;  %v3496_v48 = vld [vmem:[%s5135_s1] ss:$0 sm:$0xff] }
 0x338   :  { %v466_v62 = vmul.f32 0.5, %v465_v51 }
 0x33a   :  { %v467_v63 = vsub.f32 1.5, %v466_v62 }
 0x33c   :  { %v410_v52 = vpop.xlane.xlu2 %409  ;;  %v468_v3 = vmul.f32 %v3546_v47, %v467_v63  ;;  %v3443_v63 = vld [vmem:[%s5085_s13 + $0x10] sm:$0xff] }
 0x33d   :  { %v416_v53 = vmul.f32 %v410_v52, %v3954_v46 }
 0x33e   :  { %v472_v9 = vsel %vm471_vm6, %v3546_v47, %v468_v3 }
 0x33f   :  { %v422_v61 = vadd.f32 1e-05, %v416_v53  ;;  %v487_v12 = vmul.f32 %v472_v9, %v4119_v39  ;;  %v3442_v39 = vld [vmem:[%s5133_s9 + $0x18] sm:$0xff] }
 0x341   :  { %3547 = vrsqrt.f32 %v422_v61  ;;  %vm479_vm8 = vweird.f32 %v422_v61  ;;  %v496_v36 = vmul.f32 %v4127_v57, %v487_v12 }
 0x343   :  { %v505_v22 = vadd.f32 %v4134_v54, %v496_v36 }
 0x347   :  { %v3548_v2 = vpop.eup %3547 }
 0x348   :  { %v474_v7 = vmul.f32 %v3548_v2, %v422_v61  ;;  %vm480_vm7 = vweird.f32 %v3548_v2 }
 0x349   :  { %vm481_vm9 = vmor %vm479_vm8, %vm480_vm7 }
 0x34a   :  { %v475_v56 = vmul.f32 %v3548_v2, %v474_v7  ;;  %v3498_v7 = vld [vmem:[%s5086_s14] ss:$0 sm:$0xff] }
 0x34c   :  { %v476_v10 = vmul.f32 0.5, %v475_v56 }
 0x34e   :  { %v477_v11 = vsub.f32 1.5, %v476_v10 }
 0x350   :  { %v478_v14 = vmul.f32 %v3548_v2, %v477_v11 }
 0x352   :  { %v482_v4 = vsel %vm481_vm9, %v3548_v2, %v478_v14 }
 0x353   :  { %v488_v18 = vmul.f32 %v482_v4, %v4139_v6 }
 0x355   :  { %v497_v19 = vmul.f32 %v4127_v57, %v488_v18  ;;  %v3441_v57 = vld [vmem:[%s5133_s9 + $0x10] sm:$0xff] }
 0x357   :  { %v506_v21 = vadd.f32 %v4134_v54, %v497_v19  ;;  %v553_v54 = vpop.f32.mrf.mxu2 }
 0x358   :  { %v554_v2 = vadd.f32 %v3496_v48, %v553_v54 }
 0x359   :  { %v4193_v25 = vpack.c.bf16 %v506_v21, %v505_v22 }
 0x35b   :  { %3083 = vmatmul.msk.bf16.vlgmr.msrb.gmra.mxu3 %vm143_vm2, %v4193_v25  ;;  %3094 = vmatmul.msk.bf16.gmra.mxu2 %vm143_vm2, %v4193_v25 }
 0x35c   :  { %897 = vmatpush.bf16.msrb.mxu3 %v3442_v39 }
 0x35f   :  { %v555_v6 = vpop.f32.mrf.mxu2 }
 0x360   :  { %898 = vmatpush.bf16.msrb.mxu3 %v3441_v57  ;;  %v556_v61 = vadd.f32 %v3496_v48, %v555_v6 }
 0x362   :  { %v652_v3 = vpack.c.bf16 %v556_v61, %v554_v2 }
 0x36b   :  { %3103 = vmatmul.msk.bf16.vlgmr.msra.gmra.mxu3 %vm143_vm2, %v4165_v44  ;;  %3125 = vmatmul.msk.bf16.vlgmr.msra.gmra.mxu2 %vm143_vm2, %v4165_v44 }
 0x36d   :  { %v548_v41 = vpop.f32.mrf.mxu1 }
 0x36e   :  { %v549_v52 = vadd.f32 %v3496_v48, %v548_v41 }
 0x373   :  { %v592_v59 = vpop.f32.mrf.mxu2 }
 0x374   :  { %v593_v24 = vadd.f32 %v3497_v30, %v592_v59 }
 0x375   :  { %v550_v47 = vpop.f32.mrf.mxu1 }
 0x376   :  { %v551_v50 = vadd.f32 %v3496_v48, %v550_v47 }
 0x378   :  { %v651_v53 = vpack.c.bf16 %v551_v50, %v549_v52 }
 0x37b   :  { %3104 = vmatmul.msk.bf16.gmra.mxu3 %vm143_vm2, %v4150_v17  ;;  %3126 = vmatmul.msk.bf16.gmra.mxu2 %vm143_vm2, %v4150_v17  ;;  %v594_v15 = vpop.f32.mrf.mxu2 }
 0x37c   :  { %v595_v42 = vadd.f32 %v3497_v30, %v594_v15 }
 0x37e   :  { %v654_v45 = vpack.c.bf16 %v595_v42, %v593_v24 }
 0x380   :  { %v668_v16 = vsel %vm657_vm10, %v654_v45, 0 }
 0x383   :  { %v597_v58 = vpop.f32.mrf.mxu2 }
 0x384   :  { %v598_v33 = vadd.f32 %v3497_v30, %v597_v58  ;;  %v3500_v58 = vld [vmem:[%s5134_s29 + $0x1] ss:$0 sm:$0xff] }
 0x38b   :  { %3105 = vmatmul.msk.bf16.gmra.mxu3 %vm143_vm2, %v4193_v25  ;;  %3127 = vmatmul.msk.bf16.gmra.mxu2 %vm143_vm2, %v4193_v25  ;;  %v599_v1 = vpop.f32.mrf.mxu2 }
 0x38c   :  { %v600_v13 = vadd.f32 %v3497_v30, %v599_v1 }
 0x38e   :  { %v655_v40 = vpack.c.bf16 %v600_v13, %v598_v33 }
 0x390   :  { %v671_v43 = vsel %vm657_vm10, %v655_v40, 0 }
 0x39b   :  { %3141 = vmatmul.msk.bf16.vlgmr.msrb.gmra.mxu3 %vm143_vm2, %v4165_v44 }
 0x3ab   :  { %3142 = vmatmul.msk.bf16.gmra.mxu3 %vm143_vm2, %v4150_v17 }
 0x3bb   :  { %3143 = vmatmul.msk.bf16.gmra.mxu3 %vm143_vm2, %v4193_v25 }
 0x3de   :  { %v558_v26 = vpop.f32.mrf.mxu3  ;;  %v602_v29 = vpop.f32.mrf.mxu2 }
 0x3df   :  { %v603_v35 = vadd.f32 %v3497_v30, %v602_v29  ;;  %v559_v22 = vadd.f32 %v3496_v48, %v558_v26 }
 0x3e6   :  { %v560_v31 = vpop.f32.mrf.mxu3  ;;  %v604_v32 = vpop.f32.mrf.mxu2 }
 0x3e7   :  { %v605_v0 = vadd.f32 %v3497_v30, %v604_v32  ;;  %v561_v4 = vadd.f32 %v3496_v48, %v560_v31  ;;  %v4273_v48 = vld [vmem:[%s5087_s3 + $0x10] sm:$0xff] }
 0x3e9   :  { %v656_v37 = vpack.c.bf16 %v605_v0, %v603_v35  ;;  %v653_v39 = vpack.c.bf16 %v561_v4, %v559_v22  ;;  %v3501_v22 = vld [vmem:[%s5086_s14 + $0x1] ss:$0 sm:$0xff] }
 0x3eb   :  { %v674_v20 = vsel %vm657_vm10, %v656_v37, 0 }
 0x3ec   :  { %681 = vmatpush.bf16.xpose.msrb.mxu0 %v674_v20 }
 0x3ee   :  { %v636_v38 = vpop.f32.mrf.mxu3 }
 0x3ef   :  { %v637_v21 = vadd.f32 %v3498_v7, %v636_v38  ;;  %v4259_v38 = vld [vmem:[%s5087_s3] sm:$0xff] }
 0x3f4   :  { %682 = vmatpush.bf16.xpose.msrb.mxu0 %v671_v43  ;;  %v4266_v43 = vld [vmem:[%s5087_s3 + $0x8] sm:$0xff] }
 0x3f6   :  { %v638_v27 = vpop.f32.mrf.mxu3 }
 0x3f7   :  { %v639_v36 = vadd.f32 %v3498_v7, %v638_v27 }
 0x3f9   :  { %v782_v57 = vpack.c.bf16 %v639_v36, %v637_v21 }
 0x3fc   :  { %683 = vmatpush.bf16.xpose.msrb.mxu0 %v668_v16 }
 0x3fe   :  { %v641_v51 = vpop.f32.mrf.mxu3 }
 0x3ff   :  { %v642_v14 = vadd.f32 %v3498_v7, %v641_v51 }
 0x403   :  { %3106 = vmatmul.msk.bf16.vlgmr.msrb.gmra.mxu0 %vm657_vm10, %v651_v53  ;;  %v4280_v53 = vld [vmem:[%s5087_s3 + $0x18] sm:$0xff] }
 0x404   :  { %943 = vmatpush.bf16.msra.mxu0 %v3444_v60 }
 0x406   :  { %v643_v55 = vpop.f32.mrf.mxu3 }
 0x407   :  { %v644_v11 = vadd.f32 %v3498_v7, %v643_v55 }
 0x408   :  { %944 = vmatpush.bf16.msra.mxu0 %v3443_v63  ;;  %v4287_v63 = vld [vmem:[%s5087_s3 + $0x20] sm:$0xff] }
 0x409   :  { %v783_v18 = vpack.c.bf16 %v644_v11, %v642_v14 }
 0x40e   :  { %v646_v62 = vpop.f32.mrf.mxu3 }
 0x40f   :  { %v647_v9 = vadd.f32 %v3498_v7, %v646_v62 }
 0x413   :  { %3107 = vmatmul.msk.bf16.gmra.mxu0 %vm657_vm10, %v652_v3 }
 0x416   :  { %v648_v56 = vpop.f32.mrf.mxu3 }
 0x417   :  { %v649_v10 = vadd.f32 %v3498_v7, %v648_v56 }
 0x419   :  { %v784_v12 = vpack.c.bf16 %v649_v10, %v647_v9  ;;  %v4294_v9 = vld [vmem:[%s5087_s3 + $0x28] sm:$0xff] }
 0x41b   :  { %799 = vmatpush.bf16.msrb.mxu1 %v784_v12 }
 0x41e   :  { %v900_v19 = vpop.f32.mrf.mxu3 }
 0x41f   :  { %800 = vmatpush.bf16.msrb.mxu1 %v783_v18  ;;  %v901_v37 = vadd.f32 %v3500_v58, %v900_v19 }
 0x423   :  { %3108 = vmatmul.msk.bf16.gmra.mxu0 %vm657_vm10, %v653_v39  ;;  %801 = vmatpush.bf16.msrb.mxu1 %v782_v57 }
 0x426   :  { %v902_v54 = vpop.f32.mrf.mxu3 }
 0x42e   :  { %v905_v6 = vpop.f32.mrf.mxu3 }
 0x42f   :  { %v906_v35 = vadd.f32 %v3500_v58, %v905_v6 }
 0x433   :  { %3157 = vmatmul.msk.bf16.vlgmr.msra.gmra.mxu0 %vm143_vm2, %v4165_v44  ;;  %v903_v44 = vadd.f32 %v3500_v58, %v902_v54 }
 0x435   :  { %v964_v13 = vpack.c.bf16 %v903_v44, %v901_v37 }
 0x436   :  { %v907_v59 = vpop.f32.mrf.mxu3 }
 0x437   :  { %v908_v31 = vadd.f32 %v3500_v58, %v907_v59  ;;  %v977_v20 = vsel %vm657_vm10, %v964_v13, 0 }
 0x439   :  { %v965_v0 = vpack.c.bf16 %v908_v31, %v906_v35 }
 0x43e   :  { %v910_v15 = vpop.f32.mrf.mxu3 }
 0x43f   :  { %v911_v26 = vadd.f32 %v3500_v58, %v910_v15 }
 0x443   :  { %3158 = vmatmul.msk.bf16.gmra.mxu0 %vm143_vm2, %v4150_v17  ;;  %v980_v17 = vsel %vm657_vm10, %v965_v0, 0 }
 0x446   :  { %v912_v1 = vpop.f32.mrf.mxu3 }
 0x447   :  { %v913_v29 = vadd.f32 %v3500_v58, %v912_v1 }
 0x449   :  { %v966_v30 = vpack.c.bf16 %v913_v29, %v911_v26 }
 0x44b   :  { %v983_v32 = vsel %vm657_vm10, %v966_v30, 0 }
 0x44c   :  { %990 = vmatpush.bf16.xpose.msra.mxu1 %v983_v32 }
 0x453   :  { %3159 = vmatmul.msk.bf16.gmra.mxu0 %vm143_vm2, %v4193_v25 }
 0x454   :  { %991 = vmatpush.bf16.xpose.msra.mxu1 %v980_v17 }
 0x45c   :  { %992 = vmatpush.bf16.xpose.msra.mxu1 %v977_v20 }
 0x480   :  { %v685_v33 = vpop.f32.mrf.mxu0 }
 0x481   :  { %v700_v40 = vmul.f32 0.25, %v685_v33 }
 0x483   :  { %v706_v41 = vadd.f32 %v700_v40, %v4259_v38 }
 0x485   :  { %v713_v25 = vsel %vm712_vm11, %v706_v41, -inf }
 0x486   :  { %714 = vmax.xlane.f32.xlu1 %v713_v25 }
 0x488   :  { %v687_v42 = vpop.f32.mrf.mxu0 }
 0x489   :  { %v701_v24 = vmul.f32 0.25, %v687_v42 }
 0x48b   :  { %v707_v27 = vadd.f32 %v701_v24, %v4266_v43 }
 0x48d   :  { %v716_v45 = vsel %vm712_vm11, %v707_v27, -inf }
 0x48e   :  { %717 = vmax.xlane.f32.xlu0 %v716_v45 }
 0x490   :  { %v690_v47 = vpop.f32.mrf.mxu0 }
 0x491   :  { %v702_v16 = vmul.f32 0.25, %v690_v47 }
 0x493   :  { %v708_v50 = vadd.f32 %v702_v16, %v4273_v48 }
 0x495   :  { %v719_v51 = vsel %vm712_vm11, %v708_v50, -inf }
 0x496   :  { %720 = vmax.xlane.f32.xlu2 %v719_v51 }
 0x498   :  { %v692_v52 = vpop.f32.mrf.mxu0 }
 0x499   :  { %v703_v55 = vmul.f32 0.25, %v692_v52 }
 0x49b   :  { %v709_v60 = vadd.f32 %v703_v55, %v4280_v53 }
 0x49d   :  { %v722_v61 = vsel %vm712_vm11, %v709_v60, -inf }
 0x49e   :  { %723 = vmax.xlane.f32.xlu1 %v722_v61 }
 0x4a0   :  { %v695_v62 = vpop.f32.mrf.mxu0 }
 0x4a1   :  { %v704_v2 = vmul.f32 0.25, %v695_v62 }
 0x4a3   :  { %v710_v3 = vadd.f32 %v704_v2, %v4287_v63 }
 0x4a5   :  { %v725_v7 = vsel %vm712_vm11, %v710_v3, -inf }
 0x4a6   :  { %726 = vmax.xlane.f32.xlu0 %v725_v7 }
 0x4a8   :  { %v697_v56 = vpop.f32.mrf.mxu0 }
 0x4a9   :  { %v705_v10 = vmul.f32 0.25, %v697_v56 }
 0x4ab   :  { %v711_v11 = vadd.f32 %v705_v10, %v4294_v9 }
 0x4ad   :  { %v728_v12 = vsel %vm712_vm11, %v711_v11, -inf }
 0x4ae   :  { %729 = vmax.xlane.f32.xlu2 %v728_v12 }
 0x4b0   :  { %v946_v14 = vpop.f32.mrf.mxu0 }
 0x4b1   :  { %v947_v1 = vadd.f32 %v3501_v22, %v946_v14 }
 0x4b8   :  { %v948_v4 = vpop.f32.mrf.mxu0 }
 0x4b9   :  { %v949_v15 = vadd.f32 %v3501_v22, %v948_v4 }
 0x4bb   :  { %v1090_v26 = vpack.c.bf16 %v949_v15, %v947_v1 }
 0x4c0   :  { %v951_v36 = vpop.f32.mrf.mxu0 }
 0x4c1   :  { %v952_v59 = vadd.f32 %v3501_v22, %v951_v36 }
 0x4c8   :  { %v953_v18 = vpop.f32.mrf.mxu0 }
 0x4c9   :  { %v954_v54 = vadd.f32 %v3501_v22, %v953_v18 }
 0x4cb   :  { %v1091_v58 = vpack.c.bf16 %v954_v54, %v952_v59  ;;  %v854_v59 = vpop.f32.mrf.mxu2 }
 0x4d0   :  { %v956_v19 = vpop.f32.mrf.mxu0 }
 0x4d1   :  { %v957_v39 = vadd.f32 %v3501_v22, %v956_v19 }
 0x4d8   :  { %v958_v21 = vpop.f32.mrf.mxu0 }
 0x4d9   :  { %v959_v57 = vadd.f32 %v3501_v22, %v958_v21 }
 0x4db   :  { %v1092_v6 = vpack.c.bf16 %v959_v57, %v957_v39 }
 0x4dd   :  { %1107 = vmatpush.bf16.msrb.mxu2 %v1092_v6 }
 0x4e1   :  { %1108 = vmatpush.bf16.msrb.mxu2 %v1091_v58 }
 0x4e5   :  { %1109 = vmatpush.bf16.msrb.mxu2 %v1090_v26 }
 0x4f9   :  { %v715_v29 = vpop.xlane.xlu1 %714 }
 0x4fa   :  { %v731_v30 = vsub.f32 %v706_v41, %v715_v29 }
 0x4fc   :  { %v737_v31 = vmul.f32 1.442695, %v731_v30  ;;  %v856_v30 = vpop.f32.mrf.mxu2 }
 0x4fe   :  { %3549 = vpow2.f32 %v737_v31  ;;  %v3499_v31 = vld [vmem:[%s5135_s1 + $0x1] ss:$0 sm:$0xff] }
 0x501   :  { %v718_v32 = vpop.xlane.xlu0 %717 }
 0x502   :  { %v732_v35 = vsub.f32 %v707_v27, %v718_v32 }
 0x504   :  { %v3550_v0 = vpop.eup %3549  ;;  %v739_v44 = vmul.f32 1.442695, %v732_v35  ;;  %v859_v32 = vpop.f32.mrf.mxu2  ;;  %v857_v35 = vadd.f32 %v3499_v31, %v856_v30 }
 0x505   :  { %v749_v17 = vsel %vm712_vm11, %v3550_v0, 0.0 }
 0x506   :  { %3551 = vpow2.f32 %v739_v44  ;;  %750 = vadd.xlane.f32.xlu1 %v749_v17 }
 0x509   :  { %v721_v37 = vpop.xlane.xlu2 %720 }
 0x50a   :  { %v733_v13 = vsub.f32 %v708_v50, %v721_v37 }
 0x50c   :  { %v3552_v20 = vpop.eup %3551  ;;  %v741_v33 = vmul.f32 1.442695, %v733_v13  ;;  %v861_v17 = vpop.f32.mrf.mxu2  ;;  %v860_v13 = vadd.f32 %v3499_v31, %v859_v32 }
 0x50d   :  { %v752_v40 = vsel %vm712_vm11, %v3552_v20, 0.0  ;;  %v862_v37 = vadd.f32 %v3499_v31, %v861_v17 }
 0x50e   :  { %3553 = vpow2.f32 %v741_v33  ;;  %753 = vadd.xlane.f32.xlu0 %v752_v40 }
 0x50f   :  { %v962_v33 = vpack.c.bf16 %v862_v37, %v860_v13 }
 0x511   :  { %v724_v25 = vpop.xlane.xlu1 %723 }
 0x512   :  { %v734_v41 = vsub.f32 %v709_v60, %v724_v25 }
 0x514   :  { %v3554_v42 = vpop.eup %3553  ;;  %v743_v24 = vmul.f32 1.442695, %v734_v41 }
 0x515   :  { %v755_v27 = vsel %vm712_vm11, %v3554_v42, 0.0 }
 0x516   :  { %3555 = vpow2.f32 %v743_v24  ;;  %756 = vadd.xlane.f32.xlu2 %v755_v27  ;;  %v3438_v24 = vld [vmem:[%s5088_s15] sm:$0xff] }
 0x517   :  { %1193 = vmatpush.bf16.msrb.mxu0 %v3438_v24 }
 0x519   :  { %v727_v45 = vpop.xlane.xlu0 %726 }
 0x51a   :  { %v735_v47 = vsub.f32 %v710_v3, %v727_v45 }
 0x51c   :  { %v3556_v16 = vpop.eup %3555  ;;  %v745_v51 = vmul.f32 1.442695, %v735_v47 }
 0x51d   :  { %v758_v50 = vsel %vm712_vm11, %v3556_v16, 0.0 }
 0x51e   :  { %3557 = vpow2.f32 %v745_v51  ;;  %759 = vadd.xlane.f32.xlu1 %v758_v50 }
 0x521   :  { %v730_v52 = vpop.xlane.xlu2 %729 }
 0x522   :  { %v736_v55 = vsub.f32 %v711_v11, %v730_v52 }
 0x524   :  { %v3558_v61 = vpop.eup %3557  ;;  %v747_v62 = vmul.f32 1.442695, %v736_v55 }
 0x525   :  { %v761_v60 = vsel %vm712_vm11, %v3558_v61, 0.0 }
 0x526   :  { %3559 = vpow2.f32 %v747_v62  ;;  %762 = vadd.xlane.f32.xlu0 %v761_v60 }
 0x52c   :  { %v3560_v2 = vpop.eup %3559 }
 0x52d   :  { %v764_v7 = vsel %vm712_vm11, %v3560_v2, 0.0 }
 0x52e   :  { %765 = vadd.xlane.f32.xlu2 %v764_v7 }
 0x579   :  { %v751_v56 = vpop.xlane.xlu1 %750 }
 0x57a   :  { %3561 = vrcp.f32 %v751_v56 }
 0x580   :  { %v3562_v10 = vpop.eup %3561 }
 0x581   :  { %v754_v3 = vpop.xlane.xlu0 %753  ;;  %v773_v14 = vmul.f32 %v3562_v10, %v3550_v0  ;;  %v855_v0 = vadd.f32 %v3499_v31, %v854_v59 }
 0x582   :  { %3563 = vrcp.f32 %v754_v3 }
 0x583   :  { %v961_v44 = vpack.c.bf16 %v857_v35, %v855_v0 }
 0x588   :  { %v3564_v12 = vpop.eup %3563 }
 0x589   :  { %v774_v4 = vmul.f32 %v3564_v12, %v3552_v20  ;;  %v757_v11 = vpop.xlane.xlu2 %756  ;;  %v864_v20 = vpop.f32.mrf.mxu2 }
 0x58a   :  { %3565 = vrcp.f32 %v757_v11  ;;  %v865_v41 = vadd.f32 %v3499_v31, %v864_v20 }
 0x58b   :  { %v779_v36 = vpack.c.bf16 %v774_v4, %v773_v14 }
 0x58d   :  { %3109 = vmatmul.msk.bf16.vlgmr.msrb.gmra.mxu1 %vm712_vm11, %v779_v36 }
 0x590   :  { %v3566_v19 = vpop.eup %3565 }
 0x591   :  { %v760_v18 = vpop.xlane.xlu1 %759  ;;  %v775_v21 = vmul.f32 %v3566_v19, %v3554_v42  ;;  %v866_v40 = vpop.f32.mrf.mxu2 }
 0x592   :  { %3567 = vrcp.f32 %v760_v18  ;;  %v867_v25 = vadd.f32 %v3499_v31, %v866_v40 }
 0x594   :  { %v963_v42 = vpack.c.bf16 %v867_v25, %v865_v41 }
 0x598   :  { %v3568_v22 = vpop.eup %3567 }
 0x599   :  { %v776_v39 = vmul.f32 %v3568_v22, %v3556_v16  ;;  %v763_v54 = vpop.xlane.xlu0 %762 }
 0x59a   :  { %3569 = vrcp.f32 %v763_v54 }
 0x59b   :  { %v780_v57 = vpack.c.bf16 %v776_v39, %v775_v21 }
 0x59d   :  { %3110 = vmatmul.msk.bf16.gmra.mxu1 %vm712_vm11, %v780_v57 }
 0x5a0   :  { %v3570_v15 = vpop.eup %3569 }
 0x5a1   :  { %v766_v6 = vpop.xlane.xlu2 %765  ;;  %v777_v1 = vmul.f32 %v3570_v15, %v3558_v61 }
 0x5a2   :  { %3571 = vrcp.f32 %v766_v6 }
 0x5a8   :  { %v3572_v58 = vpop.eup %3571 }
 0x5a9   :  { %v778_v26 = vmul.f32 %v3572_v58, %v3560_v2 }
 0x5ab   :  { %v781_v29 = vpack.c.bf16 %v778_v26, %v777_v1 }
 0x5ad   :  { %3111 = vmatmul.msk.bf16.gmra.mxu1 %vm712_vm11, %v781_v29 }
 0x5bd   :  { %3160 = vmatmul.msk.bf16.vlgmr.msra.gmra.mxu1 %vm657_vm10, %v961_v44 }
 0x5cd   :  { %3161 = vmatmul.msk.bf16.gmra.mxu1 %vm657_vm10, %v962_v33 }
 0x5dd   :  { %3162 = vmatmul.msk.bf16.gmra.mxu1 %vm657_vm10, %v963_v42 }
 0x60a   :  { %v803_v27 = vpop.f32.mrf.mxu1 }
 0x612   :  { %v805_v45 = vpop.f32.mrf.mxu1 }
 0x613   :  { %v818_v47 = vpack.c.bf16 %v805_v45, %v803_v27 }
 0x615   :  { %3179 = vmatmul.msk.bf16.vlgmr.msrb.gmra.mxu0 %vm657_vm10, %v818_v47 }
 0x61a   :  { %v808_v16 = vpop.f32.mrf.mxu1 }
 0x622   :  { %v810_v51 = vpop.f32.mrf.mxu1 }
 0x623   :  { %v819_v50 = vpack.c.bf16 %v810_v51, %v808_v16 }
 0x625   :  { %3180 = vmatmul.msk.bf16.gmra.mxu0 %vm657_vm10, %v819_v50 }
 0x62a   :  { %v813_v52 = vpop.f32.mrf.mxu1 }
 0x632   :  { %v815_v55 = vpop.f32.mrf.mxu1 }
 0x633   :  { %v820_v61 = vpack.c.bf16 %v815_v55, %v813_v52 }
 0x635   :  { %3181 = vmatmul.msk.bf16.gmra.mxu0 %vm657_vm10, %v820_v61 }
 0x63a   :  { %v994_v62 = vpop.f32.mrf.mxu1 }
 0x63b   :  { %v1009_v60 = vmul.f32 0.25, %v994_v62 }
 0x63d   :  { %v1015_v2 = vadd.f32 %v1009_v60, %v4259_v38 }
 0x63f   :  { %v1021_v7 = vsel %vm712_vm11, %v1015_v2, -inf }
 0x640   :  { %1022 = vmax.xlane.f32.xlu1 %v1021_v7 }
 0x642   :  { %v996_v56 = vpop.f32.mrf.mxu1 }
 0x643   :  { %v1010_v3 = vmul.f32 0.25, %v996_v56 }
 0x645   :  { %v1016_v10 = vadd.f32 %v1010_v3, %v4266_v43  ;;  %v3445_v3 = vld [vmem:[%s5088_s15 + $0x8] sm:$0xff] }
 0x646   :  { %1154 = vmatpush.bf16.msra.mxu3 %v3445_v3 }
 0x647   :  { %v1024_v12 = vsel %vm712_vm11, %v1016_v10, -inf }
 0x648   :  { %1025 = vmax.xlane.f32.xlu0 %v1024_v12 }
 0x64a   :  { %v999_v14 = vpop.f32.mrf.mxu1 }
 0x64b   :  { %v1011_v4 = vmul.f32 0.25, %v999_v14 }
 0x64d   :  { %v1017_v36 = vadd.f32 %v1011_v4, %v4273_v48 }
 0x64f   :  { %v1027_v11 = vsel %vm712_vm11, %v1017_v36, -inf }
 0x650   :  { %1028 = vmax.xlane.f32.xlu2 %v1027_v11 }
 0x652   :  { %v1001_v18 = vpop.f32.mrf.mxu1 }
 0x653   :  { %v1012_v19 = vmul.f32 0.25, %v1001_v18 }
 0x655   :  { %v1018_v38 = vadd.f32 %v1012_v19, %v4280_v53 }
 0x657   :  { %v1030_v22 = vsel %vm712_vm11, %v1018_v38, -inf }
 0x658   :  { %1031 = vmax.xlane.f32.xlu1 %v1030_v22 }
 0x65a   :  { %v1004_v21 = vpop.f32.mrf.mxu1 }
 0x65b   :  { %v1013_v39 = vmul.f32 0.25, %v1004_v21 }
 0x65d   :  { %v1019_v43 = vadd.f32 %v1013_v39, %v4287_v63 }
 0x65f   :  { %v1033_v57 = vsel %vm712_vm11, %v1019_v43, -inf }
 0x660   :  { %1034 = vmax.xlane.f32.xlu0 %v1033_v57 }
 0x662   :  { %v1006_v54 = vpop.f32.mrf.mxu1 }
 0x663   :  { %v1014_v6 = vmul.f32 0.25, %v1006_v54 }
 0x665   :  { %v1020_v48 = vadd.f32 %v1014_v6, %v4294_v9 }
 0x667   :  { %v1036_v59 = vsel %vm712_vm11, %v1020_v48, -inf }
 0x668   :  { %1037 = vmax.xlane.f32.xlu2 %v1036_v59 }
 0x6b3   :  { %v1023_v15 = vpop.xlane.xlu1 %1022 }
 0x6b4   :  { %v1039_v58 = vsub.f32 %v1015_v2, %v1023_v15 }
 0x6b6   :  { %v1045_v53 = vmul.f32 1.442695, %v1039_v58 }
 0x6b8   :  { %3573 = vpow2.f32 %v1045_v53 }
 0x6bb   :  { %v1026_v1 = vpop.xlane.xlu0 %1025 }
 0x6bc   :  { %v1040_v26 = vsub.f32 %v1016_v10, %v1026_v1 }
 0x6be   :  { %v3574_v29 = vpop.eup %3573  ;;  %v1047_v30 = vmul.f32 1.442695, %v1040_v26  ;;  %v1195_v26 = vpop.f32.mrf.mxu0 }
 0x6bf   :  { %v1057_v63 = vsel %vm712_vm11, %v3574_v29, 0.0 }
 0x6c0   :  { %3575 = vpow2.f32 %v1047_v30  ;;  %1058 = vadd.xlane.f32.xlu1 %v1057_v63 }
 0x6c3   :  { %v1029_v31 = vpop.xlane.xlu2 %1028 }
 0x6c4   :  { %v1041_v32 = vsub.f32 %v1017_v36, %v1029_v31  ;;  %v3502_v31 = vld [vmem:[%s5089_s16] ss:$0 sm:$0xff] }
 0x6c6   :  { %v3576_v35 = vpop.eup %3575  ;;  %v1049_v0 = vmul.f32 1.442695, %v1041_v32 }
 0x6c7   :  { %v1060_v9 = vsel %vm712_vm11, %v3576_v35, 0.0 }
 0x6c8   :  { %3577 = vpow2.f32 %v1049_v0  ;;  %1061 = vadd.xlane.f32.xlu0 %v1060_v9 }
 0x6cb   :  { %v1032_v44 = vpop.xlane.xlu1 %1031 }
 0x6cc   :  { %v1042_v17 = vsub.f32 %v1018_v38, %v1032_v44 }
 0x6ce   :  { %v3578_v37 = vpop.eup %3577  ;;  %v1051_v13 = vmul.f32 1.442695, %v1042_v17 }
 0x6cf   :  { %v1063_v20 = vsel %vm712_vm11, %v3578_v37, 0.0 }
 0x6d0   :  { %3579 = vpow2.f32 %v1051_v13  ;;  %1064 = vadd.xlane.f32.xlu2 %v1063_v20 }
 0x6d3   :  { %v1035_v33 = vpop.xlane.xlu0 %1034 }
 0x6d4   :  { %v1043_v40 = vsub.f32 %v1019_v43, %v1035_v33 }
 0x6d6   :  { %v3580_v25 = vpop.eup %3579  ;;  %v1053_v41 = vmul.f32 1.442695, %v1043_v40 }
 0x6d7   :  { %v1066_v42 = vsel %vm712_vm11, %v3580_v25, 0.0 }
 0x6d8   :  { %3581 = vpow2.f32 %v1053_v41  ;;  %1067 = vadd.xlane.f32.xlu1 %v1066_v42 }
 0x6db   :  { %v1038_v24 = vpop.xlane.xlu2 %1037 }
 0x6dc   :  { %v1044_v27 = vsub.f32 %v1020_v48, %v1038_v24 }
 0x6de   :  { %v3582_v45 = vpop.eup %3581  ;;  %v1055_v47 = vmul.f32 1.442695, %v1044_v27 }
 0x6df   :  { %v1069_v16 = vsel %vm712_vm11, %v3582_v45, 0.0 }
 0x6e0   :  { %3583 = vpow2.f32 %v1055_v47  ;;  %1070 = vadd.xlane.f32.xlu0 %v1069_v16 }
 0x6e6   :  { %v3584_v51 = vpop.eup %3583 }
 0x6e7   :  { %v1072_v50 = vsel %vm712_vm11, %v3584_v51, 0.0 }
 0x6e8   :  { %1073 = vadd.xlane.f32.xlu2 %v1072_v50 }
 0x733   :  { %v1059_v52 = vpop.xlane.xlu1 %1058 }
 0x734   :  { %3585 = vrcp.f32 %v1059_v52 }
 0x73a   :  { %v3586_v61 = vpop.eup %3585 }
 0x73b   :  { %v1062_v55 = vpop.xlane.xlu0 %1061  ;;  %v1081_v60 = vmul.f32 %v3586_v61, %v3574_v29  ;;  %v1197_v29 = vpop.f32.mrf.mxu0 }
 0x73c   :  { %3587 = vrcp.f32 %v1062_v55 }
 0x742   :  { %v3588_v62 = vpop.eup %3587 }
 0x743   :  { %v1082_v2 = vmul.f32 %v3588_v62, %v3576_v35  ;;  %v1065_v56 = vpop.xlane.xlu2 %1064  ;;  %v1200_v17 = vpop.f32.mrf.mxu0 }
 0x744   :  { %3589 = vrcp.f32 %v1065_v56 }
 0x745   :  { %v1087_v7 = vpack.c.bf16 %v1082_v2, %v1081_v60 }
 0x747   :  { %3163 = vmatmul.msk.bf16.vlgmr.msrb.gmra.mxu2 %vm712_vm11, %v1087_v7 }
 0x74a   :  { %v3590_v12 = vpop.eup %3589 }
 0x74b   :  { %v1068_v10 = vpop.xlane.xlu1 %1067  ;;  %v1083_v4 = vmul.f32 %v3590_v12, %v3578_v37 }
 0x74c   :  { %3591 = vrcp.f32 %v1068_v10 }
 0x752   :  { %v3592_v14 = vpop.eup %3591 }
 0x753   :  { %v1084_v36 = vmul.f32 %v3592_v14, %v3580_v25  ;;  %v1071_v18 = vpop.xlane.xlu0 %1070  ;;  %v1202_v25 = vpop.f32.mrf.mxu0 }
 0x754   :  { %3593 = vrcp.f32 %v1071_v18 }
 0x755   :  { %v1088_v11 = vpack.c.bf16 %v1084_v36, %v1083_v4 }
 0x757   :  { %3164 = vmatmul.msk.bf16.gmra.mxu2 %vm712_vm11, %v1088_v11 }
 0x75a   :  { %v3594_v38 = vpop.eup %3593 }
 0x75b   :  { %v1074_v19 = vpop.xlane.xlu2 %1073  ;;  %v1085_v21 = vmul.f32 %v3594_v38, %v3582_v45  ;;  %v1205_v47 = vpop.f32.mrf.mxu0 }
 0x75c   :  { %3595 = vrcp.f32 %v1074_v19 }
 0x762   :  { %v3596_v22 = vpop.eup %3595 }
 0x763   :  { %v1086_v39 = vmul.f32 %v3596_v22, %v3584_v51  ;;  %v1207_v61 = vpop.f32.mrf.mxu0 }
 0x765   :  { %v1089_v43 = vpack.c.bf16 %v1086_v39, %v1085_v21 }
 0x767   :  { %3165 = vmatmul.msk.bf16.gmra.mxu2 %vm712_vm11, %v1089_v43 }
 0x7ca   :  { %v1111_v57 = vpop.f32.mrf.mxu2 }
 0x7d2   :  { %v1113_v54 = vpop.f32.mrf.mxu2 }
 0x7d3   :  { %v1126_v6 = vpack.c.bf16 %v1113_v54, %v1111_v57 }
 0x7d5   :  { %3172 = vmatmul.msk.bf16.vlgmr.msra.gmra.mxu3 %vm657_vm10, %v1126_v6 }
 0x7da   :  { %v1116_v48 = vpop.f32.mrf.mxu2 }
 0x7e2   :  { %v1118_v59 = vpop.f32.mrf.mxu2 }
 0x7e3   :  { %v1127_v15 = vpack.c.bf16 %v1118_v59, %v1116_v48 }
 0x7e5   :  { %3173 = vmatmul.msk.bf16.gmra.mxu3 %vm657_vm10, %v1127_v15 }
 0x7ea   :  { %v1121_v58 = vpop.f32.mrf.mxu2 }
 0x7f2   :  { %v1123_v53 = vpop.f32.mrf.mxu2 }
 0x7f3   :  { %v1128_v1 = vpack.c.bf16 %v1123_v53, %v1121_v58 }
 0x7f5   :  { %3174 = vmatmul.msk.bf16.gmra.mxu3 %vm657_vm10, %v1128_v1 }
 0x858   :  { %v1156_v30 = vpop.f32.mrf.mxu3 }
 0x859   :  { %v1196_v63 = vadd.f32 %v1195_v26, %v1156_v30 }
 0x85b   :  { %v1210_v32 = vadd.f32 %v1196_v63, %v4049_v34 }
 0x85d   :  { %v4353_v35 = vadd.f32 %v3502_v31, %v1210_v32 }
 0x85f   :  { %v1228_v0 = vsel %vm143_vm2, %v4353_v35, 0.0 }
 0x860   :  { %1229 = vadd.xlane.f32.xlu1 %v1228_v0  ;;  %v1158_v9 = vpop.f32.mrf.mxu3 }
 0x861   :  { %v1198_v44 = vadd.f32 %v1197_v29, %v1158_v9  ;;  %v3446_v9 = vld [vmem:[%s5093_s19] sm:$0xff] }
 0x863   :  { %v1211_v37 = vadd.f32 %v1198_v44, %v4030_v8 }
 0x865   :  { %v4358_v13 = vadd.f32 %v3502_v31, %v1211_v37 }
 0x867   :  { %v1231_v20 = vsel %vm143_vm2, %v4358_v13, 0.0 }
 0x868   :  { %1232 = vadd.xlane.f32.xlu0 %v1231_v20  ;;  %v1161_v33 = vpop.f32.mrf.mxu3 }
 0x869   :  { %v1201_v40 = vadd.f32 %v1200_v17, %v1161_v33 }
 0x86b   :  { %v1212_v34 = vadd.f32 %v1201_v40, %v4040_v49 }
 0x86d   :  { %v4363_v41 = vadd.f32 %v3502_v31, %v1212_v34 }
 0x86f   :  { %v1234_v42 = vsel %vm143_vm2, %v4363_v41, 0.0 }
 0x870   :  { %1235 = vadd.xlane.f32.xlu2 %v1234_v42  ;;  %v1163_v24 = vpop.f32.mrf.mxu3 }
 0x871   :  { %v1203_v27 = vadd.f32 %v1202_v25, %v1163_v24 }
 0x873   :  { %v1213_v8 = vadd.f32 %v1203_v27, %v4053_v28 }
 0x875   :  { %v4368_v45 = vadd.f32 %v3502_v31, %v1213_v8 }
 0x877   :  { %v1237_v16 = vsel %vm143_vm2, %v4368_v45, 0.0 }
 0x878   :  { %1238 = vadd.xlane.f32.xlu1 %v1237_v16  ;;  %v1166_v51 = vpop.f32.mrf.mxu3 }
 0x879   :  { %v1206_v49 = vadd.f32 %v1205_v47, %v1166_v51 }
 0x87b   :  { %v1214_v50 = vadd.f32 %v1206_v49, %v4080_v5 }
 0x87d   :  { %v4373_v52 = vadd.f32 %v3502_v31, %v1214_v50 }
 0x87f   :  { %v1240_v55 = vsel %vm143_vm2, %v4373_v52, 0.0 }
 0x880   :  { %v1168_v62 = vpop.f32.mrf.mxu3  ;;  %1241 = vadd.xlane.f32.xlu0 %v1240_v55 }
 0x881   :  { %v1208_v28 = vadd.f32 %v1207_v61, %v1168_v62 }
 0x883   :  { %v1215_v60 = vadd.f32 %v1208_v28, %v4092_v23 }
 0x885   :  { %v4378_v2 = vadd.f32 %v3502_v31, %v1215_v60  ;;  %v3447_v31 = vld [vmem:[%s5093_s19 + $0x8] sm:$0xff] }
 0x886   :  { %1416 = vmatpush.bf16.msrb.mxu1 %v3447_v31 }
 0x887   :  { %v1243_v7 = vsel %vm143_vm2, %v4378_v2, 0.0 }
 0x888   :  { %1244 = vadd.xlane.f32.xlu2 %v1243_v7  ;;  %v4437_v7 = vld [vmem:[%s5090_s17] ss:$0 sm:$0xff] }
 0x88a   :  { %1417 = vmatpush.bf16.msrb.mxu1 %v3446_v9 }
 0x8d3   :  { %v1230_v56 = vpop.xlane.xlu1 %1229 }
 0x8d4   :  { %v1246_v5 = vmul.f32 %v1230_v56, %v3954_v46 }
 0x8d6   :  { %v4384_v3 = vsub.f32 %v4353_v35, %v1246_v5 }
 0x8d8   :  { %v1258_v10 = vmul.f32 %v4384_v3, %v4384_v3 }
 0x8da   :  { %v1264_v12 = vsel %vm143_vm2, %v1258_v10, 0.0 }
 0x8db   :  { %v1233_v14 = vpop.xlane.xlu0 %1232  ;;  %1265 = vadd.xlane.f32.xlu1 %v1264_v12 }
 0x8dc   :  { %v1247_v23 = vmul.f32 %v1233_v14, %v3954_v46 }
 0x8de   :  { %v4391_v4 = vsub.f32 %v4358_v13, %v1247_v23 }
 0x8e0   :  { %v1259_v36 = vmul.f32 %v4391_v4, %v4391_v4 }
 0x8e2   :  { %v1267_v11 = vsel %vm143_vm2, %v1259_v36, 0.0  ;;  %v4443_v36 = vld [vmem:[%s5091_s18] ss:$0 sm:$0xff] }
 0x8e3   :  { %v1236_v18 = vpop.xlane.xlu2 %1235  ;;  %1268 = vadd.xlane.f32.xlu0 %v1267_v11 }
 0x8e4   :  { %v1248_v19 = vmul.f32 %v1236_v18, %v3954_v46 }
 0x8e6   :  { %v4398_v38 = vsub.f32 %v4363_v41, %v1248_v19 }
 0x8e8   :  { %v1260_v22 = vmul.f32 %v4398_v38, %v4398_v38 }
 0x8ea   :  { %v1270_v21 = vsel %vm143_vm2, %v1260_v22, 0.0 }
 0x8eb   :  { %v1239_v39 = vpop.xlane.xlu1 %1238  ;;  %1271 = vadd.xlane.f32.xlu2 %v1270_v21 }
 0x8ec   :  { %v1249_v43 = vmul.f32 %v1239_v39, %v3954_v46 }
 0x8ee   :  { %v4405_v57 = vsub.f32 %v4368_v45, %v1249_v43 }
 0x8f0   :  { %v1261_v54 = vmul.f32 %v4405_v57, %v4405_v57 }
 0x8f2   :  { %v1273_v6 = vsel %vm143_vm2, %v1261_v54, 0.0 }
 0x8f3   :  { %1274 = vadd.xlane.f32.xlu1 %v1273_v6  ;;  %v1242_v48 = vpop.xlane.xlu0 %1241 }
 0x8f4   :  { %v1250_v59 = vmul.f32 %v1242_v48, %v3954_v46 }
 0x8f6   :  { %v4412_v15 = vsub.f32 %v4373_v52, %v1250_v59 }
 0x8f8   :  { %v1262_v58 = vmul.f32 %v4412_v15, %v4412_v15 }
 0x8fa   :  { %v1276_v53 = vsel %vm143_vm2, %v1262_v58, 0.0 }
 0x8fb   :  { %v1245_v1 = vpop.xlane.xlu2 %1244  ;;  %1277 = vadd.xlane.f32.xlu0 %v1276_v53 }
 0x8fc   :  { %v1251_v26 = vmul.f32 %v1245_v1, %v3954_v46 }
 0x8fe   :  { %v4419_v29 = vsub.f32 %v4378_v2, %v1251_v26 }
 0x900   :  { %v1263_v30 = vmul.f32 %v4419_v29, %v4419_v29 }
 0x902   :  { %v1279_v63 = vsel %vm143_vm2, %v1263_v30, 0.0 }
 0x903   :  { %1280 = vadd.xlane.f32.xlu2 %v1279_v63 }
 0x94e   :  { %v1266_v32 = vpop.xlane.xlu1 %1265 }
 0x94f   :  { %v1282_v0 = vmul.f32 %v1266_v32, %v3954_v46 }
 0x951   :  { %v1288_v44 = vadd.f32 1e-05, %v1282_v0 }
 0x953   :  { %3597 = vrsqrt.f32 %v1288_v44  ;;  %vm1300_vm13 = vweird.f32 %v1288_v44 }
 0x956   :  { %v1269_v17 = vpop.xlane.xlu0 %1268 }
 0x957   :  { %v1283_v37 = vmul.f32 %v1269_v17, %v3954_v46 }
 0x959   :  { %v3598_v20 = vpop.eup %3597  ;;  %v1289_v33 = vadd.f32 1e-05, %v1283_v37 }
 0x95a   :  { %v1295_v40 = vmul.f32 %v3598_v20, %v1288_v44  ;;  %vm1301_vm12 = vweird.f32 %v3598_v20 }
 0x95b   :  { %3599 = vrsqrt.f32 %v1289_v33  ;;  %vm1302_vm14 = vmor %vm1300_vm13, %vm1301_vm12  ;;  %vm1310_vm0 = vweird.f32 %v1289_v33 }
 0x95c   :  { %v1296_v34 = vmul.f32 %v3598_v20, %v1295_v40 }
 0x95e   :  { %v1297_v25 = vmul.f32 0.5, %v1296_v34  ;;  %v1272_v42 = vpop.xlane.xlu2 %1271 }
 0x95f   :  { %v1284_v24 = vmul.f32 %v1272_v42, %v3954_v46 }
 0x960   :  { %v1298_v27 = vsub.f32 1.5, %v1297_v25 }
 0x961   :  { %v3600_v8 = vpop.eup %3599  ;;  %v1290_v47 = vadd.f32 1e-05, %v1284_v24 }
 0x962   :  { %v1299_v16 = vmul.f32 %v3598_v20, %v1298_v27  ;;  %v1305_v51 = vmul.f32 %v3600_v8, %v1289_v33  ;;  %vm1311_vm15 = vweird.f32 %v3600_v8 }
 0x963   :  { %3601 = vrsqrt.f32 %v1290_v47  ;;  %vm1312_vm3 = vmor %vm1310_vm0, %vm1311_vm15  ;;  %vm1320_vm5 = vweird.f32 %v1290_v47 }
 0x964   :  { %v1306_v49 = vmul.f32 %v3600_v8, %v1305_v51  ;;  %v1303_v50 = vsel %vm1302_vm14, %v3598_v20, %v1299_v16 }
 0x965   :  { %v1354_v56 = vmul.f32 %v1303_v50, %v4384_v3 }
 0x966   :  { %v1307_v55 = vmul.f32 0.5, %v1306_v49  ;;  %v1275_v61 = vpop.xlane.xlu1 %1274 }
 0x967   :  { %v1285_v62 = vmul.f32 %v1275_v61, %v3954_v46  ;;  %v1363_v11 = vmul.f32 %v4437_v7, %v1354_v56 }
 0x968   :  { %v1308_v28 = vsub.f32 1.5, %v1307_v55 }
 0x969   :  { %v3602_v60 = vpop.eup %3601  ;;  %v1291_v5 = vadd.f32 1e-05, %v1285_v62  ;;  %v1372_v54 = vadd.f32 %v4443_v36, %v1363_v11  ;;  %v3449_v11 = vld [vmem:[%s5095_s21 + $0x8] sm:$0xff] }
 0x96a   :  { %v1309_v10 = vmul.f32 %v3600_v8, %v1308_v28  ;;  %v1315_v12 = vmul.f32 %v3602_v60, %v1290_v47  ;;  %vm1321_vm4 = vweird.f32 %v3602_v60 }
 0x96b   :  { %3603 = vrsqrt.f32 %v1291_v5  ;;  %vm1322_vm6 = vmor %vm1320_vm5, %vm1321_vm4  ;;  %vm1330_vm8 = vweird.f32 %v1291_v5 }
 0x96c   :  { %v1313_v14 = vsel %vm1312_vm3, %v3600_v8, %v1309_v10  ;;  %v1316_v23 = vmul.f32 %v3602_v60, %v1315_v12 }
 0x96d   :  { %v1355_v18 = vmul.f32 %v1313_v14, %v4391_v4  ;;  %v3452_v14 = vld [vmem:[%s5095_s21 + $0x20] sm:$0xff] }
 0x96e   :  { %v1317_v19 = vmul.f32 0.5, %v1316_v23  ;;  %v1278_v22 = vpop.xlane.xlu0 %1277  ;;  %v3451_v23 = vld [vmem:[%s5095_s21 + $0x18] sm:$0xff] }
 0x96f   :  { %v1364_v3 = vmul.f32 %v4437_v7, %v1355_v18  ;;  %v1286_v21 = vmul.f32 %v1278_v22, %v3954_v46  ;;  %v3448_v18 = vld [vmem:[%s5095_s21] sm:$0xff] }
 0x970   :  { %v1318_v39 = vsub.f32 1.5, %v1317_v19  ;;  %v3505_v19 = vld [vmem:[%s5092_s20] ss:$0 sm:$0xff] }
 0x971   :  { %v3604_v43 = vpop.eup %3603  ;;  %v1373_v6 = vadd.f32 %v4443_v36, %v1364_v3  ;;  %v1292_v48 = vadd.f32 1e-05, %v1286_v21 }
 0x972   :  { %v1319_v59 = vmul.f32 %v3602_v60, %v1318_v39  ;;  %v1325_v58 = vmul.f32 %v3604_v43, %v1291_v5  ;;  %vm1331_vm7 = vweird.f32 %v3604_v43 }
 0x973   :  { %3605 = vrsqrt.f32 %v1292_v48  ;;  %v1378_v53 = vpack.c.bf16 %v1373_v6, %v1372_v54  ;;  %vm1332_vm9 = vmor %vm1330_vm8, %vm1331_vm7  ;;  %vm1340_vm13 = vweird.f32 %v1292_v48 }
 0x974   :  { %v1326_v4 = vmul.f32 %v3604_v43, %v1325_v58  ;;  %v1323_v1 = vsel %vm1322_vm6, %v3602_v60, %v1319_v59 }
 0x975   :  { %3190 = vmatmul.msk.bf16.vlgmr.msrb.gmra.mxu1 %vm143_vm2, %v1378_v53  ;;  %v1356_v0 = vmul.f32 %v1323_v1, %v4398_v38 }
 0x976   :  { %v1327_v26 = vmul.f32 0.5, %v1326_v4  ;;  %v1281_v30 = vpop.xlane.xlu2 %1280 }
 0x977   :  { %v1287_v63 = vmul.f32 %v1281_v30, %v3954_v46  ;;  %v1365_v40 = vmul.f32 %v4437_v7, %v1356_v0 }
 0x978   :  { %v1328_v31 = vsub.f32 1.5, %v1327_v26 }
 0x979   :  { %v3606_v32 = vpop.eup %3605  ;;  %v1293_v9 = vadd.f32 1e-05, %v1287_v63  ;;  %v1374_v27 = vadd.f32 %v4443_v36, %v1365_v40 }
 0x97a   :  { %v1329_v44 = vmul.f32 %v3604_v43, %v1328_v31  ;;  %v1335_v17 = vmul.f32 %v3606_v32, %v1292_v48  ;;  %vm1341_vm12 = vweird.f32 %v3606_v32 }
 0x97b   :  { %3607 = vrsqrt.f32 %v1293_v9  ;;  %vm1342_vm14 = vmor %vm1340_vm13, %vm1341_vm12  ;;  %vm1350_vm0 = vweird.f32 %v1293_v9 }
 0x97c   :  { %v1333_v37 = vsel %vm1332_vm9, %v3604_v43, %v1329_v44  ;;  %v1336_v20 = vmul.f32 %v3606_v32, %v1335_v17 }
 0x97d   :  { %v1357_v33 = vmul.f32 %v1333_v37, %v4405_v57 }
 0x97e   :  { %v1337_v34 = vmul.f32 0.5, %v1336_v20 }
 0x97f   :  { %v1366_v25 = vmul.f32 %v4437_v7, %v1357_v33 }
 0x980   :  { %v1338_v42 = vsub.f32 1.5, %v1337_v34 }
 0x981   :  { %v3608_v24 = vpop.eup %3607  ;;  %v1375_v38 = vadd.f32 %v4443_v36, %v1366_v25 }
 0x982   :  { %v1339_v8 = vmul.f32 %v3606_v32, %v1338_v42  ;;  %v1345_v47 = vmul.f32 %v3608_v24, %v1293_v9  ;;  %vm1351_vm15 = vweird.f32 %v3608_v24 }
 0x983   :  { %v1379_v16 = vpack.c.bf16 %v1375_v38, %v1374_v27  ;;  %vm1352_vm3 = vmor %vm1350_vm0, %vm1351_vm15 }
 0x984   :  { %v1346_v51 = vmul.f32 %v3608_v24, %v1345_v47  ;;  %v1343_v57 = vsel %vm1342_vm14, %v3606_v32, %v1339_v8 }
 0x985   :  { %3191 = vmatmul.msk.bf16.gmra.mxu1 %vm143_vm2, %v1379_v16  ;;  %v1358_v55 = vmul.f32 %v1343_v57, %v4412_v15  ;;  %v3455_v15 = vld [vmem:[%s5095_s21 + $0x38] sm:$0xff] }
 0x986   :  { %v1347_v49 = vmul.f32 0.5, %v1346_v51  ;;  %1559 = vmatpush.bf16.msra.mxu2 %v3455_v15 }
 0x987   :  { %v1367_v60 = vmul.f32 %v4437_v7, %v1358_v55 }
 0x988   :  { %v1348_v50 = vsub.f32 1.5, %v1347_v49 }
 0x989   :  { %v1376_v5 = vadd.f32 %v4443_v36, %v1367_v60 }
 0x98a   :  { %v1349_v61 = vmul.f32 %v3608_v24, %v1348_v50 }
 0x98c   :  { %v1353_v62 = vsel %vm1352_vm3, %v3608_v24, %v1349_v61 }
 0x98d   :  { %v1359_v28 = vmul.f32 %v1353_v62, %v4419_v29  ;;  %v3454_v29 = vld [vmem:[%s5095_s21 + $0x30] sm:$0xff] }
 0x98e   :  { %1560 = vmatpush.bf16.msra.mxu2 %v3454_v29 }
 0x98f   :  { %v1368_v56 = vmul.f32 %v4437_v7, %v1359_v28  ;;  %v3453_v7 = vld [vmem:[%s5095_s21 + $0x28] sm:$0xff] }
 0x991   :  { %v1377_v10 = vadd.f32 %v4443_v36, %v1368_v56  ;;  %v3450_v36 = vld [vmem:[%s5095_s21 + $0x10] sm:$0xff] }
 0x992   :  { %1561 = vmatpush.bf16.msra.mxu2 %v3453_v7 }
 0x993   :  { %v1380_v12 = vpack.c.bf16 %v1377_v10, %v1376_v5 }
 0x995   :  { %3192 = vmatmul.msk.bf16.gmra.mxu1 %vm143_vm2, %v1380_v12 }
 0x996   :  { %1562 = vmatpush.bf16.msra.mxu2 %v3452_v14 }
 0x99a   :  { %1563 = vmatpush.bf16.msra.mxu2 %v3451_v23 }
 0x99e   :  { %1564 = vmatpush.bf16.msra.mxu2 %v3450_v36 }
 0x9a2   :  { %1565 = vmatpush.bf16.msra.mxu2 %v3449_v11 }
 0x9a6   :  { %1566 = vmatpush.bf16.msra.mxu2 %v3448_v18 }
 0x9f2   :  { %v1419_v22 = vpop.f32.mrf.mxu1 }
 0x9f3   :  { %v1420_v3 = vadd.f32 %v3505_v19, %v1419_v22 }
 0x9f5   :  { %v1440_v21 = vmul.f32 0.044715, %v1420_v3  ;;  %v1434_v34 = vmul.f32 0.5, %v1420_v3 }
 0x9f7   :  { %v1446_v39 = vmul.f32 %v1440_v21, %v1420_v3 }
 0x9f9   :  { %v1452_v43 = vmul.f32 %v1446_v39, %v1420_v3 }
 0x9fa   :  { %v1421_v54 = vpop.f32.mrf.mxu1 }
 0x9fb   :  { %v1458_v6 = vadd.f32 %v1452_v43, %v1420_v3  ;;  %v1422_v48 = vadd.f32 %v3505_v19, %v1421_v54 }
 0x9fd   :  { %v1441_v59 = vmul.f32 0.044715, %v1422_v48  ;;  %v1464_v58 = vmul.f32 0.7978846, %v1458_v6  ;;  %v1435_v25 = vmul.f32 0.5, %v1422_v48 }
 0x9ff   :  { %v1447_v53 = vmul.f32 %v1441_v59, %v1422_v48  ;;  %3609 = vtanh.f32 %v1464_v58 }
 0xa01   :  { %v1453_v4 = vmul.f32 %v1447_v53, %v1422_v48 }
 0xa02   :  { %v1424_v1 = vpop.f32.mrf.mxu1 }
 0xa03   :  { %v1425_v26 = vadd.f32 %v3505_v19, %v1424_v1  ;;  %v1459_v30 = vadd.f32 %v1453_v4, %v1422_v48  ;;  %v3506_v1 = vld [vmem:[%s5094_s22] ss:$0 sm:$0xff] }
 0xa05   :  { %v1442_v63 = vmul.f32 0.044715, %v1425_v26  ;;  %v1465_v31 = vmul.f32 0.7978846, %v1459_v30  ;;  %v3610_v0 = vpop.eup %3609  ;;  %v1436_v29 = vmul.f32 0.5, %v1425_v26 }
 0xa06   :  { %v1476_v20 = vadd.f32 1.0, %v3610_v0 }
 0xa07   :  { %3611 = vtanh.f32 %v1465_v31  ;;  %v1448_v32 = vmul.f32 %v1442_v63, %v1425_v26 }
 0xa08   :  { %v1482_v38 = vmul.f32 %v1476_v20, %v1434_v34 }
 0xa09   :  { %v1454_v9 = vmul.f32 %v1448_v32, %v1425_v26 }
 0xa0a   :  { %v1426_v44 = vpop.f32.mrf.mxu1 }
 0xa0b   :  { %v1427_v17 = vadd.f32 %v3505_v19, %v1426_v44  ;;  %v1460_v37 = vadd.f32 %v1454_v9, %v1425_v26 }
 0xa0d   :  { %v3612_v33 = vpop.eup %3611  ;;  %v1443_v40 = vmul.f32 0.044715, %v1427_v17  ;;  %v1466_v27 = vmul.f32 0.7978846, %v1460_v37  ;;  %v1437_v7 = vmul.f32 0.5, %v1427_v17 }
 0xa0e   :  { %v1477_v42 = vadd.f32 1.0, %v3612_v33 }
 0xa0f   :  { %v1449_v24 = vmul.f32 %v1443_v40, %v1427_v17  ;;  %3613 = vtanh.f32 %v1466_v27 }
 0xa10   :  { %v1483_v8 = vmul.f32 %v1477_v42, %v1435_v25 }
 0xa11   :  { %v1455_v47 = vmul.f32 %v1449_v24, %v1427_v17 }
 0xa12   :  { %v1429_v16 = vpop.f32.mrf.mxu1  ;;  %v1488_v51 = vpack.c.bf16 %v1483_v8, %v1482_v38 }
 0xa13   :  { %v1430_v57 = vadd.f32 %v3505_v19, %v1429_v16  ;;  %v1461_v49 = vadd.f32 %v1455_v47, %v1427_v17 }
 0xa14   :  { %1567 = vmatmul.bf16.vlgmr.msra.gmra.mxu2 %v1488_v51 }
 0xa15   :  { %v1444_v50 = vmul.f32 0.044715, %v1430_v57  ;;  %v1467_v55 = vmul.f32 0.7978846, %v1461_v49  ;;  %v3614_v62 = vpop.eup %3613  ;;  %v1438_v6 = vmul.f32 0.5, %v1430_v57 }
 0xa16   :  { %v1478_v10 = vadd.f32 1.0, %v3614_v62 }
 0xa17   :  { %v1450_v61 = vmul.f32 %v1444_v50, %v1430_v57  ;;  %3615 = vtanh.f32 %v1467_v55 }
 0xa18   :  { %v1484_v11 = vmul.f32 %v1478_v10, %v1436_v29 }
 0xa19   :  { %v1456_v28 = vmul.f32 %v1450_v61, %v1430_v57 }
 0xa1a   :  { %v1431_v60 = vpop.f32.mrf.mxu1 }
 0xa1b   :  { %v1432_v56 = vadd.f32 %v3505_v19, %v1431_v60  ;;  %v1462_v5 = vadd.f32 %v1456_v28, %v1430_v57 }
 0xa1d   :  { %v3616_v12 = vpop.eup %3615  ;;  %v1445_v15 = vmul.f32 0.044715, %v1432_v56  ;;  %v1468_v36 = vmul.f32 0.7978846, %v1462_v5  ;;  %v1439_v48 = vmul.f32 0.5, %v1432_v56 }
 0xa1e   :  { %v1479_v14 = vadd.f32 1.0, %v3616_v12 }
 0xa1f   :  { %v1451_v23 = vmul.f32 %v1445_v15, %v1432_v56  ;;  %3617 = vtanh.f32 %v1468_v36 }
 0xa20   :  { %v1485_v18 = vmul.f32 %v1479_v14, %v1437_v7 }
 0xa21   :  { %v1457_v22 = vmul.f32 %v1451_v23, %v1432_v56 }
 0xa22   :  { %v1489_v3 = vpack.c.bf16 %v1485_v18, %v1484_v11 }
 0xa23   :  { %v1463_v21 = vadd.f32 %v1457_v22, %v1432_v56 }
 0xa24   :  { %1572 = vmatmul.bf16.gmra.mxu2 %v1489_v3 }
 0xa25   :  { %v1469_v39 = vmul.f32 0.7978846, %v1463_v21  ;;  %v3618_v43 = vpop.eup %3617 }
 0xa26   :  { %v1480_v19 = vadd.f32 1.0, %v3618_v43 }
 0xa27   :  { %3619 = vtanh.f32 %v1469_v39 }
 0xa28   :  { %v1486_v58 = vmul.f32 %v1480_v19, %v1438_v6  ;;  %v3459_v19 = vld [vmem:[%s5133_s9 + $0x28] sm:$0xff] }
 0xa29   :  { %v3461_v6 = vld [vmem:[%s5085_s13 + $0x28] sm:$0xff]  ;;  %1829 = vmatpush.bf16.msra.mxu0 %v3459_v19 }
 0xa2a   :  { %1875 = vmatpush.bf16.msra.mxu1 %v3461_v6 }
 0xa2d   :  { %v3620_v54 = vpop.eup %3619 }
 0xa2e   :  { %v1481_v59 = vadd.f32 1.0, %v3620_v54  ;;  %v3457_v54 = vld [vmem:[%s5130_s28 + $0x28] sm:$0xff] }
 0xa2f   :  { %1783 = vmatpush.bf16.msrb.mxu3 %v3457_v54 }
 0xa30   :  { %v1487_v53 = vmul.f32 %v1481_v59, %v1439_v48 }
 0xa32   :  { %v1490_v4 = vpack.c.bf16 %v1487_v53, %v1486_v58  ;;  %v3456_v58 = vld [vmem:[%s5130_s28 + $0x20] sm:$0xff] }
 0xa33   :  { %v3458_v53 = vld [vmem:[%s5133_s9 + $0x20] sm:$0xff]  ;;  %1784 = vmatpush.bf16.msrb.mxu3 %v3456_v58  ;;  %v3466_v58 = vld [vmem:[%s5133_s9 + $0x38] sm:$0xff] }
 0xa34   :  { %1577 = vmatmul.bf16.gmra.mxu2 %v1490_v4  ;;  %v3460_v4 = vld [vmem:[%s5085_s13 + $0x20] sm:$0xff]  ;;  %1830 = vmatpush.bf16.msra.mxu0 %v3458_v53 }
 0xa35   :  { %1876 = vmatpush.bf16.msra.mxu1 %v3460_v4 }
 0xa39   :  { %2138 = vmatpush.bf16.msrb.mxu1 %v3466_v58 }
 0xa97   :  { %v1568_v26 = vpop.f32.mrf.mxu2 }
 0xa98   :  { %v1569_v30 = vadd.f32 %v3506_v1, %v1568_v26 }
 0xa9a   :  { %v4498_v63 = vadd.f32 %v1569_v30, %v4353_v35 }
 0xa9c   :  { %v1593_v31 = vsel %vm143_vm2, %v4498_v63, 0.0 }
 0xa9d   :  { %1594 = vadd.xlane.f32.xlu1 %v1593_v31 }
 0xa9f   :  { %v1570_v32 = vpop.f32.mrf.mxu2 }
 0xaa0   :  { %v1571_v0 = vadd.f32 %v3506_v1, %v1570_v32 }
 0xaa2   :  { %v4503_v9 = vadd.f32 %v1571_v0, %v4358_v13 }
 0xaa4   :  { %v1596_v44 = vsel %vm143_vm2, %v4503_v9, 0.0 }
 0xaa5   :  { %1597 = vadd.xlane.f32.xlu0 %v1596_v44 }
 0xaa7   :  { %v1573_v17 = vpop.f32.mrf.mxu2 }
 0xaa8   :  { %v1574_v37 = vadd.f32 %v3506_v1, %v1573_v17 }
 0xaaa   :  { %v4508_v20 = vadd.f32 %v1574_v37, %v4363_v41 }
 0xaac   :  { %v1599_v35 = vsel %vm143_vm2, %v4508_v20, 0.0 }
 0xaad   :  { %1600 = vadd.xlane.f32.xlu2 %v1599_v35 }
 0xaaf   :  { %v1575_v33 = vpop.f32.mrf.mxu2 }
 0xab0   :  { %v1576_v40 = vadd.f32 %v3506_v1, %v1575_v33 }
 0xab2   :  { %v4513_v34 = vadd.f32 %v1576_v40, %v4368_v45 }
 0xab4   :  { %v1602_v13 = vsel %vm143_vm2, %v4513_v34, 0.0 }
 0xab5   :  { %1603 = vadd.xlane.f32.xlu1 %v1602_v13 }
 0xab7   :  { %v1578_v25 = vpop.f32.mrf.mxu2 }
 0xab8   :  { %v1579_v42 = vadd.f32 %v3506_v1, %v1578_v25 }
 0xaba   :  { %v4518_v24 = vadd.f32 %v1579_v42, %v4373_v52 }
 0xabc   :  { %v1605_v41 = vsel %vm143_vm2, %v4518_v24, 0.0 }
 0xabd   :  { %1606 = vadd.xlane.f32.xlu0 %v1605_v41 }
 0xabf   :  { %v1580_v27 = vpop.f32.mrf.mxu2 }
 0xac0   :  { %v1581_v38 = vadd.f32 %v3506_v1, %v1580_v27 }
 0xac2   :  { %v4523_v8 = vadd.f32 %v1581_v38, %v4378_v2 }
 0xac4   :  { %v1608_v45 = vsel %vm143_vm2, %v4523_v8, 0.0 }
 0xac5   :  { %1609 = vadd.xlane.f32.xlu2 %v1608_v45 }
 0xb10   :  { %v1595_v47 = vpop.xlane.xlu1 %1594 }
 0xb11   :  { %v1611_v16 = vmul.f32 %v1595_v47, %v3954_v46 }
 0xb13   :  { %v4529_v51 = vsub.f32 %v4498_v63, %v1611_v16 }
 0xb15   :  { %v1623_v52 = vmul.f32 %v4529_v51, %v4529_v51 }
 0xb17   :  { %v1629_v57 = vsel %vm143_vm2, %v1623_v52, 0.0 }
 0xb18   :  { %1630 = vadd.xlane.f32.xlu1 %v1629_v57  ;;  %v1598_v49 = vpop.xlane.xlu0 %1597  ;;  %v4594_v57 = vld [vmem:[%s5131_s7 + $0x1] ss:$0 sm:$0xff] }
 0xb19   :  { %v1612_v2 = vmul.f32 %v1598_v49, %v3954_v46 }
 0xb1b   :  { %v4536_v50 = vsub.f32 %v4503_v9, %v1612_v2 }
 0xb1d   :  { %v1624_v55 = vmul.f32 %v4536_v50, %v4536_v50 }
 0xb1f   :  { %v1632_v61 = vsel %vm143_vm2, %v1624_v55, 0.0 }
 0xb20   :  { %v1601_v62 = vpop.xlane.xlu2 %1600  ;;  %1633 = vadd.xlane.f32.xlu0 %v1632_v61 }
 0xb21   :  { %v1613_v28 = vmul.f32 %v1601_v62, %v3954_v46 }
 0xb23   :  { %v4543_v60 = vsub.f32 %v4508_v20, %v1613_v28 }
 0xb25   :  { %v1625_v56 = vmul.f32 %v4543_v60, %v4543_v60 }
 0xb27   :  { %v1635_v5 = vsel %vm143_vm2, %v1625_v56, 0.0  ;;  %v4600_v56 = vld [vmem:[%s5132_s4 + $0x1] ss:$0 sm:$0xff] }
 0xb28   :  { %v1604_v10 = vpop.xlane.xlu1 %1603  ;;  %1636 = vadd.xlane.f32.xlu2 %v1635_v5 }
 0xb29   :  { %v1614_v12 = vmul.f32 %v1604_v10, %v3954_v46 }
 0xb2b   :  { %v4550_v15 = vsub.f32 %v4513_v34, %v1614_v12 }
 0xb2d   :  { %v1626_v29 = vmul.f32 %v4550_v15, %v4550_v15 }
 0xb2f   :  { %v1638_v7 = vsel %vm143_vm2, %v1626_v29, 0.0 }
 0xb30   :  { %1639 = vadd.xlane.f32.xlu1 %v1638_v7  ;;  %v1607_v14 = vpop.xlane.xlu0 %1606 }
 0xb31   :  { %v1615_v23 = vmul.f32 %v1607_v14, %v3954_v46 }
 0xb33   :  { %v4557_v36 = vsub.f32 %v4518_v24, %v1615_v23 }
 0xb35   :  { %v1627_v11 = vmul.f32 %v4557_v36, %v4557_v36 }
 0xb37   :  { %v1641_v18 = vsel %vm143_vm2, %v1627_v11, 0.0 }
 0xb38   :  { %v1610_v22 = vpop.xlane.xlu2 %1609  ;;  %1642 = vadd.xlane.f32.xlu0 %v1641_v18 }
 0xb39   :  { %v1616_v3 = vmul.f32 %v1610_v22, %v3954_v46 }
 0xb3b   :  { %v4564_v21 = vsub.f32 %v4523_v8, %v1616_v3 }
 0xb3d   :  { %v1628_v39 = vmul.f32 %v4564_v21, %v4564_v21 }
 0xb3f   :  { %v1644_v43 = vsel %vm143_vm2, %v1628_v39, 0.0 }
 0xb40   :  { %1645 = vadd.xlane.f32.xlu2 %v1644_v43 }
 0xb8b   :  { %v1631_v48 = vpop.xlane.xlu1 %1630 }
 0xb8c   :  { %v1647_v59 = vmul.f32 %v1631_v48, %v3954_v46 }
 0xb8e   :  { %v1653_v1 = vadd.f32 1e-05, %v1647_v59  ;;  %v3464_v59 = vld [vmem:[%s5130_s28 + $0x38] sm:$0xff] }
 0xb8f   :  { %2092 = vmatpush.bf16.msrb.mxu0 %v3464_v59 }
 0xb90   :  { %3621 = vrsqrt.f32 %v1653_v1  ;;  %vm1665_vm5 = vweird.f32 %v1653_v1 }
 0xb93   :  { %v1634_v26 = vpop.xlane.xlu0 %1633 }
 0xb94   :  { %v1648_v30 = vmul.f32 %v1634_v26, %v3954_v46  ;;  %v3465_v26 = vld [vmem:[%s5133_s9 + $0x30] sm:$0xff] }
 0xb95   :  { %2139 = vmatpush.bf16.msrb.mxu1 %v3465_v26 }
 0xb96   :  { %v3622_v31 = vpop.eup %3621  ;;  %v1654_v32 = vadd.f32 1e-05, %v1648_v30 }
 0xb97   :  { %v1660_v0 = vmul.f32 %v3622_v31, %v1653_v1  ;;  %vm1666_vm4 = vweird.f32 %v3622_v31  ;;  %v3463_v1 = vld [vmem:[%s5130_s28 + $0x30] sm:$0xff] }
 0xb98   :  { %3623 = vrsqrt.f32 %v1654_v32  ;;  %vm1667_vm6 = vmor %vm1665_vm5, %vm1666_vm4  ;;  %vm1675_vm8 = vweird.f32 %v1654_v32  ;;  %2093 = vmatpush.bf16.msrb.mxu0 %v3463_v1 }
 0xb99   :  { %v1661_v44 = vmul.f32 %v3622_v31, %v1660_v0 }
 0xb9b   :  { %v1662_v17 = vmul.f32 0.5, %v1661_v44  ;;  %v1637_v37 = vpop.xlane.xlu2 %1636 }
 0xb9c   :  { %v1649_v35 = vmul.f32 %v1637_v37, %v3954_v46 }
 0xb9d   :  { %v1663_v33 = vsub.f32 1.5, %v1662_v17 }
 0xb9e   :  { %v3624_v40 = vpop.eup %3623  ;;  %v1655_v13 = vadd.f32 1e-05, %v1649_v35 }
 0xb9f   :  { %v1664_v25 = vmul.f32 %v3622_v31, %v1663_v33  ;;  %v1670_v42 = vmul.f32 %v3624_v40, %v1654_v32  ;;  %vm1676_vm7 = vweird.f32 %v3624_v40 }
 0xba0   :  { %3625 = vrsqrt.f32 %v1655_v13  ;;  %vm1677_vm9 = vmor %vm1675_vm8, %vm1676_vm7  ;;  %vm1685_vm13 = vweird.f32 %v1655_v13 }
 0xba1   :  { %v1671_v41 = vmul.f32 %v3624_v40, %v1670_v42  ;;  %v1668_v27 = vsel %vm1667_vm6, %v3622_v31, %v1664_v25 }
 0xba2   :  { %v1719_v49 = vmul.f32 %v1668_v27, %v4529_v51 }
 0xba3   :  { %v1672_v38 = vmul.f32 0.5, %v1671_v41  ;;  %v1640_v45 = vpop.xlane.xlu1 %1639 }
 0xba4   :  { %v1650_v47 = vmul.f32 %v1640_v45, %v3954_v46  ;;  %v1728_v5 = vmul.f32 %v4594_v57, %v1719_v49 }
 0xba5   :  { %v1673_v16 = vsub.f32 1.5, %v1672_v38 }
 0xba6   :  { %v3626_v52 = vpop.eup %3625  ;;  %v1656_v2 = vadd.f32 1e-05, %v1650_v47  ;;  %v1737_v11 = vadd.f32 %v4600_v56, %v1728_v5 }
 0xba7   :  { %v1674_v55 = vmul.f32 %v3624_v40, %v1673_v16  ;;  %v1680_v61 = vmul.f32 %v3626_v52, %v1655_v13  ;;  %vm1686_vm12 = vweird.f32 %v3626_v52 }
 0xba8   :  { %3627 = vrsqrt.f32 %v1656_v2  ;;  %vm4610_vm14 = vmor %vm1685_vm13, %vm1686_vm12  ;;  %vm1695_vm0 = vweird.f32 %v1656_v2 }
 0xba9   :  { %v1678_v62 = vsel %vm1677_vm9, %v3624_v40, %v1674_v55  ;;  %v1681_v28 = vmul.f32 %v3626_v52, %v1680_v61 }
 0xbaa   :  { %v1720_v10 = vmul.f32 %v1678_v62, %v4536_v50 }
 0xbab   :  { %v1682_v12 = vmul.f32 0.5, %v1681_v28  ;;  %v1643_v29 = vpop.xlane.xlu0 %1642 }
 0xbac   :  { %v1729_v51 = vmul.f32 %v4594_v57, %v1720_v10  ;;  %v1651_v7 = vmul.f32 %v1643_v29, %v3954_v46 }
 0xbad   :  { %v1683_v14 = vsub.f32 1.5, %v1682_v12 }
 0xbae   :  { %v3628_v23 = vpop.eup %3627  ;;  %v1738_v18 = vadd.f32 %v4600_v56, %v1729_v51  ;;  %v1657_v22 = vadd.f32 1e-05, %v1651_v7 }
 0xbaf   :  { %v1684_v3 = vmul.f32 %v3626_v52, %v1683_v14  ;;  %v1690_v39 = vmul.f32 %v3628_v23, %v1656_v2  ;;  %vm1696_vm15 = vweird.f32 %v3628_v23 }
 0xbb0   :  { %v4608_v43 = vpack.c.bf16 %v1738_v18, %v1737_v11  ;;  %3629 = vrsqrt.f32 %v1657_v22  ;;  %vm1697_vm3 = vmor %vm1695_vm0, %vm1696_vm15  ;;  %vm1705_vm5 = vweird.f32 %v1657_v22  ;;  %v3509_v18 = vld [vmem:[%s5134_s29 + $0x2] ss:$0 sm:$0xff] }
 0xbb1   :  { %v1691_v50 = vmul.f32 %v3628_v23, %v1690_v39  ;;  %v1688_v54 = vsel %vm4610_vm14, %v3626_v52, %v1684_v3 }
 0xbb2   :  { %3240 = vmatmul.msk.bf16.vlgmr.msrb.gmra.mxu3 %vm143_vm2, %v4608_v43  ;;  %3256 = vmatmul.msk.bf16.vlgmr.msra.gmra.mxu0 %vm143_vm2, %v4608_v43  ;;  %v1721_v31 = vmul.f32 %v1688_v54, %v4543_v60 }
 0xbb3   :  { %v1692_v6 = vmul.f32 0.5, %v1691_v50  ;;  %3272 = vmatmul.msk.bf16.vlgmr.msra.gmra.mxu1 %vm143_vm2, %v4608_v43  ;;  %v1646_v48 = vpop.xlane.xlu2 %1645 }
 0xbb4   :  { %v1652_v53 = vmul.f32 %v1646_v48, %v3954_v46  ;;  %v1730_v35 = vmul.f32 %v4594_v57, %v1721_v31 }
 0xbb5   :  { %v1693_v4 = vsub.f32 1.5, %v1692_v6 }
 0xbb6   :  { %v3630_v30 = vpop.eup %3629  ;;  %v1658_v32 = vadd.f32 1e-05, %v1652_v53  ;;  %v1739_v60 = vadd.f32 %v4600_v56, %v1730_v35 }
 0xbb7   :  { %v1694_v0 = vmul.f32 %v3628_v23, %v1693_v4  ;;  %v1700_v44 = vmul.f32 %v3630_v30, %v1657_v22  ;;  %vm1706_vm4 = vweird.f32 %v3630_v30  ;;  %v3510_v22 = vld [vmem:[%s5086_s14 + $0x2] ss:$0 sm:$0xff] }
 0xbb8   :  { %3631 = vrsqrt.f32 %v1658_v32  ;;  %vm1707_vm6 = vmor %vm1705_vm5, %vm1706_vm4  ;;  %vm1715_vm8 = vweird.f32 %v1658_v32 }
 0xbb9   :  { %v1698_v17 = vsel %vm1697_vm3, %v3628_v23, %v1694_v0  ;;  %v1701_v37 = vmul.f32 %v3630_v30, %v1700_v44 }
 0xbba   :  { %v1722_v33 = vmul.f32 %v1698_v17, %v4550_v15 }
 0xbbb   :  { %v1702_v40 = vmul.f32 0.5, %v1701_v37 }
 0xbbc   :  { %v1731_v13 = vmul.f32 %v4594_v57, %v1722_v33 }
 0xbbd   :  { %v1703_v25 = vsub.f32 1.5, %v1702_v40 }
 0xbbe   :  { %v3632_v42 = vpop.eup %3631  ;;  %v1740_v41 = vadd.f32 %v4600_v56, %v1731_v13 }
 0xbbf   :  { %v1704_v27 = vmul.f32 %v3630_v30, %v1703_v25  ;;  %v1710_v38 = vmul.f32 %v3632_v42, %v1658_v32  ;;  %vm1716_vm7 = vweird.f32 %v3632_v42 }
 0xbc0   :  { %v4641_v45 = vpack.c.bf16 %v1740_v41, %v1739_v60  ;;  %vm1717_vm9 = vmor %vm1715_vm8, %vm1716_vm7  ;;  %v3511_v60 = vld [vmem:[%s5135_s1 + $0x2] ss:$0 sm:$0xff] }
 0xbc1   :  { %v1711_v47 = vmul.f32 %v3632_v42, %v1710_v38  ;;  %v1708_v15 = vsel %vm1707_vm6, %v3630_v30, %v1704_v27 }
 0xbc2   :  { %3241 = vmatmul.msk.bf16.gmra.mxu3 %vm143_vm2, %v4641_v45  ;;  %3257 = vmatmul.msk.bf16.gmra.mxu0 %vm143_vm2, %v4641_v45  ;;  %v1723_v49 = vmul.f32 %v1708_v15, %v4557_v36 }
 0xbc3   :  { %v1712_v16 = vmul.f32 0.5, %v1711_v47  ;;  %3273 = vmatmul.msk.bf16.gmra.mxu1 %vm143_vm2, %v4641_v45 }
 0xbc4   :  { %v1732_v61 = vmul.f32 %v4594_v57, %v1723_v49 }
 0xbc5   :  { %v1713_v52 = vsub.f32 1.5, %v1712_v16 }
 0xbc6   :  { %v1741_v5 = vadd.f32 %v4600_v56, %v1732_v61  ;;  %v3467_v61 = vld [vmem:[%s5085_s13 + $0x30] sm:$0xff] }
 0xbc7   :  { %v1714_v2 = vmul.f32 %v3632_v42, %v1713_v52  ;;  %v3468_v52 = vld [vmem:[%s5085_s13 + $0x38] sm:$0xff] }
 0xbc9   :  { %v1718_v55 = vsel %vm1717_vm9, %v3632_v42, %v1714_v2 }
 0xbca   :  { %v1724_v62 = vmul.f32 %v1718_v55, %v4564_v21 }
 0xbcc   :  { %v1733_v28 = vmul.f32 %v4594_v57, %v1724_v62 }
 0xbce   :  { %v1742_v10 = vadd.f32 %v4600_v56, %v1733_v28 }
 0xbd0   :  { %v4655_v12 = vpack.c.bf16 %v1742_v10, %v1741_v5 }
 0xbd2   :  { %3242 = vmatmul.msk.bf16.gmra.mxu3 %vm143_vm2, %v4655_v12  ;;  %3258 = vmatmul.msk.bf16.gmra.mxu0 %vm143_vm2, %v4655_v12 }
 0xbd3   :  { %3274 = vmatmul.msk.bf16.gmra.mxu1 %vm143_vm2, %v4655_v12 }
 0xbe2   :  { %3296 = vmatmul.msk.bf16.vlgmr.msrb.gmra.mxu0 %vm143_vm2, %v4608_v43 }
 0xbe3   :  { %3312 = vmatmul.msk.bf16.vlgmr.msrb.gmra.mxu1 %vm143_vm2, %v4608_v43 }
 0xbf2   :  { %3297 = vmatmul.msk.bf16.gmra.mxu0 %vm143_vm2, %v4641_v45 }
 0xbf3   :  { %3313 = vmatmul.msk.bf16.gmra.mxu1 %vm143_vm2, %v4641_v45 }
 0xc02   :  { %3298 = vmatmul.msk.bf16.gmra.mxu0 %vm143_vm2, %v4655_v12 }
 0xc03   :  { %3314 = vmatmul.msk.bf16.gmra.mxu1 %vm143_vm2, %v4655_v12 }
 0xc2f   :  { %v1832_v36 = vpop.f32.mrf.mxu0 }
 0xc30   :  { %v1878_v21 = vpop.f32.mrf.mxu1  ;;  %v1833_v13 = vadd.f32 %v3509_v18, %v1832_v36  ;;  %v3513_v36 = vld [vmem:[%s5134_s29 + $0x3] ss:$0 sm:$0xff] }
 0xc31   :  { %v1879_v17 = vadd.f32 %v3510_v22, %v1878_v21 }
 0xc35   :  { %v1786_v54 = vpop.f32.mrf.mxu3 }
 0xc36   :  { %v1787_v47 = vadd.f32 %v3511_v60, %v1786_v54 }
 0xc37   :  { %v1834_v57 = vpop.f32.mrf.mxu0 }
 0xc38   :  { %v1880_v56 = vpop.f32.mrf.mxu1  ;;  %v1835_v33 = vadd.f32 %v3509_v18, %v1834_v57 }
 0xc39   :  { %v1881_v31 = vadd.f32 %v3510_v22, %v1880_v56 }
 0xc3a   :  { %v1896_v25 = vpack.c.bf16 %v1835_v33, %v1833_v13 }
 0xc3b   :  { %v2022_v37 = vpack.c.bf16 %v1881_v31, %v1879_v17 }
 0xc3c   :  { %v1909_v41 = vsel %vm657_vm10, %v1896_v25, 0 }
 0xc3d   :  { %v1788_v35 = vpop.f32.mrf.mxu3 }
 0xc3e   :  { %v1789_v38 = vadd.f32 %v3511_v60, %v1788_v35  ;;  %v4732_v35 = vld [vmem:[%s5087_s3 + $0x18] sm:$0xff] }
 0xc3f   :  { %v1837_v29 = vpop.f32.mrf.mxu0 }
 0xc40   :  { %v1883_v51 = vpop.f32.mrf.mxu1  ;;  %v1838_v30 = vadd.f32 %v3509_v18, %v1837_v29  ;;  %v1893_v16 = vpack.c.bf16 %v1789_v38, %v1787_v47  ;;  %v4746_v47 = vld [vmem:[%s5087_s3 + $0x28] sm:$0xff] }
 0xc41   :  { %v1884_v26 = vadd.f32 %v3510_v22, %v1883_v51 }
 0xc45   :  { %v1791_v27 = vpop.f32.mrf.mxu3 }
 0xc46   :  { %v1792_v62 = vadd.f32 %v3511_v60, %v1791_v27 }
 0xc47   :  { %v1839_v7 = vpop.f32.mrf.mxu0 }
 0xc48   :  { %v1885_v14 = vpop.f32.mrf.mxu1  ;;  %v1840_v4 = vadd.f32 %v3509_v18, %v1839_v7 }
 0xc49   :  { %v1886_v58 = vadd.f32 %v3510_v22, %v1885_v14 }
 0xc4a   :  { %v1897_v0 = vpack.c.bf16 %v1840_v4, %v1838_v30 }
 0xc4b   :  { %v2023_v32 = vpack.c.bf16 %v1886_v58, %v1884_v26  ;;  %v4711_v58 = vld [vmem:[%s5087_s3] sm:$0xff] }
 0xc4c   :  { %v1912_v40 = vsel %vm657_vm10, %v1897_v0, 0 }
 0xc4d   :  { %v1793_v49 = vpop.f32.mrf.mxu3 }
 0xc4e   :  { %v1794_v55 = vadd.f32 %v3511_v60, %v1793_v49 }
 0xc4f   :  { %v1842_v23 = vpop.f32.mrf.mxu0 }
 0xc50   :  { %v1888_v11 = vpop.f32.mrf.mxu1  ;;  %v1843_v39 = vadd.f32 %v3509_v18, %v1842_v23  ;;  %v1894_v10 = vpack.c.bf16 %v1794_v55, %v1792_v62  ;;  %v3514_v62 = vld [vmem:[%s5086_s14 + $0x3] ss:$0 sm:$0xff] }
 0xc51   :  { %v1889_v6 = vadd.f32 %v3510_v22, %v1888_v11 }
 0xc55   :  { %v1796_v5 = vpop.f32.mrf.mxu3 }
 0xc57   :  { %v1844_v3 = vpop.f32.mrf.mxu0 }
 0xc58   :  { %v1845_v50 = vadd.f32 %v3509_v18, %v1844_v3  ;;  %v1890_v19 = vpop.f32.mrf.mxu1  ;;  %v1797_v18 = vadd.f32 %v3511_v60, %v1796_v5 }
 0xc59   :  { %v1891_v48 = vadd.f32 %v3510_v22, %v1890_v19 }
 0xc5a   :  { %v1898_v59 = vpack.c.bf16 %v1845_v50, %v1843_v39 }
 0xc5b   :  { %v2024_v53 = vpack.c.bf16 %v1891_v48, %v1889_v6 }
 0xc5c   :  { %v1915_v1 = vsel %vm657_vm10, %v1898_v59, 0 }
 0xc5d   :  { %2039 = vmatpush.bf16.msra.mxu3 %v2024_v53  ;;  %1922 = vmatpush.bf16.xpose.msrb.mxu2 %v1915_v1  ;;  %v1798_v29 = vpop.f32.mrf.mxu3 }
 0xc5e   :  { %v1799_v23 = vadd.f32 %v3511_v60, %v1798_v29 }
 0xc60   :  { %v2141_v44 = vpop.f32.mrf.mxu1  ;;  %v1895_v3 = vpack.c.bf16 %v1799_v23, %v1797_v18 }
 0xc61   :  { %2040 = vmatpush.bf16.msra.mxu3 %v2023_v32  ;;  %v2142_v19 = vadd.f32 %v3513_v36, %v2141_v44  ;;  %v4725_v32 = vld [vmem:[%s5087_s3 + $0x10] sm:$0xff] }
 0xc65   :  { %2041 = vmatpush.bf16.msra.mxu3 %v2022_v37  ;;  %1923 = vmatpush.bf16.xpose.msrb.mxu2 %v1912_v40 }
 0xc68   :  { %v2143_v42 = vpop.f32.mrf.mxu1 }
 0xc69   :  { %v2144_v39 = vadd.f32 %v3513_v36, %v2143_v42  ;;  %v4739_v42 = vld [vmem:[%s5087_s3 + $0x20] sm:$0xff] }
 0xc6b   :  { %v2205_v54 = vpack.c.bf16 %v2144_v39, %v2142_v19 }
 0xc6d   :  { %1924 = vmatpush.bf16.xpose.msrb.mxu2 %v1909_v41  ;;  %v2218_v6 = vsel %vm657_vm10, %v2205_v54, 0 }
 0xc70   :  { %v2146_v15 = vpop.f32.mrf.mxu1 }
 0xc71   :  { %v2147_v11 = vadd.f32 %v3513_v36, %v2146_v15 }
 0xc74   :  { %3275 = vmatmul.msk.bf16.vlgmr.msrb.gmra.mxu2 %vm657_vm10, %v1893_v16 }
 0xc75   :  { %2184 = vmatpush.bf16.msra.mxu2 %v3468_v52 }
 0xc78   :  { %v2148_v2 = vpop.f32.mrf.mxu1 }
 0xc79   :  { %2185 = vmatpush.bf16.msra.mxu2 %v3467_v61  ;;  %v2149_v7 = vadd.f32 %v3513_v36, %v2148_v2 }
 0xc7b   :  { %v2206_v22 = vpack.c.bf16 %v2149_v7, %v2147_v11 }
 0xc7d   :  { %v2221_v50 = vsel %vm657_vm10, %v2206_v22, 0 }
 0xc80   :  { %v2151_v28 = vpop.f32.mrf.mxu1 }
 0xc81   :  { %v2152_v57 = vadd.f32 %v3513_v36, %v2151_v28 }
 0xc84   :  { %3276 = vmatmul.msk.bf16.gmra.mxu2 %vm657_vm10, %v1894_v10 }
 0xc88   :  { %v2153_v21 = vpop.f32.mrf.mxu1 }
 0xc89   :  { %v2154_v56 = vadd.f32 %v3513_v36, %v2153_v21 }
 0xc8b   :  { %v2207_v51 = vpack.c.bf16 %v2154_v56, %v2152_v57 }
 0xc8d   :  { %v2224_v14 = vsel %vm657_vm10, %v2207_v51, 0 }
 0xc8e   :  { %2231 = vmatpush.bf16.xpose.msrb.mxu3 %v2224_v14 }
 0xc94   :  { %3277 = vmatmul.msk.bf16.gmra.mxu2 %vm657_vm10, %v1895_v3 }
 0xc96   :  { %2232 = vmatpush.bf16.xpose.msrb.mxu3 %v2221_v50 }
 0xc9e   :  { %2233 = vmatpush.bf16.xpose.msrb.mxu3 %v2218_v6 }
 0xca4   :  { %3328 = vmatmul.msk.bf16.vlgmr.msra.gmra.mxu2 %vm143_vm2, %v4608_v43 }
 0xcb4   :  { %3329 = vmatmul.msk.bf16.gmra.mxu2 %vm143_vm2, %v4641_v45  ;;  %v4718_v45 = vld [vmem:[%s5087_s3 + $0x8] sm:$0xff] }
 0xcc4   :  { %3330 = vmatmul.msk.bf16.gmra.mxu2 %vm143_vm2, %v4655_v12 }
 0xcf7   :  { %v1926_v48 = vpop.f32.mrf.mxu2 }
 0xcf8   :  { %v1941_v59 = vmul.f32 0.25, %v1926_v48 }
 0xcfa   :  { %v1947_v53 = vadd.f32 %v4711_v58, %v1941_v59 }
 0xcfc   :  { %v1953_v4 = vsel %vm712_vm11, %v1947_v53, -inf }
 0xcfd   :  { %1954 = vmax.xlane.f32.xlu1 %v1953_v4 }
 0xcff   :  { %v1928_v1 = vpop.f32.mrf.mxu2 }
 0xd00   :  { %v1942_v43 = vmul.f32 0.25, %v1928_v1 }
 0xd02   :  { %v1948_v12 = vadd.f32 %v4718_v45, %v1942_v43 }
 0xd04   :  { %v1956_v26 = vsel %vm712_vm11, %v1948_v12, -inf }
 0xd05   :  { %1957 = vmax.xlane.f32.xlu0 %v1956_v26 }
 0xd07   :  { %v1931_v30 = vpop.f32.mrf.mxu2 }
 0xd08   :  { %v1943_v31 = vmul.f32 0.25, %v1931_v30 }
 0xd0a   :  { %v1949_v0 = vadd.f32 %v4725_v32, %v1943_v31 }
 0xd0c   :  { %v1959_v44 = vsel %vm712_vm11, %v1949_v0, -inf }
 0xd0d   :  { %1960 = vmax.xlane.f32.xlu2 %v1959_v44 }
 0xd0f   :  { %v1933_v17 = vpop.f32.mrf.mxu2 }
 0xd10   :  { %v1944_v37 = vmul.f32 0.25, %v1933_v17 }
 0xd12   :  { %v1950_v33 = vadd.f32 %v4732_v35, %v1944_v37 }
 0xd14   :  { %v1962_v40 = vsel %vm712_vm11, %v1950_v33, -inf }
 0xd15   :  { %1963 = vmax.xlane.f32.xlu1 %v1962_v40 }
 0xd17   :  { %v1936_v13 = vpop.f32.mrf.mxu2 }
 0xd18   :  { %v1945_v25 = vmul.f32 0.25, %v1936_v13 }
 0xd1a   :  { %v1951_v60 = vadd.f32 %v4739_v42, %v1945_v25 }
 0xd1c   :  { %v1965_v41 = vsel %vm712_vm11, %v1951_v60, -inf }
 0xd1d   :  { %1966 = vmax.xlane.f32.xlu0 %v1965_v41 }
 0xd1f   :  { %v1938_v27 = vpop.f32.mrf.mxu2 }
 0xd20   :  { %v1946_v38 = vmul.f32 0.25, %v1938_v27 }
 0xd22   :  { %v1952_v15 = vadd.f32 %v4746_v47, %v1946_v38 }
 0xd24   :  { %v1968_v16 = vsel %vm712_vm11, %v1952_v15, -inf }
 0xd25   :  { %1969 = vmax.xlane.f32.xlu2 %v1968_v16 }
 0xd27   :  { %v2187_v52 = vpop.f32.mrf.mxu2 }
 0xd28   :  { %v2188_v51 = vadd.f32 %v3514_v62, %v2187_v52 }
 0xd2f   :  { %v2189_v49 = vpop.f32.mrf.mxu2 }
 0xd30   :  { %v2190_v56 = vadd.f32 %v3514_v62, %v2189_v49 }
 0xd32   :  { %v2331_v7 = vpack.c.bf16 %v2190_v56, %v2188_v51 }
 0xd37   :  { %v2192_v2 = vpop.f32.mrf.mxu2 }
 0xd38   :  { %v2193_v57 = vadd.f32 %v3514_v62, %v2192_v2 }
 0xd3f   :  { %v2194_v55 = vpop.f32.mrf.mxu2 }
 0xd40   :  { %v2195_v36 = vadd.f32 %v3514_v62, %v2194_v55 }
 0xd42   :  { %v2332_v29 = vpack.c.bf16 %v2195_v36, %v2193_v57  ;;  %v2095_v57 = vpop.f32.mrf.mxu0 }
 0xd47   :  { %v2197_v61 = vpop.f32.mrf.mxu2 }
 0xd48   :  { %v2198_v5 = vadd.f32 %v3514_v62, %v2197_v61 }
 0xd4f   :  { %v2199_v28 = vpop.f32.mrf.mxu2 }
 0xd50   :  { %v2200_v10 = vadd.f32 %v3514_v62, %v2199_v28 }
 0xd52   :  { %v2333_v21 = vpack.c.bf16 %v2200_v10, %v2198_v5 }
 0xd54   :  { %2348 = vmatpush.bf16.msra.mxu0 %v2333_v21 }
 0xd58   :  { %2349 = vmatpush.bf16.msra.mxu0 %v2332_v29 }
 0xd5c   :  { %2350 = vmatpush.bf16.msra.mxu0 %v2331_v7 }
 0xd70   :  { %v1955_v14 = vpop.xlane.xlu1 %1954 }
 0xd71   :  { %v1971_v23 = vsub.f32 %v1947_v53, %v1955_v14 }
 0xd73   :  { %v1977_v11 = vmul.f32 1.442695, %v1971_v23  ;;  %v2097_v23 = vpop.f32.mrf.mxu0 }
 0xd75   :  { %3633 = vpow2.f32 %v1977_v11  ;;  %v3512_v11 = vld [vmem:[%s5135_s1 + $0x3] ss:$0 sm:$0xff] }
 0xd78   :  { %v1958_v18 = vpop.xlane.xlu0 %1957 }
 0xd79   :  { %v1972_v22 = vsub.f32 %v1948_v12, %v1958_v18 }
 0xd7b   :  { %v3634_v3 = vpop.eup %3633  ;;  %v1979_v39 = vmul.f32 1.442695, %v1972_v22  ;;  %v2100_v18 = vpop.f32.mrf.mxu0  ;;  %v2098_v22 = vadd.f32 %v3512_v11, %v2097_v23 }
 0xd7c   :  { %v1989_v50 = vsel %vm712_vm11, %v3634_v3, 0.0 }
 0xd7d   :  { %3635 = vpow2.f32 %v1979_v39  ;;  %1990 = vadd.xlane.f32.xlu1 %v1989_v50 }
 0xd80   :  { %v1961_v19 = vpop.xlane.xlu2 %1960 }
 0xd81   :  { %v1973_v54 = vsub.f32 %v1949_v0, %v1961_v19 }
 0xd83   :  { %v3636_v6 = vpop.eup %3635  ;;  %v1981_v48 = vmul.f32 1.442695, %v1973_v54  ;;  %v2102_v50 = vpop.f32.mrf.mxu0  ;;  %v2101_v54 = vadd.f32 %v3512_v11, %v2100_v18 }
 0xd84   :  { %v1992_v59 = vsel %vm712_vm11, %v3636_v6, 0.0  ;;  %v2103_v19 = vadd.f32 %v3512_v11, %v2102_v50 }
 0xd85   :  { %3637 = vpow2.f32 %v1981_v48  ;;  %1993 = vadd.xlane.f32.xlu0 %v1992_v59 }
 0xd86   :  { %v2203_v48 = vpack.c.bf16 %v2103_v19, %v2101_v54 }
 0xd88   :  { %v1964_v4 = vpop.xlane.xlu1 %1963 }
 0xd89   :  { %v1974_v53 = vsub.f32 %v1950_v33, %v1964_v4 }
 0xd8b   :  { %v3638_v1 = vpop.eup %3637  ;;  %v1983_v43 = vmul.f32 1.442695, %v1974_v53 }
 0xd8c   :  { %v1995_v12 = vsel %vm712_vm11, %v3638_v1, 0.0 }
 0xd8d   :  { %3639 = vpow2.f32 %v1983_v43  ;;  %1996 = vadd.xlane.f32.xlu2 %v1995_v12  ;;  %v3462_v43 = vld [vmem:[%s5088_s15 + $0x10] sm:$0xff] }
 0xd8e   :  { %2434 = vmatpush.bf16.msrb.mxu2 %v3462_v43 }
 0xd90   :  { %v1967_v26 = vpop.xlane.xlu0 %1966 }
 0xd91   :  { %v1975_v30 = vsub.f32 %v1951_v60, %v1967_v26 }
 0xd93   :  { %v3640_v31 = vpop.eup %3639  ;;  %v1985_v44 = vmul.f32 1.442695, %v1975_v30 }
 0xd94   :  { %v1998_v0 = vsel %vm712_vm11, %v3640_v31, 0.0 }
 0xd95   :  { %3641 = vpow2.f32 %v1985_v44  ;;  %1999 = vadd.xlane.f32.xlu1 %v1998_v0 }
 0xd98   :  { %v1970_v17 = vpop.xlane.xlu2 %1969 }
 0xd99   :  { %v1976_v37 = vsub.f32 %v1952_v15, %v1970_v17 }
 0xd9b   :  { %v3642_v40 = vpop.eup %3641  ;;  %v1987_v13 = vmul.f32 1.442695, %v1976_v37 }
 0xd9c   :  { %v2001_v33 = vsel %vm712_vm11, %v3642_v40, 0.0 }
 0xd9d   :  { %3643 = vpow2.f32 %v1987_v13  ;;  %2002 = vadd.xlane.f32.xlu0 %v2001_v33 }
 0xda3   :  { %v3644_v25 = vpop.eup %3643 }
 0xda4   :  { %v2004_v41 = vsel %vm712_vm11, %v3644_v25, 0.0 }
 0xda5   :  { %2005 = vadd.xlane.f32.xlu2 %v2004_v41 }
 0xdf0   :  { %v1991_v27 = vpop.xlane.xlu1 %1990 }
 0xdf1   :  { %3645 = vrcp.f32 %v1991_v27 }
 0xdf7   :  { %v3646_v38 = vpop.eup %3645 }
 0xdf8   :  { %v1994_v60 = vpop.xlane.xlu0 %1993  ;;  %v2013_v52 = vmul.f32 %v3646_v38, %v3634_v3  ;;  %v2096_v3 = vadd.f32 %v3512_v11, %v2095_v57 }
 0xdf9   :  { %3647 = vrcp.f32 %v1994_v60 }
 0xdfa   :  { %v2202_v39 = vpack.c.bf16 %v2098_v22, %v2096_v3 }
 0xdff   :  { %v3648_v16 = vpop.eup %3647 }
 0xe00   :  { %v2014_v49 = vmul.f32 %v3648_v16, %v3636_v6  ;;  %v1997_v15 = vpop.xlane.xlu2 %1996  ;;  %v2105_v6 = vpop.f32.mrf.mxu0 }
 0xe01   :  { %3649 = vrcp.f32 %v1997_v15  ;;  %v2106_v53 = vadd.f32 %v3512_v11, %v2105_v6 }
 0xe02   :  { %v2019_v2 = vpack.c.bf16 %v2014_v49, %v2013_v52 }
 0xe04   :  { %3278 = vmatmul.msk.bf16.vlgmr.msra.gmra.mxu3 %vm712_vm11, %v2019_v2 }
 0xe07   :  { %v3650_v61 = vpop.eup %3649 }
 0xe08   :  { %v2000_v55 = vpop.xlane.xlu1 %1999  ;;  %v2015_v28 = vmul.f32 %v3650_v61, %v3638_v1  ;;  %v2107_v59 = vpop.f32.mrf.mxu0 }
 0xe09   :  { %3651 = vrcp.f32 %v2000_v55  ;;  %v2108_v4 = vadd.f32 %v3512_v11, %v2107_v59 }
 0xe0b   :  { %v2204_v1 = vpack.c.bf16 %v2108_v4, %v2106_v53 }
 0xe0f   :  { %v3652_v62 = vpop.eup %3651 }
 0xe10   :  { %v2016_v5 = vmul.f32 %v3652_v62, %v3640_v31  ;;  %v2003_v36 = vpop.xlane.xlu0 %2002 }
 0xe11   :  { %3653 = vrcp.f32 %v2003_v36 }
 0xe12   :  { %v2020_v10 = vpack.c.bf16 %v2016_v5, %v2015_v28 }
 0xe14   :  { %3279 = vmatmul.msk.bf16.gmra.mxu3 %vm712_vm11, %v2020_v10 }
 0xe17   :  { %v3654_v56 = vpop.eup %3653 }
 0xe18   :  { %v2006_v21 = vpop.xlane.xlu2 %2005  ;;  %v2017_v51 = vmul.f32 %v3654_v56, %v3642_v40 }
 0xe19   :  { %3655 = vrcp.f32 %v2006_v21 }
 0xe1f   :  { %v3656_v29 = vpop.eup %3655 }
 0xe20   :  { %v2018_v7 = vmul.f32 %v3656_v29, %v3644_v25 }
 0xe22   :  { %v2021_v14 = vpack.c.bf16 %v2018_v7, %v2017_v51 }
 0xe24   :  { %3280 = vmatmul.msk.bf16.gmra.mxu3 %vm712_vm11, %v2021_v14 }
 0xe34   :  { %3331 = vmatmul.msk.bf16.vlgmr.msrb.gmra.mxu3 %vm657_vm10, %v2202_v39 }
 0xe44   :  { %3332 = vmatmul.msk.bf16.gmra.mxu3 %vm657_vm10, %v2203_v48 }
 0xe54   :  { %3333 = vmatmul.msk.bf16.gmra.mxu3 %vm657_vm10, %v2204_v1 }
 0xe87   :  { %v2043_v12 = vpop.f32.mrf.mxu3 }
 0xe8f   :  { %v2045_v26 = vpop.f32.mrf.mxu3 }
 0xe90   :  { %v2058_v30 = vpack.c.bf16 %v2045_v26, %v2043_v12 }
 0xe92   :  { %3350 = vmatmul.msk.bf16.vlgmr.msrb.gmra.mxu2 %vm657_vm10, %v2058_v30 }
 0xe97   :  { %v2048_v31 = vpop.f32.mrf.mxu3 }
 0xe9f   :  { %v2050_v44 = vpop.f32.mrf.mxu3 }
 0xea0   :  { %v2059_v0 = vpack.c.bf16 %v2050_v44, %v2048_v31 }
 0xea2   :  { %3351 = vmatmul.msk.bf16.gmra.mxu2 %vm657_vm10, %v2059_v0 }
 0xea7   :  { %v2053_v17 = vpop.f32.mrf.mxu3 }
 0xeaf   :  { %v2055_v37 = vpop.f32.mrf.mxu3 }
 0xeb0   :  { %v2060_v40 = vpack.c.bf16 %v2055_v37, %v2053_v17 }
 0xeb2   :  { %3352 = vmatmul.msk.bf16.gmra.mxu2 %vm657_vm10, %v2060_v40 }
 0xeb7   :  { %v2235_v13 = vpop.f32.mrf.mxu3 }
 0xeb8   :  { %v2250_v33 = vmul.f32 0.25, %v2235_v13 }
 0xeba   :  { %v2256_v25 = vadd.f32 %v4711_v58, %v2250_v33 }
 0xebc   :  { %v2262_v41 = vsel %vm712_vm11, %v2256_v25, -inf }
 0xebd   :  { %2263 = vmax.xlane.f32.xlu1 %v2262_v41 }
 0xebf   :  { %v2237_v27 = vpop.f32.mrf.mxu3 }
 0xec0   :  { %v2251_v60 = vmul.f32 0.25, %v2237_v27 }
 0xec2   :  { %v2257_v38 = vadd.f32 %v4718_v45, %v2251_v60  ;;  %v3469_v60 = vld [vmem:[%s5088_s15 + $0x18] sm:$0xff] }
 0xec3   :  { %2395 = vmatpush.bf16.msra.mxu1 %v3469_v60 }
 0xec4   :  { %v2265_v16 = vsel %vm712_vm11, %v2257_v38, -inf }
 0xec5   :  { %2266 = vmax.xlane.f32.xlu0 %v2265_v16 }
 0xec7   :  { %v2240_v52 = vpop.f32.mrf.mxu3 }
 0xec8   :  { %v2252_v49 = vmul.f32 0.25, %v2240_v52 }
 0xeca   :  { %v2258_v2 = vadd.f32 %v4725_v32, %v2252_v49 }
 0xecc   :  { %v2268_v15 = vsel %vm712_vm11, %v2258_v2, -inf }
 0xecd   :  { %2269 = vmax.xlane.f32.xlu2 %v2268_v15 }
 0xecf   :  { %v2242_v55 = vpop.f32.mrf.mxu3 }
 0xed0   :  { %v2253_v61 = vmul.f32 0.25, %v2242_v55 }
 0xed2   :  { %v2259_v58 = vadd.f32 %v4732_v35, %v2253_v61 }
 0xed4   :  { %v2271_v62 = vsel %vm712_vm11, %v2259_v58, -inf }
 0xed5   :  { %2272 = vmax.xlane.f32.xlu1 %v2271_v62 }
 0xed7   :  { %v2245_v28 = vpop.f32.mrf.mxu3 }
 0xed8   :  { %v2254_v5 = vmul.f32 0.25, %v2245_v28 }
 0xeda   :  { %v2260_v45 = vadd.f32 %v4739_v42, %v2254_v5 }
 0xedc   :  { %v2274_v10 = vsel %vm712_vm11, %v2260_v45, -inf }
 0xedd   :  { %2275 = vmax.xlane.f32.xlu0 %v2274_v10 }
 0xedf   :  { %v2247_v36 = vpop.f32.mrf.mxu3 }
 0xee0   :  { %v2255_v21 = vmul.f32 0.25, %v2247_v36 }
 0xee2   :  { %v2261_v32 = vadd.f32 %v4746_v47, %v2255_v21 }
 0xee4   :  { %v2277_v57 = vsel %vm712_vm11, %v2261_v32, -inf }
 0xee5   :  { %2278 = vmax.xlane.f32.xlu2 %v2277_v57 }
 0xf30   :  { %v2264_v56 = vpop.xlane.xlu1 %2263 }
 0xf31   :  { %v2280_v29 = vsub.f32 %v2256_v25, %v2264_v56 }
 0xf33   :  { %v2286_v35 = vmul.f32 1.442695, %v2280_v29 }
 0xf35   :  { %3657 = vpow2.f32 %v2286_v35 }
 0xf38   :  { %v2267_v51 = vpop.xlane.xlu0 %2266 }
 0xf39   :  { %v2281_v7 = vsub.f32 %v2257_v38, %v2267_v51 }
 0xf3b   :  { %v3658_v14 = vpop.eup %3657  ;;  %v2288_v23 = vmul.f32 1.442695, %v2281_v7  ;;  %v2436_v7 = vpop.f32.mrf.mxu2 }
 0xf3c   :  { %v2298_v42 = vsel %vm712_vm11, %v3658_v14, 0.0 }
 0xf3d   :  { %3659 = vpow2.f32 %v2288_v23  ;;  %2299 = vadd.xlane.f32.xlu1 %v2298_v42 }
 0xf40   :  { %v2270_v11 = vpop.xlane.xlu2 %2269 }
 0xf41   :  { %v2282_v18 = vsub.f32 %v2258_v2, %v2270_v11  ;;  %v3515_v11 = vld [vmem:[%s5089_s16 + $0x1] ss:$0 sm:$0xff] }
 0xf43   :  { %v3660_v22 = vpop.eup %3659  ;;  %v2290_v3 = vmul.f32 1.442695, %v2282_v18 }
 0xf44   :  { %v2301_v47 = vsel %vm712_vm11, %v3660_v22, 0.0 }
 0xf45   :  { %3661 = vpow2.f32 %v2290_v3  ;;  %2302 = vadd.xlane.f32.xlu0 %v2301_v47 }
 0xf48   :  { %v2273_v39 = vpop.xlane.xlu1 %2272 }
 0xf49   :  { %v2283_v50 = vsub.f32 %v2259_v58, %v2273_v39 }
 0xf4b   :  { %v3662_v19 = vpop.eup %3661  ;;  %v2292_v54 = vmul.f32 1.442695, %v2283_v50 }
 0xf4c   :  { %v2304_v6 = vsel %vm712_vm11, %v3662_v19, 0.0 }
 0xf4d   :  { %3663 = vpow2.f32 %v2292_v54  ;;  %2305 = vadd.xlane.f32.xlu2 %v2304_v6 }
 0xf50   :  { %v2276_v48 = vpop.xlane.xlu0 %2275 }
 0xf51   :  { %v2284_v59 = vsub.f32 %v2260_v45, %v2276_v48 }
 0xf53   :  { %v3664_v4 = vpop.eup %3663  ;;  %v2294_v53 = vmul.f32 1.442695, %v2284_v59 }
 0xf54   :  { %v2307_v1 = vsel %vm712_vm11, %v3664_v4, 0.0 }
 0xf55   :  { %3665 = vpow2.f32 %v2294_v53  ;;  %2308 = vadd.xlane.f32.xlu1 %v2307_v1 }
 0xf58   :  { %v2279_v43 = vpop.xlane.xlu2 %2278 }
 0xf59   :  { %v2285_v12 = vsub.f32 %v2261_v32, %v2279_v43 }
 0xf5b   :  { %v3666_v26 = vpop.eup %3665  ;;  %v2296_v30 = vmul.f32 1.442695, %v2285_v12 }
 0xf5c   :  { %v2310_v31 = vsel %vm712_vm11, %v3666_v26, 0.0 }
 0xf5d   :  { %3667 = vpow2.f32 %v2296_v30  ;;  %2311 = vadd.xlane.f32.xlu0 %v2310_v31 }
 0xf63   :  { %v3668_v44 = vpop.eup %3667 }
 0xf64   :  { %v2313_v0 = vsel %vm712_vm11, %v3668_v44, 0.0 }
 0xf65   :  { %2314 = vadd.xlane.f32.xlu2 %v2313_v0 }
 0xfb0   :  { %v2300_v17 = vpop.xlane.xlu1 %2299 }
 0xfb1   :  { %3669 = vrcp.f32 %v2300_v17 }
 0xfb7   :  { %v3670_v40 = vpop.eup %3669 }
 0xfb8   :  { %v2303_v37 = vpop.xlane.xlu0 %2302  ;;  %v2322_v33 = vmul.f32 %v3670_v40, %v3658_v14  ;;  %v2438_v14 = vpop.f32.mrf.mxu2 }
 0xfb9   :  { %3671 = vrcp.f32 %v2303_v37 }
 0xfbf   :  { %v3672_v13 = vpop.eup %3671 }
 0xfc0   :  { %v2323_v25 = vmul.f32 %v3672_v13, %v3660_v22  ;;  %v2306_v27 = vpop.xlane.xlu2 %2305  ;;  %v2441_v50 = vpop.f32.mrf.mxu2 }
 0xfc1   :  { %3673 = vrcp.f32 %v2306_v27 }
 0xfc2   :  { %v2328_v41 = vpack.c.bf16 %v2323_v25, %v2322_v33 }
 0xfc4   :  { %3334 = vmatmul.msk.bf16.vlgmr.msra.gmra.mxu0 %vm712_vm11, %v2328_v41 }
 0xfc7   :  { %v3674_v16 = vpop.eup %3673 }
 0xfc8   :  { %v2309_v38 = vpop.xlane.xlu1 %2308  ;;  %v2324_v49 = vmul.f32 %v3674_v16, %v3662_v19 }
 0xfc9   :  { %3675 = vrcp.f32 %v2309_v38 }
 0xfcf   :  { %v3676_v52 = vpop.eup %3675 }
 0xfd0   :  { %v2325_v2 = vmul.f32 %v3676_v52, %v3664_v4  ;;  %v2312_v55 = vpop.xlane.xlu0 %2311  ;;  %v2443_v4 = vpop.f32.mrf.mxu2 }
 0xfd1   :  { %3677 = vrcp.f32 %v2312_v55 }
 0xfd2   :  { %v2329_v15 = vpack.c.bf16 %v2325_v2, %v2324_v49 }
 0xfd4   :  { %3335 = vmatmul.msk.bf16.gmra.mxu0 %vm712_vm11, %v2329_v15 }
 0xfd7   :  { %v3678_v58 = vpop.eup %3677 }
 0xfd8   :  { %v2315_v61 = vpop.xlane.xlu2 %2314  ;;  %v2326_v28 = vmul.f32 %v3678_v58, %v3666_v26  ;;  %v2446_v30 = vpop.f32.mrf.mxu2 }
 0xfd9   :  { %3679 = vrcp.f32 %v2315_v61 }
 0xfdf   :  { %v3680_v62 = vpop.eup %3679 }
 0xfe0   :  { %v2327_v5 = vmul.f32 %v3680_v62, %v3668_v44  ;;  %v2448_v40 = vpop.f32.mrf.mxu2 }
 0xfe2   :  { %v2330_v45 = vpack.c.bf16 %v2327_v5, %v2326_v28 }
 0xfe4   :  { %3336 = vmatmul.msk.bf16.gmra.mxu0 %vm712_vm11, %v2330_v45 }
0x1041   :  { %v2352_v10 = vpop.f32.mrf.mxu0 }
0x1049   :  { %v2354_v36 = vpop.f32.mrf.mxu0 }
0x104a   :  { %v2367_v21 = vpack.c.bf16 %v2354_v36, %v2352_v10 }
0x104c   :  { %3343 = vmatmul.msk.bf16.vlgmr.msra.gmra.mxu1 %vm657_vm10, %v2367_v21 }
0x1051   :  { %v2357_v32 = vpop.f32.mrf.mxu0 }
0x1059   :  { %v2359_v57 = vpop.f32.mrf.mxu0 }
0x105a   :  { %v2368_v56 = vpack.c.bf16 %v2359_v57, %v2357_v32 }
0x105c   :  { %3344 = vmatmul.msk.bf16.gmra.mxu1 %vm657_vm10, %v2368_v56 }
0x1061   :  { %v2362_v29 = vpop.f32.mrf.mxu0 }
0x1069   :  { %v2364_v35 = vpop.f32.mrf.mxu0 }
0x106a   :  { %v2369_v51 = vpack.c.bf16 %v2364_v35, %v2362_v29 }
0x106c   :  { %3345 = vmatmul.msk.bf16.gmra.mxu1 %vm657_vm10, %v2369_v51 }
0x10c9   :  { %v2397_v23 = vpop.f32.mrf.mxu1 }
0x10ca   :  { %v2437_v42 = vadd.f32 %v2436_v7, %v2397_v23 }
0x10cc   :  { %v2451_v18 = vadd.f32 %v2437_v42, %v4498_v63 }
0x10ce   :  { %v4805_v22 = vadd.f32 %v3515_v11, %v2451_v18 }
0x10d0   :  { %v2472_v3 = vsel %vm143_vm2, %v4805_v22, 0.0 }
0x10d1   :  { %2473 = vadd.xlane.f32.xlu1 %v2472_v3  ;;  %v2399_v47 = vpop.f32.mrf.mxu1 }
0x10d2   :  { %v2439_v39 = vadd.f32 %v2438_v14, %v2399_v47 }
0x10d4   :  { %v2452_v19 = vadd.f32 %v2439_v39, %v4503_v9  ;;  %v3470_v39 = vld [vmem:[%s5093_s19 + $0x10] sm:$0xff] }
0x10d6   :  { %v4810_v54 = vadd.f32 %v3515_v11, %v2452_v19 }
0x10d8   :  { %v2475_v6 = vsel %vm143_vm2, %v4810_v54, 0.0 }
0x10d9   :  { %2476 = vadd.xlane.f32.xlu0 %v2475_v6  ;;  %v2402_v48 = vpop.f32.mrf.mxu1 }
0x10da   :  { %v2442_v59 = vadd.f32 %v2441_v50, %v2402_v48 }
0x10dc   :  { %v2453_v63 = vadd.f32 %v2442_v59, %v4508_v20 }
0x10de   :  { %v4815_v53 = vadd.f32 %v3515_v11, %v2453_v63 }
0x10e0   :  { %v2478_v1 = vsel %vm143_vm2, %v4815_v53, 0.0 }
0x10e1   :  { %2479 = vadd.xlane.f32.xlu2 %v2478_v1  ;;  %v2404_v43 = vpop.f32.mrf.mxu1 }
0x10e2   :  { %v2444_v12 = vadd.f32 %v2443_v4, %v2404_v43 }
0x10e4   :  { %v2454_v9 = vadd.f32 %v2444_v12, %v4513_v34 }
0x10e6   :  { %v4820_v26 = vadd.f32 %v3515_v11, %v2454_v9 }
0x10e8   :  { %v2481_v31 = vsel %vm143_vm2, %v4820_v26, 0.0 }
0x10e9   :  { %2482 = vadd.xlane.f32.xlu1 %v2481_v31  ;;  %v2407_v44 = vpop.f32.mrf.mxu1 }
0x10ea   :  { %v2447_v20 = vadd.f32 %v2446_v30, %v2407_v44 }
0x10ec   :  { %v2455_v0 = vadd.f32 %v2447_v20, %v4518_v24 }
0x10ee   :  { %v4825_v17 = vadd.f32 %v3515_v11, %v2455_v0 }
0x10f0   :  { %v2484_v37 = vsel %vm143_vm2, %v4825_v17, 0.0 }
0x10f1   :  { %v2409_v13 = vpop.f32.mrf.mxu1  ;;  %2485 = vadd.xlane.f32.xlu0 %v2484_v37 }
0x10f2   :  { %v2449_v34 = vadd.f32 %v2448_v40, %v2409_v13 }
0x10f4   :  { %v2456_v33 = vadd.f32 %v2449_v34, %v4523_v8 }
0x10f6   :  { %v4830_v25 = vadd.f32 %v3515_v11, %v2456_v33  ;;  %v3471_v11 = vld [vmem:[%s5093_s19 + $0x18] sm:$0xff] }
0x10f7   :  { %2662 = vmatpush.bf16.msra.mxu3 %v3471_v11 }
0x10f8   :  { %v2487_v41 = vsel %vm143_vm2, %v4830_v25, 0.0 }
0x10f9   :  { %2488 = vadd.xlane.f32.xlu2 %v2487_v41  ;;  %v4889_v41 = vld [vmem:[%s5090_s17 + $0x1] ss:$0 sm:$0xff] }
0x10fb   :  { %2663 = vmatpush.bf16.msra.mxu3 %v3470_v39 }
0x1144   :  { %v2474_v27 = vpop.xlane.xlu1 %2473 }
0x1145   :  { %v2490_v24 = vmul.f32 %v2474_v27, %v3954_v46 }
0x1147   :  { %v4836_v60 = vsub.f32 %v4805_v22, %v2490_v24 }
0x1149   :  { %v2502_v38 = vmul.f32 %v4836_v60, %v4836_v60 }
0x114b   :  { %v2508_v16 = vsel %vm143_vm2, %v2502_v38, 0.0 }
0x114c   :  { %v2477_v52 = vpop.xlane.xlu0 %2476  ;;  %2509 = vadd.xlane.f32.xlu1 %v2508_v16 }
0x114d   :  { %v2491_v8 = vmul.f32 %v2477_v52, %v3954_v46 }
0x114f   :  { %v4843_v49 = vsub.f32 %v4810_v54, %v2491_v8 }
0x1151   :  { %v2503_v2 = vmul.f32 %v4843_v49, %v4843_v49 }
0x1153   :  { %v2511_v15 = vsel %vm143_vm2, %v2503_v2, 0.0  ;;  %v4895_v2 = vld [vmem:[%s5091_s18 + $0x1] ss:$0 sm:$0xff] }
0x1154   :  { %v2480_v55 = vpop.xlane.xlu2 %2479  ;;  %2512 = vadd.xlane.f32.xlu0 %v2511_v15 }
0x1155   :  { %v2492_v61 = vmul.f32 %v2480_v55, %v3954_v46 }
0x1157   :  { %v4850_v58 = vsub.f32 %v4815_v53, %v2492_v61 }
0x1159   :  { %v2504_v62 = vmul.f32 %v4850_v58, %v4850_v58 }
0x115b   :  { %v2514_v28 = vsel %vm143_vm2, %v2504_v62, 0.0 }
0x115c   :  { %v2483_v5 = vpop.xlane.xlu1 %2482  ;;  %2515 = vadd.xlane.f32.xlu2 %v2514_v28 }
0x115d   :  { %v2493_v45 = vmul.f32 %v2483_v5, %v3954_v46 }
0x115f   :  { %v4857_v10 = vsub.f32 %v4820_v26, %v2493_v45 }
0x1161   :  { %v2505_v36 = vmul.f32 %v4857_v10, %v4857_v10 }
0x1163   :  { %v2517_v21 = vsel %vm143_vm2, %v2505_v36, 0.0 }
0x1164   :  { %2518 = vadd.xlane.f32.xlu1 %v2517_v21  ;;  %v2486_v32 = vpop.xlane.xlu0 %2485 }
0x1165   :  { %v2494_v57 = vmul.f32 %v2486_v32, %v3954_v46 }
0x1167   :  { %v4864_v56 = vsub.f32 %v4825_v17, %v2494_v57 }
0x1169   :  { %v2506_v29 = vmul.f32 %v4864_v56, %v4864_v56 }
0x116b   :  { %v2520_v35 = vsel %vm143_vm2, %v2506_v29, 0.0 }
0x116c   :  { %v2489_v51 = vpop.xlane.xlu2 %2488  ;;  %2521 = vadd.xlane.f32.xlu0 %v2520_v35 }
0x116d   :  { %v2495_v7 = vmul.f32 %v2489_v51, %v3954_v46 }
0x116f   :  { %v4871_v14 = vsub.f32 %v4830_v25, %v2495_v7 }
0x1171   :  { %v2507_v23 = vmul.f32 %v4871_v14, %v4871_v14 }
0x1173   :  { %v2523_v42 = vsel %vm143_vm2, %v2507_v23, 0.0 }
0x1174   :  { %2524 = vadd.xlane.f32.xlu2 %v2523_v42 }
0x11bf   :  { %v2510_v18 = vpop.xlane.xlu1 %2509 }
0x11c0   :  { %v2526_v3 = vmul.f32 %v2510_v18, %v3954_v46 }
0x11c2   :  { %v2532_v47 = vadd.f32 1e-05, %v2526_v3 }
0x11c4   :  { %3681 = vrsqrt.f32 %v2532_v47  ;;  %vm2544_vm11 = vweird.f32 %v2532_v47 }
0x11c7   :  { %v2513_v50 = vpop.xlane.xlu0 %2512 }
0x11c8   :  { %v2527_v19 = vmul.f32 %v2513_v50, %v3954_v46 }
0x11ca   :  { %v3682_v6 = vpop.eup %3681  ;;  %v2533_v48 = vadd.f32 1e-05, %v2527_v19 }
0x11cb   :  { %v2539_v59 = vmul.f32 %v3682_v6, %v2532_v47  ;;  %vm2545_vm10 = vweird.f32 %v3682_v6 }
0x11cc   :  { %3683 = vrsqrt.f32 %v2533_v48  ;;  %vm2546_vm12 = vmor %vm2544_vm11, %vm2545_vm10  ;;  %vm2554_vm14 = vweird.f32 %v2533_v48 }
0x11cd   :  { %v2540_v63 = vmul.f32 %v3682_v6, %v2539_v59 }
0x11cf   :  { %v2541_v4 = vmul.f32 0.5, %v2540_v63  ;;  %v2516_v1 = vpop.xlane.xlu2 %2515 }
0x11d0   :  { %v2528_v43 = vmul.f32 %v2516_v1, %v3954_v46 }
0x11d1   :  { %v2542_v12 = vsub.f32 1.5, %v2541_v4 }
0x11d2   :  { %v3684_v9 = vpop.eup %3683  ;;  %v2534_v30 = vadd.f32 1e-05, %v2528_v43 }
0x11d3   :  { %v2543_v31 = vmul.f32 %v3682_v6, %v2542_v12  ;;  %v2549_v44 = vmul.f32 %v3684_v9, %v2533_v48  ;;  %vm2555_vm13 = vweird.f32 %v3684_v9 }
0x11d4   :  { %3685 = vrsqrt.f32 %v2534_v30  ;;  %vm2556_vm15 = vmor %vm2554_vm14, %vm2555_vm13  ;;  %vm2564_vm3 = vweird.f32 %v2534_v30 }
0x11d5   :  { %v2550_v20 = vmul.f32 %v3684_v9, %v2549_v44  ;;  %v2547_v0 = vsel %vm2546_vm12, %v3682_v6, %v2543_v31 }
0x11d6   :  { %v2598_v27 = vmul.f32 %v2547_v0, %v4836_v60 }
0x11d7   :  { %v2551_v37 = vmul.f32 0.5, %v2550_v20  ;;  %v2519_v40 = vpop.xlane.xlu1 %2518 }
0x11d8   :  { %v2529_v13 = vmul.f32 %v2519_v40, %v3954_v46  ;;  %v2607_v15 = vmul.f32 %v4889_v41, %v2598_v27 }
0x11d9   :  { %v2552_v34 = vsub.f32 1.5, %v2551_v37 }
0x11da   :  { %v3686_v33 = vpop.eup %3685  ;;  %v2535_v24 = vadd.f32 1e-05, %v2529_v13  ;;  %v2616_v36 = vadd.f32 %v4895_v2, %v2607_v15  ;;  %v3473_v15 = vld [vmem:[%s5095_s21 + $0x48] sm:$0xff] }
0x11db   :  { %v2553_v38 = vmul.f32 %v3684_v9, %v2552_v34  ;;  %v2559_v16 = vmul.f32 %v3686_v33, %v2534_v30  ;;  %vm2565_vm0 = vweird.f32 %v3686_v33 }
0x11dc   :  { %3687 = vrsqrt.f32 %v2535_v24  ;;  %vm2566_vm4 = vmor %vm2564_vm3, %vm2565_vm0  ;;  %vm2574_vm6 = vweird.f32 %v2535_v24 }
0x11dd   :  { %v2557_v52 = vsel %vm2556_vm15, %v3684_v9, %v2553_v38  ;;  %v2560_v8 = vmul.f32 %v3686_v33, %v2559_v16 }
0x11de   :  { %v2599_v55 = vmul.f32 %v2557_v52, %v4843_v49  ;;  %v3476_v52 = vld [vmem:[%s5095_s21 + $0x60] sm:$0xff] }
0x11df   :  { %v2561_v61 = vmul.f32 0.5, %v2560_v8  ;;  %v2522_v62 = vpop.xlane.xlu0 %2521  ;;  %v3475_v8 = vld [vmem:[%s5095_s21 + $0x58] sm:$0xff] }
0x11e0   :  { %v2608_v60 = vmul.f32 %v4889_v41, %v2599_v55  ;;  %v2530_v28 = vmul.f32 %v2522_v62, %v3954_v46  ;;  %v3518_v55 = vld [vmem:[%s5092_s20 + $0x1] ss:$0 sm:$0xff] }
0x11e1   :  { %v2562_v5 = vsub.f32 1.5, %v2561_v61  ;;  %v3472_v61 = vld [vmem:[%s5095_s21 + $0x40] sm:$0xff] }
0x11e2   :  { %v3688_v45 = vpop.eup %3687  ;;  %v2617_v21 = vadd.f32 %v4895_v2, %v2608_v60  ;;  %v2536_v32 = vadd.f32 1e-05, %v2530_v28 }
0x11e3   :  { %v2563_v57 = vmul.f32 %v3686_v33, %v2562_v5  ;;  %v2569_v29 = vmul.f32 %v3688_v45, %v2535_v24  ;;  %vm2575_vm5 = vweird.f32 %v3688_v45 }
0x11e4   :  { %v2622_v35 = vpack.c.bf16 %v2617_v21, %v2616_v36  ;;  %3689 = vrsqrt.f32 %v2536_v32  ;;  %vm2576_vm7 = vmor %vm2574_vm6, %vm2575_vm5  ;;  %vm2584_vm9 = vweird.f32 %v2536_v32 }
0x11e5   :  { %v2570_v49 = vmul.f32 %v3688_v45, %v2569_v29  ;;  %v2567_v51 = vsel %vm2566_vm4, %v3686_v33, %v2563_v57 }
0x11e6   :  { %3369 = vmatmul.msk.bf16.vlgmr.msra.gmra.mxu3 %vm143_vm2, %v2622_v35  ;;  %v2600_v3 = vmul.f32 %v2567_v51, %v4850_v58 }
0x11e7   :  { %v2571_v7 = vmul.f32 0.5, %v2570_v49  ;;  %v2525_v23 = vpop.xlane.xlu2 %2524 }
0x11e8   :  { %v2531_v42 = vmul.f32 %v2525_v23, %v3954_v46  ;;  %v2609_v59 = vmul.f32 %v4889_v41, %v2600_v3 }
0x11e9   :  { %v2572_v11 = vsub.f32 1.5, %v2571_v7 }
0x11ea   :  { %v3690_v18 = vpop.eup %3689  ;;  %v2537_v47 = vadd.f32 1e-05, %v2531_v42  ;;  %v2618_v12 = vadd.f32 %v4895_v2, %v2609_v59 }
0x11eb   :  { %v2573_v39 = vmul.f32 %v3688_v45, %v2572_v11  ;;  %v2579_v50 = vmul.f32 %v3690_v18, %v2536_v32  ;;  %vm2585_vm8 = vweird.f32 %v3690_v18 }
0x11ec   :  { %3691 = vrsqrt.f32 %v2537_v47  ;;  %vm2586_vm10 = vmor %vm2584_vm9, %vm2585_vm8  ;;  %vm2594_vm12 = vweird.f32 %v2537_v47 }
0x11ed   :  { %v2577_v19 = vsel %vm2576_vm7, %v3688_v45, %v2573_v39  ;;  %v2580_v6 = vmul.f32 %v3690_v18, %v2579_v50 }
0x11ee   :  { %v2601_v48 = vmul.f32 %v2577_v19, %v4857_v10 }
0x11ef   :  { %v2581_v63 = vmul.f32 0.5, %v2580_v6 }
0x11f0   :  { %v2610_v4 = vmul.f32 %v4889_v41, %v2601_v48 }
0x11f1   :  { %v2582_v1 = vsub.f32 1.5, %v2581_v63 }
0x11f2   :  { %v3692_v43 = vpop.eup %3691  ;;  %v2619_v58 = vadd.f32 %v4895_v2, %v2610_v4 }
0x11f3   :  { %v2583_v9 = vmul.f32 %v3690_v18, %v2582_v1  ;;  %v2589_v30 = vmul.f32 %v3692_v43, %v2537_v47  ;;  %vm2595_vm11 = vweird.f32 %v3692_v43 }
0x11f4   :  { %v2623_v31 = vpack.c.bf16 %v2619_v58, %v2618_v12  ;;  %vm2596_vm13 = vmor %vm2594_vm12, %vm2595_vm11 }
0x11f5   :  { %v2590_v44 = vmul.f32 %v3692_v43, %v2589_v30  ;;  %v2587_v10 = vsel %vm2586_vm10, %v3690_v18, %v2583_v9 }
0x11f6   :  { %3370 = vmatmul.msk.bf16.gmra.mxu3 %vm143_vm2, %v2623_v31  ;;  %v2602_v37 = vmul.f32 %v2587_v10, %v4864_v56  ;;  %v3479_v56 = vld [vmem:[%s5095_s21 + $0x78] sm:$0xff] }
0x11f7   :  { %v2591_v20 = vmul.f32 0.5, %v2590_v44  ;;  %2807 = vmatpush.bf16.msrb.mxu0 %v3479_v56 }
0x11f8   :  { %v2611_v33 = vmul.f32 %v4889_v41, %v2602_v37 }
0x11f9   :  { %v2592_v0 = vsub.f32 1.5, %v2591_v20 }
0x11fa   :  { %v2620_v24 = vadd.f32 %v4895_v2, %v2611_v33 }
0x11fb   :  { %v2593_v40 = vmul.f32 %v3692_v43, %v2592_v0 }
0x11fd   :  { %v2597_v13 = vsel %vm2596_vm13, %v3692_v43, %v2593_v40 }
0x11fe   :  { %v2603_v34 = vmul.f32 %v2597_v13, %v4871_v14  ;;  %v3478_v14 = vld [vmem:[%s5095_s21 + $0x70] sm:$0xff] }
0x11ff   :  { %2808 = vmatpush.bf16.msrb.mxu0 %v3478_v14 }
0x1200   :  { %v2612_v27 = vmul.f32 %v4889_v41, %v2603_v34  ;;  %v3477_v41 = vld [vmem:[%s5095_s21 + $0x68] sm:$0xff] }
0x1202   :  { %v2621_v38 = vadd.f32 %v4895_v2, %v2612_v27  ;;  %v3474_v2 = vld [vmem:[%s5095_s21 + $0x50] sm:$0xff] }
0x1203   :  { %2809 = vmatpush.bf16.msrb.mxu0 %v3477_v41 }
0x1204   :  { %v2624_v16 = vpack.c.bf16 %v2621_v38, %v2620_v24 }
0x1206   :  { %3371 = vmatmul.msk.bf16.gmra.mxu3 %vm143_vm2, %v2624_v16 }
0x1207   :  { %2810 = vmatpush.bf16.msrb.mxu0 %v3476_v52 }
0x120b   :  { %2811 = vmatpush.bf16.msrb.mxu0 %v3475_v8 }
0x120f   :  { %2812 = vmatpush.bf16.msrb.mxu0 %v3474_v2 }
0x1213   :  { %2813 = vmatpush.bf16.msrb.mxu0 %v3473_v15 }
0x1217   :  { %2814 = vmatpush.bf16.msrb.mxu0 %v3472_v61 }
0x1269   :  { %v2665_v62 = vpop.f32.mrf.mxu3 }
0x126a   :  { %v2666_v60 = vadd.f32 %v3518_v55, %v2665_v62 }
0x126c   :  { %v2686_v28 = vmul.f32 0.044715, %v2666_v60  ;;  %v2680_v63 = vmul.f32 0.5, %v2666_v60 }
0x126e   :  { %v2692_v5 = vmul.f32 %v2686_v28, %v2666_v60 }
0x1270   :  { %v2698_v45 = vmul.f32 %v2692_v5, %v2666_v60 }
0x1271   :  { %v2667_v36 = vpop.f32.mrf.mxu3 }
0x1272   :  { %v2704_v21 = vadd.f32 %v2698_v45, %v2666_v60  ;;  %v2668_v32 = vadd.f32 %v3518_v55, %v2667_v36 }
0x1274   :  { %v2687_v57 = vmul.f32 0.044715, %v2668_v32  ;;  %v2710_v29 = vmul.f32 0.7978846, %v2704_v21  ;;  %v2681_v4 = vmul.f32 0.5, %v2668_v32 }
0x1276   :  { %v2693_v35 = vmul.f32 %v2687_v57, %v2668_v32  ;;  %3693 = vtanh.f32 %v2710_v29 }
0x1278   :  { %v2699_v49 = vmul.f32 %v2693_v35, %v2668_v32 }
0x1279   :  { %v2670_v51 = vpop.f32.mrf.mxu3 }
0x127a   :  { %v2705_v7 = vadd.f32 %v2699_v49, %v2668_v32  ;;  %v2671_v23 = vadd.f32 %v3518_v55, %v2670_v51  ;;  %v3519_v51 = vld [vmem:[%s5094_s22 + $0x1] ss:$0 sm:$0xff] }
0x127c   :  { %v2711_v42 = vmul.f32 0.7978846, %v2705_v7  ;;  %v2688_v11 = vmul.f32 0.044715, %v2671_v23  ;;  %v3694_v3 = vpop.eup %3693  ;;  %v2682_v14 = vmul.f32 0.5, %v2671_v23 }
0x127d   :  { %v2722_v6 = vadd.f32 1.0, %v3694_v3 }
0x127e   :  { %3695 = vtanh.f32 %v2711_v42  ;;  %v2694_v18 = vmul.f32 %v2688_v11, %v2671_v23 }
0x127f   :  { %v2728_v58 = vmul.f32 %v2722_v6, %v2680_v63 }
0x1280   :  { %v2700_v47 = vmul.f32 %v2694_v18, %v2671_v23 }
0x1281   :  { %v2672_v39 = vpop.f32.mrf.mxu3 }
0x1282   :  { %v2673_v50 = vadd.f32 %v3518_v55, %v2672_v39  ;;  %v2706_v19 = vadd.f32 %v2700_v47, %v2671_v23 }
0x1284   :  { %v3696_v48 = vpop.eup %3695  ;;  %v2689_v59 = vmul.f32 0.044715, %v2673_v50  ;;  %v2712_v12 = vmul.f32 0.7978846, %v2706_v19  ;;  %v2683_v41 = vmul.f32 0.5, %v2673_v50 }
0x1285   :  { %v2723_v1 = vadd.f32 1.0, %v3696_v48 }
0x1286   :  { %v2695_v43 = vmul.f32 %v2689_v59, %v2673_v50  ;;  %3697 = vtanh.f32 %v2712_v12 }
0x1287   :  { %v2729_v9 = vmul.f32 %v2723_v1, %v2681_v4 }
0x1288   :  { %v2701_v30 = vmul.f32 %v2695_v43, %v2673_v50 }
0x1289   :  { %v2675_v31 = vpop.f32.mrf.mxu3  ;;  %v2734_v44 = vpack.c.bf16 %v2729_v9, %v2728_v58 }
0x128a   :  { %v2676_v10 = vadd.f32 %v3518_v55, %v2675_v31  ;;  %v2707_v20 = vadd.f32 %v2701_v30, %v2673_v50 }
0x128b   :  { %2815 = vmatmul.bf16.vlgmr.msrb.gmra.mxu0 %v2734_v44 }
0x128c   :  { %v2690_v0 = vmul.f32 0.044715, %v2676_v10  ;;  %v2713_v37 = vmul.f32 0.7978846, %v2707_v20  ;;  %v3698_v13 = vpop.eup %3697  ;;  %v2684_v21 = vmul.f32 0.5, %v2676_v10 }
0x128d   :  { %v2724_v38 = vadd.f32 1.0, %v3698_v13 }
0x128e   :  { %v2696_v40 = vmul.f32 %v2690_v0, %v2676_v10  ;;  %3699 = vtanh.f32 %v2713_v37 }
0x128f   :  { %v2730_v15 = vmul.f32 %v2724_v38, %v2682_v14 }
0x1290   :  { %v2702_v34 = vmul.f32 %v2696_v40, %v2676_v10 }
0x1291   :  { %v2677_v33 = vpop.f32.mrf.mxu3 }
0x1292   :  { %v2678_v27 = vadd.f32 %v3518_v55, %v2677_v33  ;;  %v2708_v24 = vadd.f32 %v2702_v34, %v2676_v10 }
0x1294   :  { %v3700_v16 = vpop.eup %3699  ;;  %v2691_v56 = vmul.f32 0.044715, %v2678_v27  ;;  %v2714_v2 = vmul.f32 0.7978846, %v2708_v24  ;;  %v2685_v32 = vmul.f32 0.5, %v2678_v27 }
0x1295   :  { %v2725_v52 = vadd.f32 1.0, %v3700_v16 }
0x1296   :  { %v2697_v8 = vmul.f32 %v2691_v56, %v2678_v27  ;;  %3701 = vtanh.f32 %v2714_v2 }
0x1297   :  { %v2731_v61 = vmul.f32 %v2725_v52, %v2683_v41 }
0x1298   :  { %v2703_v62 = vmul.f32 %v2697_v8, %v2678_v27 }
0x1299   :  { %v2735_v60 = vpack.c.bf16 %v2731_v61, %v2730_v15 }
0x129a   :  { %v2709_v28 = vadd.f32 %v2703_v62, %v2678_v27 }
0x129b   :  { %2820 = vmatmul.bf16.gmra.mxu0 %v2735_v60 }
0x129c   :  { %v2715_v5 = vmul.f32 0.7978846, %v2709_v28  ;;  %v3702_v45 = vpop.eup %3701 }
0x129d   :  { %v2726_v55 = vadd.f32 1.0, %v3702_v45 }
0x129e   :  { %3703 = vtanh.f32 %v2715_v5 }
0x129f   :  { %v2732_v29 = vmul.f32 %v2726_v55, %v2684_v21  ;;  %v3481_v55 = vld [vmem:[%s5099_s25 + $0x8] sm:$0xff] }
0x12a0   :  { %3027 = vmatpush.bf16.msrb.mxu1 %v3481_v55 }
0x12a4   :  { %v3704_v36 = vpop.eup %3703 }
0x12a5   :  { %v2727_v57 = vadd.f32 1.0, %v3704_v36 }
0x12a7   :  { %v2733_v35 = vmul.f32 %v2727_v57, %v2685_v32  ;;  %v3480_v57 = vld [vmem:[%s5099_s25] sm:$0xff] }
0x12a8   :  { %3028 = vmatpush.bf16.msrb.mxu1 %v3480_v57 }
0x12a9   :  { %v2736_v49 = vpack.c.bf16 %v2733_v35, %v2732_v29 }
0x12ab   :  { %2825 = vmatmul.bf16.gmra.mxu0 %v2736_v49 }
0x1308   :  { %v2816_v7 = vpop.f32.mrf.mxu0 }
0x1309   :  { %v2817_v23 = vadd.f32 %v3519_v51, %v2816_v7 }
0x130b   :  { %v2831_v42 = vadd.f32 %v2817_v23, %v4805_v22 }
0x130d   :  { %v2839_v11 = vsel %vm143_vm2, %v2831_v42, 0.0 }
0x130e   :  { %2840 = vadd.xlane.f32.xlu1 %v2839_v11 }
0x1310   :  { %v2818_v18 = vpop.f32.mrf.mxu0 }
0x1311   :  { %v2819_v3 = vadd.f32 %v3519_v51, %v2818_v18 }
0x1313   :  { %v2832_v47 = vadd.f32 %v2819_v3, %v4810_v54 }
0x1315   :  { %v2842_v39 = vsel %vm143_vm2, %v2832_v47, 0.0 }
0x1316   :  { %2843 = vadd.xlane.f32.xlu0 %v2842_v39 }
0x1318   :  { %v2821_v50 = vpop.f32.mrf.mxu0 }
0x1319   :  { %v2822_v19 = vadd.f32 %v3519_v51, %v2821_v50 }
0x131b   :  { %v2833_v6 = vadd.f32 %v2822_v19, %v4815_v53 }
0x131d   :  { %v2845_v48 = vsel %vm143_vm2, %v2833_v6, 0.0 }
0x131e   :  { %2846 = vadd.xlane.f32.xlu2 %v2845_v48 }
0x1320   :  { %v2823_v59 = vpop.f32.mrf.mxu0 }
0x1321   :  { %v2824_v63 = vadd.f32 %v3519_v51, %v2823_v59 }
0x1323   :  { %v2834_v22 = vadd.f32 %v2824_v63, %v4820_v26 }
0x1325   :  { %v2848_v4 = vsel %vm143_vm2, %v2834_v22, 0.0 }
0x1326   :  { %2849 = vadd.xlane.f32.xlu1 %v2848_v4 }
0x1328   :  { %v2826_v1 = vpop.f32.mrf.mxu0 }
0x1329   :  { %v2827_v43 = vadd.f32 %v3519_v51, %v2826_v1 }
0x132b   :  { %v2835_v54 = vadd.f32 %v2827_v43, %v4825_v17  ;;  %v5010_v43 = vld [vmem:[%s5096_s23] ss:$0 sm:$0xff] }
0x132d   :  { %v2851_v12 = vsel %vm143_vm2, %v2835_v54, 0.0 }
0x132e   :  { %2852 = vadd.xlane.f32.xlu0 %v2851_v12 }
0x1330   :  { %v2828_v58 = vpop.f32.mrf.mxu0 }
0x1331   :  { %v2829_v9 = vadd.f32 %v3519_v51, %v2828_v58 }
0x1333   :  { %v2836_v53 = vadd.f32 %v2829_v9, %v4830_v25 }
0x1335   :  { %v2854_v30 = vsel %vm143_vm2, %v2836_v53, 0.0 }
0x1336   :  { %2855 = vadd.xlane.f32.xlu2 %v2854_v30 }
0x1381   :  { %v2841_v31 = vpop.xlane.xlu1 %2840 }
0x1382   :  { %v2857_v26 = vmul.f32 %v2841_v31, %v3954_v46  ;;  %v5016_v31 = vld [vmem:[%s5097_s24] ss:$0 sm:$0xff] }
0x1384   :  { %v4962_v44 = vsub.f32 %v2831_v42, %v2857_v26 }
0x1386   :  { %v2869_v10 = vmul.f32 %v4962_v44, %v4962_v44 }
0x1388   :  { %v2875_v17 = vsel %vm143_vm2, %v2869_v10, 0.0 }
0x1389   :  { %2876 = vadd.xlane.f32.xlu1 %v2875_v17  ;;  %v2844_v20 = vpop.xlane.xlu0 %2843 }
0x138a   :  { %v2858_v0 = vmul.f32 %v2844_v20, %v3954_v46 }
0x138c   :  { %v4968_v37 = vsub.f32 %v2832_v47, %v2858_v0 }
0x138e   :  { %v2870_v25 = vmul.f32 %v4968_v37, %v4968_v37 }
0x1390   :  { %v2878_v40 = vsel %vm143_vm2, %v2870_v25, 0.0 }
0x1391   :  { %v2847_v13 = vpop.xlane.xlu2 %2846  ;;  %2879 = vadd.xlane.f32.xlu0 %v2878_v40 }
0x1392   :  { %v2859_v34 = vmul.f32 %v2847_v13, %v3954_v46 }
0x1394   :  { %v4974_v33 = vsub.f32 %v2833_v6, %v2859_v34 }
0x1396   :  { %v2871_v27 = vmul.f32 %v4974_v33, %v4974_v33 }
0x1398   :  { %v2881_v24 = vsel %vm143_vm2, %v2871_v27, 0.0 }
0x1399   :  { %v2850_v38 = vpop.xlane.xlu1 %2849  ;;  %2882 = vadd.xlane.f32.xlu2 %v2881_v24 }
0x139a   :  { %v2860_v16 = vmul.f32 %v2850_v38, %v3954_v46 }
0x139c   :  { %v4980_v56 = vsub.f32 %v2834_v22, %v2860_v16 }
0x139e   :  { %v2872_v14 = vmul.f32 %v4980_v56, %v4980_v56 }
0x13a0   :  { %v2884_v41 = vsel %vm143_vm2, %v2872_v14, 0.0 }
0x13a1   :  { %2885 = vadd.xlane.f32.xlu1 %v2884_v41  ;;  %v2853_v52 = vpop.xlane.xlu0 %2852 }
0x13a2   :  { %v2861_v8 = vmul.f32 %v2853_v52, %v3954_v46 }
0x13a4   :  { %v4986_v2 = vsub.f32 %v2835_v54, %v2861_v8 }
0x13a6   :  { %v2873_v15 = vmul.f32 %v4986_v2, %v4986_v2 }
0x13a8   :  { %v2887_v61 = vsel %vm143_vm2, %v2873_v15, 0.0 }
0x13a9   :  { %v2856_v62 = vpop.xlane.xlu2 %2855  ;;  %2888 = vadd.xlane.f32.xlu0 %v2887_v61 }
0x13aa   :  { %v2862_v60 = vmul.f32 %v2856_v62, %v3954_v46 }
0x13ac   :  { %v4992_v28 = vsub.f32 %v2836_v53, %v2862_v60 }
0x13ae   :  { %v2874_v5 = vmul.f32 %v4992_v28, %v4992_v28 }
0x13b0   :  { %v2890_v45 = vsel %vm143_vm2, %v2874_v5, 0.0 }
0x13b1   :  { %2891 = vadd.xlane.f32.xlu2 %v2890_v45 }
0x13fc   :  { %v2877_v36 = vpop.xlane.xlu1 %2876 }
0x13fd   :  { %v2893_v21 = vmul.f32 %v2877_v36, %v3954_v46 }
0x13ff   :  { %v2899_v32 = vadd.f32 1e-05, %v2893_v21 }
0x1401   :  { %3705 = vrsqrt.f32 %v2899_v32  ;;  %vm2911_vm15 = vweird.f32 %v2899_v32 }
0x1404   :  { %v2880_v29 = vpop.xlane.xlu0 %2879 }
0x1405   :  { %v2894_v35 = vmul.f32 %v2880_v29, %v3954_v46 }
0x1407   :  { %v3706_v49 = vpop.eup %3705  ;;  %v2900_v51 = vadd.f32 1e-05, %v2894_v35 }
0x1408   :  { %v2906_v7 = vmul.f32 %v3706_v49, %v2899_v32  ;;  %vm2912_vm14 = vweird.f32 %v3706_v49 }
0x1409   :  { %3707 = vrsqrt.f32 %v2900_v51  ;;  %vm2913_vm0 = vmor %vm2911_vm15, %vm2912_vm14  ;;  %vm2921_vm4 = vweird.f32 %v2900_v51 }
0x140a   :  { %v2907_v23 = vmul.f32 %v3706_v49, %v2906_v7 }
0x140c   :  { %v2908_v42 = vmul.f32 0.5, %v2907_v23  ;;  %v2883_v11 = vpop.xlane.xlu2 %2882 }
0x140d   :  { %v2895_v18 = vmul.f32 %v2883_v11, %v3954_v46 }
0x140e   :  { %v2909_v3 = vsub.f32 1.5, %v2908_v42 }
0x140f   :  { %v3708_v47 = vpop.eup %3707  ;;  %v2901_v39 = vadd.f32 1e-05, %v2895_v18 }
0x1410   :  { %v2910_v50 = vmul.f32 %v3706_v49, %v2909_v3  ;;  %v2916_v19 = vmul.f32 %v3708_v47, %v2900_v51  ;;  %vm2922_vm3 = vweird.f32 %v3708_v47 }
0x1411   :  { %3709 = vrsqrt.f32 %v2901_v39  ;;  %vm2923_vm5 = vmor %vm2921_vm4, %vm2922_vm3  ;;  %vm2931_vm7 = vweird.f32 %v2901_v39 }
0x1412   :  { %v2917_v6 = vmul.f32 %v3708_v47, %v2916_v19  ;;  %v2914_v48 = vsel %vm2913_vm0, %v3706_v49, %v2910_v50 }
0x1413   :  { %v2965_v54 = vmul.f32 %v2914_v48, %v4962_v44 }
0x1414   :  { %v2918_v59 = vmul.f32 0.5, %v2917_v6  ;;  %v2886_v63 = vpop.xlane.xlu1 %2885 }
0x1415   :  { %v2896_v22 = vmul.f32 %v2886_v63, %v3954_v46  ;;  %v2974_v26 = vmul.f32 %v5010_v43, %v2965_v54 }
0x1416   :  { %v2919_v4 = vsub.f32 1.5, %v2918_v59 }
0x1417   :  { %v3710_v1 = vpop.eup %3709  ;;  %v2902_v12 = vadd.f32 1e-05, %v2896_v22  ;;  %v2983_v13 = vadd.f32 %v5016_v31, %v2974_v26  ;;  %v3045_v22 = vlaneseq }
0x1418   :  { %v2920_v58 = vmul.f32 %v3708_v47, %v2919_v4  ;;  %v2926_v9 = vmul.f32 %v3710_v1, %v2901_v39  ;;  %vm2932_vm6 = vweird.f32 %v3710_v1 }
0x1419   :  { %3711 = vrsqrt.f32 %v2902_v12  ;;  %vm2933_vm8 = vmor %vm2931_vm7, %vm2932_vm6  ;;  %vm2941_vm10 = vweird.f32 %v2902_v12  ;;  %v3046_v54 = vand.u32 127, %v3045_v22 }
0x141a   :  { %v2924_v53 = vsel %vm2923_vm5, %v3708_v47, %v2920_v58  ;;  %v2927_v30 = vmul.f32 %v3710_v1, %v2926_v9 }
0x141b   :  { %v2966_v10 = vmul.f32 %v2924_v53, %v4968_v37  ;;  %vm3047_vm4 = vcmp.ge.s32.totalorder %v3046_v54, 5 }
0x141c   :  { %v2928_v17 = vmul.f32 0.5, %v2927_v30  ;;  %v2889_v20 = vpop.xlane.xlu0 %2888 }
0x141d   :  { %v2975_v44 = vmul.f32 %v5010_v43, %v2966_v10  ;;  %v2897_v0 = vmul.f32 %v2889_v20, %v3954_v46 }
0x141e   :  { %v2929_v25 = vsub.f32 1.5, %v2928_v17 }
0x141f   :  { %v3712_v40 = vpop.eup %3711  ;;  %v2984_v34 = vadd.f32 %v5016_v31, %v2975_v44  ;;  %v2903_v27 = vadd.f32 1e-05, %v2897_v0 }
0x1420   :  { %v2930_v24 = vmul.f32 %v3710_v1, %v2929_v25  ;;  %v2936_v38 = vmul.f32 %v3712_v40, %v2902_v12  ;;  %vm2942_vm9 = vweird.f32 %v3712_v40 }
0x1421   :  { %v2989_v16 = vpack.c.bf16 %v2984_v34, %v2983_v13  ;;  %3713 = vrsqrt.f32 %v2903_v27  ;;  %vm2943_vm11 = vmor %vm2941_vm10, %vm2942_vm9  ;;  %vm2951_vm13 = vweird.f32 %v2903_v27 }
0x1422   :  { %v2937_v37 = vmul.f32 %v3712_v40, %v2936_v38  ;;  %v2934_v14 = vsel %vm2933_vm8, %v3710_v1, %v2930_v24 }
0x1423   :  { %3429 = vmatmul.msk.bf16.vlgmr.msrb.gmra.mxu1 %vm143_vm2, %v2989_v16  ;;  %v2967_v62 = vmul.f32 %v2934_v14, %v4974_v33 }
0x1424   :  { %v2938_v41 = vmul.f32 0.5, %v2937_v37  ;;  %v2892_v52 = vpop.xlane.xlu2 %2891 }
0x1425   :  { %v2898_v8 = vmul.f32 %v2892_v52, %v3954_v46  ;;  %v2976_v32 = vmul.f32 %v5010_v43, %v2967_v62 }
0x1426   :  { %v2939_v15 = vsub.f32 1.5, %v2938_v41 }
0x1427   :  { %v3714_v61 = vpop.eup %3713  ;;  %v2904_v60 = vadd.f32 1e-05, %v2898_v8  ;;  %v2985_v49 = vadd.f32 %v5016_v31, %v2976_v32 }
0x1428   :  { %v2940_v5 = vmul.f32 %v3712_v40, %v2939_v15  ;;  %v2946_v45 = vmul.f32 %v3714_v61, %v2903_v27  ;;  %vm2952_vm12 = vweird.f32 %v3714_v61 }
0x1429   :  { %3715 = vrsqrt.f32 %v2904_v60  ;;  %vm2953_vm14 = vmor %vm2951_vm13, %vm2952_vm12  ;;  %vm2961_vm0 = vweird.f32 %v2904_v60 }
0x142a   :  { %v2944_v55 = vsel %vm2943_vm11, %v3712_v40, %v2940_v5  ;;  %v2947_v36 = vmul.f32 %v3714_v61, %v2946_v45 }
0x142b   :  { %v2968_v21 = vmul.f32 %v2944_v55, %v4980_v56 }
0x142c   :  { %v2948_v57 = vmul.f32 0.5, %v2947_v36 }
0x142d   :  { %v2977_v46 = vmul.f32 %v5010_v43, %v2968_v21 }
0x142e   :  { %v2949_v29 = vsub.f32 1.5, %v2948_v57 }
0x142f   :  { %v3716_v35 = vpop.eup %3715  ;;  %v2986_v33 = vadd.f32 %v5016_v31, %v2977_v46 }
0x1430   :  { %v2950_v51 = vmul.f32 %v3714_v61, %v2949_v29  ;;  %v2956_v7 = vmul.f32 %v3716_v35, %v2904_v60  ;;  %vm2962_vm15 = vweird.f32 %v3716_v35 }
0x1431   :  { %v2990_v23 = vpack.c.bf16 %v2986_v33, %v2985_v49  ;;  %vm2963_vm3 = vmor %vm2961_vm0, %vm2962_vm15 }
0x1432   :  { %v2957_v42 = vmul.f32 %v3716_v35, %v2956_v7  ;;  %v2954_v56 = vsel %vm2953_vm14, %v3714_v61, %v2950_v51 }
0x1433   :  { %3430 = vmatmul.msk.bf16.gmra.mxu1 %vm143_vm2, %v2990_v23  ;;  %v2969_v3 = vmul.f32 %v2954_v56, %v4986_v2  ;;  %v3522_v2 = vld [vmem:[%s5098_s26] ss:$0 sm:$0xff] }
0x1434   :  { %v2958_v11 = vmul.f32 0.5, %v2957_v42 }
0x1435   :  { %v2978_v19 = vmul.f32 %v5010_v43, %v2969_v3 }
0x1436   :  { %v2959_v18 = vsub.f32 1.5, %v2958_v11 }
0x1437   :  { %v2987_v48 = vadd.f32 %v5016_v31, %v2978_v19 }
0x1438   :  { %v2960_v47 = vmul.f32 %v3716_v35, %v2959_v18 }
0x143a   :  { %v2964_v39 = vsel %vm2963_vm3, %v3716_v35, %v2960_v47 }
0x143b   :  { %v2970_v50 = vmul.f32 %v2964_v39, %v4992_v28 }
0x143d   :  { %v2979_v6 = vmul.f32 %v5010_v43, %v2970_v50 }
0x143f   :  { %v2988_v59 = vadd.f32 %v5016_v31, %v2979_v6 }
0x1441   :  { %v2991_v63 = vpack.c.bf16 %v2988_v59, %v2987_v48 }
0x1443   :  { %3431 = vmatmul.msk.bf16.gmra.mxu1 %vm143_vm2, %v2991_v63 }
0x14a0   :  { %v3030_v4 = vpop.f32.mrf.mxu1 }
0x14a1   :  { %v3031_v1 = vadd.f32 %v3522_v2, %v3030_v4 }
0x14a3   :  { %3717 = vtanh.f32 %v3031_v1 }
0x14a8   :  { %v3032_v28 = vpop.f32.mrf.mxu1 }
0x14a9   :  { %v3718_v12 = vpop.eup %3717  ;;  %v3033_v43 = vadd.f32 %v3522_v2, %v3032_v28 }
0x14aa   :  { %v3054_v58 = vsel %vm3047_vm4, %v3718_v12, %v3031_v1 }
0x14ab   :  { %3060 = vst.msk [vmem:[%s5138_s10] sm:$0xff] %vm103_vm1, %v3054_v58  ;;  %3719 = vtanh.f32 %v3033_v43 }
0x14b0   :  { %v3035_v9 = vpop.f32.mrf.mxu1 }
0x14b1   :  { %v3720_v53 = vpop.eup %3719  ;;  %v3036_v30 = vadd.f32 %v3522_v2, %v3035_v9 }
0x14b2   :  { %v3055_v31 = vsel %vm3047_vm4, %v3720_v53, %v3033_v43 }
0x14b3   :  { %3061 = vst.msk [vmem:[%s5138_s10 + $0x8] sm:$0xff] %vm103_vm1, %v3055_v31  ;;  %3721 = vtanh.f32 %v3036_v30 }
0x14b8   :  { %v3037_v26 = vpop.f32.mrf.mxu1 }
0x14b9   :  { %v3722_v10 = vpop.eup %3721  ;;  %v3038_v17 = vadd.f32 %v3522_v2, %v3037_v26 }
0x14ba   :  { %v3056_v20 = vsel %vm3047_vm4, %v3722_v10, %v3036_v30 }
0x14bb   :  { %3062 = vst.msk [vmem:[%s5138_s10 + $0x10] sm:$0xff] %vm103_vm1, %v3056_v20  ;;  %3723 = vtanh.f32 %v3038_v17 }
0x14c0   :  { %v3040_v44 = vpop.f32.mrf.mxu1 }
0x14c1   :  { %v3724_v0 = vpop.eup %3723  ;;  %v3041_v25 = vadd.f32 %v3522_v2, %v3040_v44 }
0x14c2   :  { %v3057_v40 = vsel %vm3047_vm4, %v3724_v0, %v3038_v17 }
0x14c3   :  { %3063 = vst.msk [vmem:[%s5138_s10 + $0x18] sm:$0xff] %vm103_vm1, %v3057_v40  ;;  %3725 = vtanh.f32 %v3041_v25 }
0x14c8   :  { %v3042_v13 = vpop.f32.mrf.mxu1 }
0x14c9   :  { %v3726_v34 = vpop.eup %3725  ;;  %v3043_v27 = vadd.f32 %v3522_v2, %v3042_v13 }
0x14ca   :  { %v3058_v24 = vsel %vm3047_vm4, %v3726_v34, %v3041_v25 }
0x14cb   :  { %3064 = vst.msk [vmem:[%s5138_s10 + $0x20] sm:$0xff] %vm103_vm1, %v3058_v24  ;;  %3727 = vtanh.f32 %v3043_v27 }
0x14d1   :  { %v3728_v38 = vpop.eup %3727 }
0x14d2   :  { %v3059_v16 = vsel %vm3047_vm4, %v3728_v38, %v3043_v27 }
0x14d3   :  { %3065 = vst.msk [vmem:[%s5138_s10 + $0x28] sm:$0xff] %vm103_vm1, %v3059_v16 }

</bundles_post_ra>
